<compile_context>
chip_gen: v5e
topology: v5e:2x2
jax: 0.10.0
libtpu: 0.0.40
codegen_flags: <defaults>
</compile_context>

<pallas_src>
import functools

import jax
import jax.numpy as jnp
from jax.experimental import pallas as pl
from jax.experimental.pallas import tpu as pltpu

# ---------------- configuration (small, consistent with the module) ----------
BATCH = 2          # sessions per batch
NQUERIES = 3       # queries per session
SEQ_LEN = 8        # tokens per query
VOCAB = 64         # len(dictionary)
EMSIZE = 32        # config.emsize
NHID_QUERY = 32    # config.nhid_query
NHID_SESSION = 32  # config.nhid_session
START_TOKEN = 1    # dictionary.word2idx[dictionary.start_token]

ROW_PAD = 8        # f32 sublane tile height
VOCAB_PAD = 128    # lane width
NEG_INF = -1e30    # finite "minus infinity" for padded vocab lanes

_VMEM = pl.BlockSpec(memory_space=pltpu.MemorySpace.VMEM)


# ---------------------------- Pallas kernel ----------------------------------
def _lstm_gates(g, c, hidden):
    """LSTM nonlinearity with the g-gate pre-scaled-by-2 convention.

    The weights/bias feeding columns [2H:3H) of `g` are scaled by 2 on the
    host, so tanh(x) = 2*sigmoid(2x) - 1 is recovered from the single
    full-width sigmoid pass (one fewer EUP pass on the serial chain).
    """
    sg = jax.nn.sigmoid(g)
    i = sg[:, 0 * hidden:1 * hidden]
    f = sg[:, 1 * hidden:2 * hidden]
    gg = 2.0 * sg[:, 2 * hidden:3 * hidden] - 1.0
    o = sg[:, 3 * hidden:4 * hidden]
    c_new = f * c + i * gg
    h_new = o * jnp.tanh(c_new)
    return h_new, c_new


def _seq2seq_kernel(xq_ref, qwih_ref, qwhh_ref, qb_ref,
                    swih_ref, swhh_ref, sb_ref,
                    xd_ref, dwih_ref, db_ref, dwcat_ref, dbout_ref,
                    tgt_ref, w_ref,
                    loss_ref,
                    *, batch, nqueries, steps, hq, hs):
    # ---------------- query encoder: T fused steps --------------------------
    # Hoisted input-side gate matmul: one MXU op for every time step.
    gates_xq = (jnp.dot(xq_ref[...], qwih_ref[...],
                        preferred_element_type=jnp.float32) + qb_ref[...])
    qwhh = qwhh_ref[...]
    h = jnp.zeros((ROW_PAD, hq), jnp.float32)
    c = jnp.zeros((ROW_PAD, hq), jnp.float32)
    for t in range(steps):                      # static unroll; h/c stay in vregs
        g = gates_xq[t * ROW_PAD:(t + 1) * ROW_PAD, :] + jnp.dot(
            h, qwhh, preferred_element_type=jnp.float32)
        h, c = _lstm_gates(g, c, hq)
    h_last = h                                  # (ROW_PAD, hq); row = b*Q + q

    # ---------------- session encoder: only steps 0..Q-2 are consumed -------
    swih = swih_ref[...]
    swhh = swhh_ref[...]
    sb = sb_ref[...]
    rid_q = jax.lax.broadcasted_iota(jnp.int32, (ROW_PAD, hq), 0)
    sh = jnp.zeros((ROW_PAD, hs), jnp.float32)
    sc = jnp.zeros((ROW_PAD, hs), jnp.float32)
    hs_steps, cs_steps = [], []
    for q in range(nqueries - 1):               # step Q-1 never feeds the loss
        # gather rows b*Q+q of h_last into rows 0..B-1 (static row selects)
        x_s = jnp.zeros((ROW_PAD, hq), jnp.float32)
        for b in range(batch):
            src = h_last[b * nqueries + q:b * nqueries + q + 1, :]
            x_s = jnp.where(rid_q == b, src, x_s)
        g = (jnp.dot(x_s, swih, preferred_element_type=jnp.float32) + sb
             + jnp.dot(sh, swhh, preferred_element_type=jnp.float32))
        sh, sc = _lstm_gates(g, sc, hs)
        hs_steps.append(sh)
        cs_steps.append(sc)

    # ---------------- decoder initial state, rows ordered (b, qi) -----------
    rid_s = jax.lax.broadcasted_iota(jnp.int32, (ROW_PAD, hs), 0)
    dh = jnp.zeros((ROW_PAD, hs), jnp.float32)
    dc = jnp.zeros((ROW_PAD, hs), jnp.float32)
    for b in range(batch):
        for qi in range(nqueries - 1):
            r = b * (nqueries - 1) + qi         # matches PyTorch .view(-1, H)
            dh = jnp.where(rid_s == r, hs_steps[qi][b:b + 1, :], dh)
            dc = jnp.where(rid_s == r, cs_steps[qi][b:b + 1, :], dc)

    # ---------------- decoder: T steps + log-softmax + masked NLL -----------
    gates_xd = (jnp.dot(xd_ref[...], dwih_ref[...],
                        preferred_element_type=jnp.float32) + db_ref[...])
    wcat = dwcat_ref[...]                       # (hs, 4*hs + VOCAB_PAD)
    bout = dbout_ref[...]                       # (1, VOCAB_PAD); pad lanes -1e30
    lane_iota = jax.lax.broadcasted_iota(jnp.int32, (ROW_PAD, VOCAB_PAD), 1)
    # peel the h0 @ W_hh contribution for step 0
    hg = jnp.dot(dh, wcat[:, :4 * hs], preferred_element_type=jnp.float32)
    loss_rows = jnp.zeros((ROW_PAD, 1), jnp.float32)
    for t in range(steps):
        g = gates_xd[t * ROW_PAD:(t + 1) * ROW_PAD, :] + hg
        dh, dc = _lstm_gates(g, dc, hs)
        # one 256-lane MXU op: [next-step gate contribution | current logits]
        fused = jnp.dot(dh, wcat, preferred_element_type=jnp.float32)
        hg = fused[:, :4 * hs]
        logits = fused[:, 4 * hs:] + bout
        m = jnp.max(logits, axis=-1, keepdims=True)
        lse = m + jnp.log(jnp.sum(jnp.exp(logits - m), axis=-1, keepdims=True))
        logp = logits - lse
        # in-kernel NLL weight: one-hot(target) via iota compare, scaled by
        # mask/count (0 for padded rows / steps past the target length)
        tgt_t = tgt_ref[t * ROW_PAD:(t + 1) * ROW_PAD, :]   # (ROW_PAD,1) int32
        w_t = w_ref[t * ROW_PAD:(t + 1) * ROW_PAD, :]       # (ROW_PAD,1) f32
        picked = jnp.sum(jnp.where(lane_iota == tgt_t, logp, 0.0),
                         axis=-1, keepdims=True)
        loss_rows = loss_rows - picked * w_t
    loss_ref[...] = jnp.sum(loss_rows, axis=0, keepdims=True)


def seq2seq_loss(x_q, q_wih, q_whh, q_b, s_wih, s_whh, s_b,
                 x_d, d_wih, d_b, d_wcat, d_bout, tgt, w,
                 *, batch, nqueries, steps):
    kernel = functools.partial(_seq2seq_kernel, batch=batch, nqueries=nqueries,
                               steps=steps, hq=NHID_QUERY, hs=NHID_SESSION)
    return pl.pallas_call(
        kernel,
        out_shape=jax.ShapeDtypeStruct((1, 1), jnp.float32),
        in_specs=[_VMEM] * 14,
        out_specs=_VMEM,
    )(x_q, q_wih, q_whh, q_b, s_wih, s_whh, s_b,
      x_d, d_wih, d_b, d_wcat, d_bout, tgt, w)


# ------------------------------ parameters -----------------------------------
def init_params(key):
    ks = jax.random.split(key, 12)
    u = lambda k, shape, s=0.1: jax.random.uniform(k, shape, jnp.float32, -s, s)
    return {
        "embedding": u(ks[0], (VOCAB, EMSIZE), 0.5),
        # query encoder LSTM (emsize -> nhid_query)
        "q_wih": u(ks[1], (EMSIZE, 4 * NHID_QUERY)),
        "q_whh": u(ks[2], (NHID_QUERY, 4 * NHID_QUERY)),
        "q_b":   u(ks[3], (1, 4 * NHID_QUERY)),
        # session encoder LSTM (nhid_query -> nhid_session)
        "s_wih": u(ks[4], (NHID_QUERY, 4 * NHID_SESSION)),
        "s_whh": u(ks[5], (NHID_SESSION, 4 * NHID_SESSION)),
        "s_b":   u(ks[6], (1, 4 * NHID_SESSION)),
        # decoder LSTM (emsize -> nhid_session) + output projection
        "d_wih": u(ks[7], (EMSIZE, 4 * NHID_SESSION)),
        "d_whh": u(ks[8], (NHID_SESSION, 4 * NHID_SESSION)),
        "d_b":   u(ks[9], (1, 4 * NHID_SESSION)),
        "d_wout": u(ks[10], (NHID_SESSION, VOCAB)),
        "d_bout": u(ks[11], (1, VOCAB)),
    }


def _scale_g_gate(w, hidden):
    """Scale the g-gate columns by 2 (tanh(x) = 2*sigmoid(2x) - 1 trick)."""
    s = jnp.concatenate([jnp.ones((2 * hidden,), jnp.float32),
                         jnp.full((hidden,), 2.0, jnp.float32),
                         jnp.ones((hidden,), jnp.float32)])
    return w * s


# ------------------------------ forward pass ----------------------------------
@jax.jit
def forward(params, batch_session, length):
    B, Q, T = batch_session.shape
    n = B * Q
    N = B * (Q - 1)
    emb_tbl = params["embedding"]

    # query encoder inputs: time-major, rows ordered (b, q), padded to 8 rows.
    # (Last-step h is used regardless of per-query length, matching the
    #  module's `output[:, -1, :]` on an un-packed nn.LSTM.)
    tokens = batch_session.reshape(n, T)
    emb = jnp.take(emb_tbl, tokens, axis=0)                      # (n, T, E)
    emb = jnp.transpose(emb, (1, 0, 2))                          # (T, n, E)
    emb = jnp.pad(emb, ((0, 0), (0, ROW_PAD - n), (0, 0)))
    x_q = emb.reshape(T * ROW_PAD, EMSIZE)

    # decoder teacher-forced inputs, rows ordered (b, qi) = PyTorch layout
    decoder_input = batch_session[:, 1:, :].reshape(N, T)        # (N, T)
    target_length = length[:, 1:].reshape(N)                     # (N,)
    in_tok = jnp.concatenate(
        [jnp.full((1, N), START_TOKEN, jnp.int32),
         decoder_input[:, :T - 1].T.astype(jnp.int32)], axis=0)  # (T, N)
    x_emb = jnp.take(emb_tbl, in_tok, axis=0)                    # (T, N, E)
    x_emb = jnp.pad(x_emb, ((0, 0), (0, ROW_PAD - N), (0, 0)))
    x_d = x_emb.reshape(T * ROW_PAD, EMSIZE)

    # per-(step,row) target ids and loss weights mask/count; cnt==0 guarded
    # (PyTorch would produce 0/0 -> NaN; deliberate semantic fix).
    tgt = decoder_input.T.astype(jnp.int32)                      # (T, N)
    step_idx = jnp.arange(T, dtype=jnp.int32)[:, None]
    mask = (target_length[None, :] > step_idx).astype(jnp.float32)
    cnt = jnp.sum(mask, axis=1, keepdims=True)
    scale = jnp.where(cnt > 0, 1.0 / jnp.maximum(cnt, 1.0), 0.0)
    w = mask * scale                                             # (T, N)
    tgt_pad = jnp.pad(tgt, ((0, 0), (0, ROW_PAD - N))).reshape(T * ROW_PAD, 1)
    w_pad = jnp.pad(w, ((0, 0), (0, ROW_PAD - N))).reshape(T * ROW_PAD, 1)

    # weight prep: g-gate scaling; fused decoder [W_hh | W_out_pad] matrix;
    # padded vocab lanes pushed to a *finite* -1e30 via the bias (never -inf:
    # the zero-weighted padded lanes would otherwise give 0*inf = NaN).
    q_wih = _scale_g_gate(params["q_wih"], NHID_QUERY)
    q_whh = _scale_g_gate(params["q_whh"], NHID_QUERY)
    q_b = _scale_g_gate(params["q_b"], NHID_QUERY)
    s_wih = _scale_g_gate(params["s_wih"], NHID_SESSION)
    s_whh = _scale_g_gate(params["s_whh"], NHID_SESSION)
    s_b = _scale_g_gate(params["s_b"], NHID_SESSION)
    d_wih = _scale_g_gate(params["d_wih"], NHID_SESSION)
    d_b = _scale_g_gate(params["d_b"], NHID_SESSION)
    wout_pad = jnp.pad(params["d_wout"], ((0, 0), (0, VOCAB_PAD - VOCAB)))
    d_wcat = jnp.concatenate(
        [_scale_g_gate(params["d_whh"], NHID_SESSION), wout_pad], axis=1)
    bout = jnp.pad(params["d_bout"], ((0, 0), (0, VOCAB_PAD - VOCAB)),
                   constant_values=NEG_INF)

    loss = seq2seq_loss(x_q, q_wih, q_whh, q_b, s_wih, s_whh, s_b,
                        x_d, d_wih, d_b, d_wcat, bout, tgt_pad, w_pad,
                        batch=B, nqueries=Q, steps=T)
    return loss[0, 0]


# ------------------------- pure-JAX reference (for self-check) ----------------
def forward_ref(params, batch_session, length):
    B, Q, T = batch_session.shape
    n, N = B * Q, B * (Q - 1)

    def cell(x, h, c, wih, whh, b):
        g = x @ wih + h @ whh + b
        H = h.shape[-1]
        i = jax.nn.sigmoid(g[:, :H])
        f = jax.nn.sigmoid(g[:, H:2 * H])
        gg = jnp.tanh(g[:, 2 * H:3 * H])
        o = jax.nn.sigmoid(g[:, 3 * H:])
        c = f * c + i * gg
        return o * jnp.tanh(c), c

    emb = jnp.take(params["embedding"], batch_session.reshape(n, T), axis=0)
    h = jnp.zeros((n, NHID_QUERY)); c = jnp.zeros((n, NHID_QUERY))
    for t in range(T):
        h, c = cell(emb[:, t, :], h, c,
                    params["q_wih"], params["q_whh"], params["q_b"])
    sess_in = h.reshape(B, Q, NHID_QUERY)
    sh = jnp.zeros((B, NHID_SESSION)); sc = jnp.zeros((B, NHID_SESSION))
    hs, cs = [], []
    for q in range(Q):
        sh, sc = cell(sess_in[:, q, :], sh, sc,
                      params["s_wih"], params["s_whh"], params["s_b"])
        hs.append(sh); cs.append(sc)
    dh = jnp.stack(hs, 1)[:, :-1, :].reshape(N, NHID_SESSION)
    dc = jnp.stack(cs, 1)[:, :-1, :].reshape(N, NHID_SESSION)
    dec_in = batch_session[:, 1:, :].reshape(N, T)
    tlen = length[:, 1:].reshape(N)
    tok = jnp.full((N,), START_TOKEN, jnp.int32)
    loss = 0.0
    for idx in range(T):
        if idx != 0:
            tok = dec_in[:, idx - 1]
        x = jnp.take(params["embedding"], tok, axis=0)
        dh, dc = cell(x, dh, dc,
                      params["d_wih"], params["d_whh"], params["d_b"])
        logp = jax.nn.log_softmax(dh @ params["d_wout"] + params["d_bout"], -1)
        nll = -jnp.take_along_axis(logp, dec_in[:, idx][:, None], axis=1)[:, 0]
        m = (tlen > idx).astype(jnp.float32)
        cnt = jnp.sum(m)
        loss = loss + jnp.where(cnt > 0,
                                jnp.sum(nll * m) / jnp.maximum(cnt, 1.0), 0.0)
    return loss


# ---------------------------------- main --------------------------------------
if __name__ == "__main__":
    key = jax.random.PRNGKey(0)
    k_param, k_tok = jax.random.split(key)
    params = init_params(k_param)

    # deterministic synthetic session: token ids in [2, VOCAB)
    batch_session = jax.random.randint(
        k_tok, (BATCH, NQUERIES, SEQ_LEN), 2, VOCAB, dtype=jnp.int32)
    # per-query lengths (no all-padded step in this test data)
    length = jnp.array([[SEQ_LEN, 5, SEQ_LEN],
                        [6, SEQ_LEN, 7]], dtype=jnp.int32)

    loss = forward(params, batch_session, length)
    jax.block_until_ready(loss)
    assert jnp.isfinite(loss), "loss is not finite"

    ref = forward_ref(params, batch_session, length)
    assert jnp.allclose(loss, ref, rtol=1e-3, atol=1e-3), (loss, ref)

    # TODO(synk): pretrained-embedding initialization (embedding_index) and the
    # bidirection/GRU config branches are not exercised (LSTM, unidirectional).
    print("KERNEL_OK")
</pallas_src>

<mosaic_0001>
module attributes {stable_mosaic.version = 11 : i64} {
  func.func @_seq2seq_kernel(%arg0: memref<64x32xf32, #tpu.memory_space<vmem>>, %arg1: memref<32x128xf32, #tpu.memory_space<vmem>>, %arg2: memref<32x128xf32, #tpu.memory_space<vmem>>, %arg3: memref<1x128xf32, #tpu.memory_space<vmem>>, %arg4: memref<32x128xf32, #tpu.memory_space<vmem>>, %arg5: memref<32x128xf32, #tpu.memory_space<vmem>>, %arg6: memref<1x128xf32, #tpu.memory_space<vmem>>, %arg7: memref<64x32xf32, #tpu.memory_space<vmem>>, %arg8: memref<32x128xf32, #tpu.memory_space<vmem>>, %arg9: memref<1x128xf32, #tpu.memory_space<vmem>>, %arg10: memref<32x256xf32, #tpu.memory_space<vmem>>, %arg11: memref<1x128xf32, #tpu.memory_space<vmem>>, %arg12: memref<64x1xi32, #tpu.memory_space<vmem>>, %arg13: memref<64x1xf32, #tpu.memory_space<vmem>>, %arg14: memref<1x1xf32, #tpu.memory_space<vmem>>) attributes {dimension_semantics = [], scalar_prefetch = 0 : i64, scratch_operands = 0 : i64, tpu.core_type = #tpu.core_type<tc>} {
    %c0 = arith.constant 0 : index
    %c0_0 = arith.constant 0 : index
    %0 = vector.load %arg0[%c0, %c0_0] : memref<64x32xf32, #tpu.memory_space<vmem>>, vector<64x32xf32>
    %c0_1 = arith.constant 0 : index
    %c0_2 = arith.constant 0 : index
    %1 = vector.load %arg1[%c0_1, %c0_2] : memref<32x128xf32, #tpu.memory_space<vmem>>, vector<32x128xf32>
    %cst = arith.constant dense<0.000000e+00> : vector<64x128xf32>
    %2 = tpu.matmul %0, %1, %cst {dimension_numbers = #tpu.dot_dimension_numbers<[1], [0], [0], [1], [0, 0, 1, 1], [], []>} : vector<64x32xf32>, vector<32x128xf32>, vector<64x128xf32> -> vector<64x128xf32>
    %c0_3 = arith.constant 0 : index
    %c0_4 = arith.constant 0 : index
    %3 = vector.load %arg3[%c0_3, %c0_4] : memref<1x128xf32, #tpu.memory_space<vmem>>, vector<1x128xf32>
    %4 = vector.broadcast %3 : vector<1x128xf32> to vector<64x128xf32>
    %5 = arith.addf %2, %4 : vector<64x128xf32>
    %c0_5 = arith.constant 0 : index
    %c0_6 = arith.constant 0 : index
    %6 = vector.load %arg2[%c0_5, %c0_6] : memref<32x128xf32, #tpu.memory_space<vmem>>, vector<32x128xf32>
    %cst_7 = arith.constant 0.000000e+00 : f32
    %7 = vector.broadcast %cst_7 : f32 to vector<8x32xf32>
    %cst_8 = arith.constant 0.000000e+00 : f32
    %8 = vector.broadcast %cst_8 : f32 to vector<8x32xf32>
    %9 = vector.extract_strided_slice %5 {offsets = [0, 0], sizes = [8, 128], strides = [1, 1]} : vector<64x128xf32> to vector<8x128xf32>
    %cst_9 = arith.constant dense<0.000000e+00> : vector<8x128xf32>
    %10 = tpu.matmul %7, %6, %cst_9 {dimension_numbers = #tpu.dot_dimension_numbers<[1], [0], [0], [1], [0, 0, 1, 1], [], []>} : vector<8x32xf32>, vector<32x128xf32>, vector<8x128xf32> -> vector<8x128xf32>
    %11 = arith.addf %9, %10 : vector<8x128xf32>
    %12 = arith.negf %11 : vector<8x128xf32>
    %13 = math.exp %12 : vector<8x128xf32>
    %cst_10 = arith.constant 1.000000e+00 : f32
    %14 = vector.broadcast %cst_10 : f32 to vector<8x128xf32>
    %15 = arith.addf %14, %13 : vector<8x128xf32>
    %16 = arith.divf %14, %15 : vector<8x128xf32>
    %17 = vector.extract_strided_slice %16 {offsets = [0, 0], sizes = [8, 32], strides = [1, 1]} : vector<8x128xf32> to vector<8x32xf32>
    %18 = vector.extract_strided_slice %16 {offsets = [0, 32], sizes = [8, 32], strides = [1, 1]} : vector<8x128xf32> to vector<8x32xf32>
    %19 = vector.extract_strided_slice %16 {offsets = [0, 64], sizes = [8, 32], strides = [1, 1]} : vector<8x128xf32> to vector<8x32xf32>
    %cst_11 = arith.constant 2.000000e+00 : f32
    %20 = vector.broadcast %cst_11 : f32 to vector<8x32xf32>
    %21 = arith.mulf %20, %19 : vector<8x32xf32>
    %cst_12 = arith.constant 1.000000e+00 : f32
    %22 = vector.broadcast %cst_12 : f32 to vector<8x32xf32>
    %23 = arith.subf %21, %22 : vector<8x32xf32>
    %24 = vector.extract_strided_slice %16 {offsets = [0, 96], sizes = [8, 32], strides = [1, 1]} : vector<8x128xf32> to vector<8x32xf32>
    %25 = arith.mulf %18, %8 : vector<8x32xf32>
    %26 = arith.mulf %17, %23 : vector<8x32xf32>
    %27 = arith.addf %25, %26 : vector<8x32xf32>
    %28 = math.tanh %27 : vector<8x32xf32>
    %29 = arith.mulf %24, %28 : vector<8x32xf32>
    %30 = vector.extract_strided_slice %5 {offsets = [8, 0], sizes = [8, 128], strides = [1, 1]} : vector<64x128xf32> to vector<8x128xf32>
    %cst_13 = arith.constant dense<0.000000e+00> : vector<8x128xf32>
    %31 = tpu.matmul %29, %6, %cst_13 {dimension_numbers = #tpu.dot_dimension_numbers<[1], [0], [0], [1], [0, 0, 1, 1], [], []>} : vector<8x32xf32>, vector<32x128xf32>, vector<8x128xf32> -> vector<8x128xf32>
    %32 = arith.addf %30, %31 : vector<8x128xf32>
    %33 = arith.negf %32 : vector<8x128xf32>
    %34 = math.exp %33 : vector<8x128xf32>
    %cst_14 = arith.constant 1.000000e+00 : f32
    %35 = vector.broadcast %cst_14 : f32 to vector<8x128xf32>
    %36 = arith.addf %35, %34 : vector<8x128xf32>
    %37 = arith.divf %35, %36 : vector<8x128xf32>
    %38 = vector.extract_strided_slice %37 {offsets = [0, 0], sizes = [8, 32], strides = [1, 1]} : vector<8x128xf32> to vector<8x32xf32>
    %39 = vector.extract_strided_slice %37 {offsets = [0, 32], sizes = [8, 32], strides = [1, 1]} : vector<8x128xf32> to vector<8x32xf32>
    %40 = vector.extract_strided_slice %37 {offsets = [0, 64], sizes = [8, 32], strides = [1, 1]} : vector<8x128xf32> to vector<8x32xf32>
    %cst_15 = arith.constant 2.000000e+00 : f32
    %41 = vector.broadcast %cst_15 : f32 to vector<8x32xf32>
    %42 = arith.mulf %41, %40 : vector<8x32xf32>
    %cst_16 = arith.constant 1.000000e+00 : f32
    %43 = vector.broadcast %cst_16 : f32 to vector<8x32xf32>
    %44 = arith.subf %42, %43 : vector<8x32xf32>
    %45 = vector.extract_strided_slice %37 {offsets = [0, 96], sizes = [8, 32], strides = [1, 1]} : vector<8x128xf32> to vector<8x32xf32>
    %46 = arith.mulf %39, %27 : vector<8x32xf32>
    %47 = arith.mulf %38, %44 : vector<8x32xf32>
    %48 = arith.addf %46, %47 : vector<8x32xf32>
    %49 = math.tanh %48 : vector<8x32xf32>
    %50 = arith.mulf %45, %49 : vector<8x32xf32>
    %51 = vector.extract_strided_slice %5 {offsets = [16, 0], sizes = [8, 128], strides = [1, 1]} : vector<64x128xf32> to vector<8x128xf32>
    %cst_17 = arith.constant dense<0.000000e+00> : vector<8x128xf32>
    %52 = tpu.matmul %50, %6, %cst_17 {dimension_numbers = #tpu.dot_dimension_numbers<[1], [0], [0], [1], [0, 0, 1, 1], [], []>} : vector<8x32xf32>, vector<32x128xf32>, vector<8x128xf32> -> vector<8x128xf32>
    %53 = arith.addf %51, %52 : vector<8x128xf32>
    %54 = arith.negf %53 : vector<8x128xf32>
    %55 = math.exp %54 : vector<8x128xf32>
    %cst_18 = arith.constant 1.000000e+00 : f32
    %56 = vector.broadcast %cst_18 : f32 to vector<8x128xf32>
    %57 = arith.addf %56, %55 : vector<8x128xf32>
    %58 = arith.divf %56, %57 : vector<8x128xf32>
    %59 = vector.extract_strided_slice %58 {offsets = [0, 0], sizes = [8, 32], strides = [1, 1]} : vector<8x128xf32> to vector<8x32xf32>
    %60 = vector.extract_strided_slice %58 {offsets = [0, 32], sizes = [8, 32], strides = [1, 1]} : vector<8x128xf32> to vector<8x32xf32>
    %61 = vector.extract_strided_slice %58 {offsets = [0, 64], sizes = [8, 32], strides = [1, 1]} : vector<8x128xf32> to vector<8x32xf32>
    %cst_19 = arith.constant 2.000000e+00 : f32
    %62 = vector.broadcast %cst_19 : f32 to vector<8x32xf32>
    %63 = arith.mulf %62, %61 : vector<8x32xf32>
    %cst_20 = arith.constant 1.000000e+00 : f32
    %64 = vector.broadcast %cst_20 : f32 to vector<8x32xf32>
    %65 = arith.subf %63, %64 : vector<8x32xf32>
    %66 = vector.extract_strided_slice %58 {offsets = [0, 96], sizes = [8, 32], strides = [1, 1]} : vector<8x128xf32> to vector<8x32xf32>
    %67 = arith.mulf %60, %48 : vector<8x32xf32>
    %68 = arith.mulf %59, %65 : vector<8x32xf32>
    %69 = arith.addf %67, %68 : vector<8x32xf32>
    %70 = math.tanh %69 : vector<8x32xf32>
    %71 = arith.mulf %66, %70 : vector<8x32xf32>
    %72 = vector.extract_strided_slice %5 {offsets = [24, 0], sizes = [8, 128], strides = [1, 1]} : vector<64x128xf32> to vector<8x128xf32>
    %cst_21 = arith.constant dense<0.000000e+00> : vector<8x128xf32>
    %73 = tpu.matmul %71, %6, %cst_21 {dimension_numbers = #tpu.dot_dimension_numbers<[1], [0], [0], [1], [0, 0, 1, 1], [], []>} : vector<8x32xf32>, vector<32x128xf32>, vector<8x128xf32> -> vector<8x128xf32>
    %74 = arith.addf %72, %73 : vector<8x128xf32>
    %75 = arith.negf %74 : vector<8x128xf32>
    %76 = math.exp %75 : vector<8x128xf32>
    %cst_22 = arith.constant 1.000000e+00 : f32
    %77 = vector.broadcast %cst_22 : f32 to vector<8x128xf32>
    %78 = arith.addf %77, %76 : vector<8x128xf32>
    %79 = arith.divf %77, %78 : vector<8x128xf32>
    %80 = vector.extract_strided_slice %79 {offsets = [0, 0], sizes = [8, 32], strides = [1, 1]} : vector<8x128xf32> to vector<8x32xf32>
    %81 = vector.extract_strided_slice %79 {offsets = [0, 32], sizes = [8, 32], strides = [1, 1]} : vector<8x128xf32> to vector<8x32xf32>
    %82 = vector.extract_strided_slice %79 {offsets = [0, 64], sizes = [8, 32], strides = [1, 1]} : vector<8x128xf32> to vector<8x32xf32>
    %cst_23 = arith.constant 2.000000e+00 : f32
    %83 = vector.broadcast %cst_23 : f32 to vector<8x32xf32>
    %84 = arith.mulf %83, %82 : vector<8x32xf32>
    %cst_24 = arith.constant 1.000000e+00 : f32
    %85 = vector.broadcast %cst_24 : f32 to vector<8x32xf32>
    %86 = arith.subf %84, %85 : vector<8x32xf32>
    %87 = vector.extract_strided_slice %79 {offsets = [0, 96], sizes = [8, 32], strides = [1, 1]} : vector<8x128xf32> to vector<8x32xf32>
    %88 = arith.mulf %81, %69 : vector<8x32xf32>
    %89 = arith.mulf %80, %86 : vector<8x32xf32>
    %90 = arith.addf %88, %89 : vector<8x32xf32>
    %91 = math.tanh %90 : vector<8x32xf32>
    %92 = arith.mulf %87, %91 : vector<8x32xf32>
    %93 = vector.extract_strided_slice %5 {offsets = [32, 0], sizes = [8, 128], strides = [1, 1]} : vector<64x128xf32> to vector<8x128xf32>
    %cst_25 = arith.constant dense<0.000000e+00> : vector<8x128xf32>
    %94 = tpu.matmul %92, %6, %cst_25 {dimension_numbers = #tpu.dot_dimension_numbers<[1], [0], [0], [1], [0, 0, 1, 1], [], []>} : vector<8x32xf32>, vector<32x128xf32>, vector<8x128xf32> -> vector<8x128xf32>
    %95 = arith.addf %93, %94 : vector<8x128xf32>
    %96 = arith.negf %95 : vector<8x128xf32>
    %97 = math.exp %96 : vector<8x128xf32>
    %cst_26 = arith.constant 1.000000e+00 : f32
    %98 = vector.broadcast %cst_26 : f32 to vector<8x128xf32>
    %99 = arith.addf %98, %97 : vector<8x128xf32>
    %100 = arith.divf %98, %99 : vector<8x128xf32>
    %101 = vector.extract_strided_slice %100 {offsets = [0, 0], sizes = [8, 32], strides = [1, 1]} : vector<8x128xf32> to vector<8x32xf32>
    %102 = vector.extract_strided_slice %100 {offsets = [0, 32], sizes = [8, 32], strides = [1, 1]} : vector<8x128xf32> to vector<8x32xf32>
    %103 = vector.extract_strided_slice %100 {offsets = [0, 64], sizes = [8, 32], strides = [1, 1]} : vector<8x128xf32> to vector<8x32xf32>
    %cst_27 = arith.constant 2.000000e+00 : f32
    %104 = vector.broadcast %cst_27 : f32 to vector<8x32xf32>
    %105 = arith.mulf %104, %103 : vector<8x32xf32>
    %cst_28 = arith.constant 1.000000e+00 : f32
    %106 = vector.broadcast %cst_28 : f32 to vector<8x32xf32>
    %107 = arith.subf %105, %106 : vector<8x32xf32>
    %108 = vector.extract_strided_slice %100 {offsets = [0, 96], sizes = [8, 32], strides = [1, 1]} : vector<8x128xf32> to vector<8x32xf32>
    %109 = arith.mulf %102, %90 : vector<8x32xf32>
    %110 = arith.mulf %101, %107 : vector<8x32xf32>
    %111 = arith.addf %109, %110 : vector<8x32xf32>
    %112 = math.tanh %111 : vector<8x32xf32>
    %113 = arith.mulf %108, %112 : vector<8x32xf32>
    %114 = vector.extract_strided_slice %5 {offsets = [40, 0], sizes = [8, 128], strides = [1, 1]} : vector<64x128xf32> to vector<8x128xf32>
    %cst_29 = arith.constant dense<0.000000e+00> : vector<8x128xf32>
    %115 = tpu.matmul %113, %6, %cst_29 {dimension_numbers = #tpu.dot_dimension_numbers<[1], [0], [0], [1], [0, 0, 1, 1], [], []>} : vector<8x32xf32>, vector<32x128xf32>, vector<8x128xf32> -> vector<8x128xf32>
    %116 = arith.addf %114, %115 : vector<8x128xf32>
    %117 = arith.negf %116 : vector<8x128xf32>
    %118 = math.exp %117 : vector<8x128xf32>
    %cst_30 = arith.constant 1.000000e+00 : f32
    %119 = vector.broadcast %cst_30 : f32 to vector<8x128xf32>
    %120 = arith.addf %119, %118 : vector<8x128xf32>
    %121 = arith.divf %119, %120 : vector<8x128xf32>
    %122 = vector.extract_strided_slice %121 {offsets = [0, 0], sizes = [8, 32], strides = [1, 1]} : vector<8x128xf32> to vector<8x32xf32>
    %123 = vector.extract_strided_slice %121 {offsets = [0, 32], sizes = [8, 32], strides = [1, 1]} : vector<8x128xf32> to vector<8x32xf32>
    %124 = vector.extract_strided_slice %121 {offsets = [0, 64], sizes = [8, 32], strides = [1, 1]} : vector<8x128xf32> to vector<8x32xf32>
    %cst_31 = arith.constant 2.000000e+00 : f32
    %125 = vector.broadcast %cst_31 : f32 to vector<8x32xf32>
    %126 = arith.mulf %125, %124 : vector<8x32xf32>
    %cst_32 = arith.constant 1.000000e+00 : f32
    %127 = vector.broadcast %cst_32 : f32 to vector<8x32xf32>
    %128 = arith.subf %126, %127 : vector<8x32xf32>
    %129 = vector.extract_strided_slice %121 {offsets = [0, 96], sizes = [8, 32], strides = [1, 1]} : vector<8x128xf32> to vector<8x32xf32>
    %130 = arith.mulf %123, %111 : vector<8x32xf32>
    %131 = arith.mulf %122, %128 : vector<8x32xf32>
    %132 = arith.addf %130, %131 : vector<8x32xf32>
    %133 = math.tanh %132 : vector<8x32xf32>
    %134 = arith.mulf %129, %133 : vector<8x32xf32>
    %135 = vector.extract_strided_slice %5 {offsets = [48, 0], sizes = [8, 128], strides = [1, 1]} : vector<64x128xf32> to vector<8x128xf32>
    %cst_33 = arith.constant dense<0.000000e+00> : vector<8x128xf32>
    %136 = tpu.matmul %134, %6, %cst_33 {dimension_numbers = #tpu.dot_dimension_numbers<[1], [0], [0], [1], [0, 0, 1, 1], [], []>} : vector<8x32xf32>, vector<32x128xf32>, vector<8x128xf32> -> vector<8x128xf32>
    %137 = arith.addf %135, %136 : vector<8x128xf32>
    %138 = arith.negf %137 : vector<8x128xf32>
    %139 = math.exp %138 : vector<8x128xf32>
    %cst_34 = arith.constant 1.000000e+00 : f32
    %140 = vector.broadcast %cst_34 : f32 to vector<8x128xf32>
    %141 = arith.addf %140, %139 : vector<8x128xf32>
    %142 = arith.divf %140, %141 : vector<8x128xf32>
    %143 = vector.extract_strided_slice %142 {offsets = [0, 0], sizes = [8, 32], strides = [1, 1]} : vector<8x128xf32> to vector<8x32xf32>
    %144 = vector.extract_strided_slice %142 {offsets = [0, 32], sizes = [8, 32], strides = [1, 1]} : vector<8x128xf32> to vector<8x32xf32>
    %145 = vector.extract_strided_slice %142 {offsets = [0, 64], sizes = [8, 32], strides = [1, 1]} : vector<8x128xf32> to vector<8x32xf32>
    %cst_35 = arith.constant 2.000000e+00 : f32
    %146 = vector.broadcast %cst_35 : f32 to vector<8x32xf32>
    %147 = arith.mulf %146, %145 : vector<8x32xf32>
    %cst_36 = arith.constant 1.000000e+00 : f32
    %148 = vector.broadcast %cst_36 : f32 to vector<8x32xf32>
    %149 = arith.subf %147, %148 : vector<8x32xf32>
    %150 = vector.extract_strided_slice %142 {offsets = [0, 96], sizes = [8, 32], strides = [1, 1]} : vector<8x128xf32> to vector<8x32xf32>
    %151 = arith.mulf %144, %132 : vector<8x32xf32>
    %152 = arith.mulf %143, %149 : vector<8x32xf32>
    %153 = arith.addf %151, %152 : vector<8x32xf32>
    %154 = math.tanh %153 : vector<8x32xf32>
    %155 = arith.mulf %150, %154 : vector<8x32xf32>
    %156 = vector.extract_strided_slice %5 {offsets = [56, 0], sizes = [8, 128], strides = [1, 1]} : vector<64x128xf32> to vector<8x128xf32>
    %cst_37 = arith.constant dense<0.000000e+00> : vector<8x128xf32>
    %157 = tpu.matmul %155, %6, %cst_37 {dimension_numbers = #tpu.dot_dimension_numbers<[1], [0], [0], [1], [0, 0, 1, 1], [], []>} : vector<8x32xf32>, vector<32x128xf32>, vector<8x128xf32> -> vector<8x128xf32>
    %158 = arith.addf %156, %157 : vector<8x128xf32>
    %159 = arith.negf %158 : vector<8x128xf32>
    %160 = math.exp %159 : vector<8x128xf32>
    %cst_38 = arith.constant 1.000000e+00 : f32
    %161 = vector.broadcast %cst_38 : f32 to vector<8x128xf32>
    %162 = arith.addf %161, %160 : vector<8x128xf32>
    %163 = arith.divf %161, %162 : vector<8x128xf32>
    %164 = vector.extract_strided_slice %163 {offsets = [0, 0], sizes = [8, 32], strides = [1, 1]} : vector<8x128xf32> to vector<8x32xf32>
    %165 = vector.extract_strided_slice %163 {offsets = [0, 32], sizes = [8, 32], strides = [1, 1]} : vector<8x128xf32> to vector<8x32xf32>
    %166 = vector.extract_strided_slice %163 {offsets = [0, 64], sizes = [8, 32], strides = [1, 1]} : vector<8x128xf32> to vector<8x32xf32>
    %cst_39 = arith.constant 2.000000e+00 : f32
    %167 = vector.broadcast %cst_39 : f32 to vector<8x32xf32>
    %168 = arith.mulf %167, %166 : vector<8x32xf32>
    %cst_40 = arith.constant 1.000000e+00 : f32
    %169 = vector.broadcast %cst_40 : f32 to vector<8x32xf32>
    %170 = arith.subf %168, %169 : vector<8x32xf32>
    %171 = vector.extract_strided_slice %163 {offsets = [0, 96], sizes = [8, 32], strides = [1, 1]} : vector<8x128xf32> to vector<8x32xf32>
    %172 = arith.mulf %165, %153 : vector<8x32xf32>
    %173 = arith.mulf %164, %170 : vector<8x32xf32>
    %174 = arith.addf %172, %173 : vector<8x32xf32>
    %175 = math.tanh %174 : vector<8x32xf32>
    %176 = arith.mulf %171, %175 : vector<8x32xf32>
    %c0_41 = arith.constant 0 : index
    %c0_42 = arith.constant 0 : index
    %177 = vector.load %arg4[%c0_41, %c0_42] : memref<32x128xf32, #tpu.memory_space<vmem>>, vector<32x128xf32>
    %c0_43 = arith.constant 0 : index
    %c0_44 = arith.constant 0 : index
    %178 = vector.load %arg5[%c0_43, %c0_44] : memref<32x128xf32, #tpu.memory_space<vmem>>, vector<32x128xf32>
    %c0_45 = arith.constant 0 : index
    %c0_46 = arith.constant 0 : index
    %179 = vector.load %arg6[%c0_45, %c0_46] : memref<1x128xf32, #tpu.memory_space<vmem>>, vector<1x128xf32>
    %180 = tpu.iota {dimensions = array<i32: 0>} : vector<8x32xi32>
    %cst_47 = arith.constant 0.000000e+00 : f32
    %181 = vector.broadcast %cst_47 : f32 to vector<8x32xf32>
    %cst_48 = arith.constant 0.000000e+00 : f32
    %182 = vector.broadcast %cst_48 : f32 to vector<8x32xf32>
    %cst_49 = arith.constant 0.000000e+00 : f32
    %183 = vector.broadcast %cst_49 : f32 to vector<8x32xf32>
    %184 = vector.extract_strided_slice %176 {offsets = [0, 0], sizes = [1, 32], strides = [1, 1]} : vector<8x32xf32> to vector<1x32xf32>
    %c0_i32 = arith.constant 0 : i32
    %185 = vector.broadcast %c0_i32 : i32 to vector<8x32xi32>
    %186 = arith.cmpi eq, %180, %185 : vector<8x32xi32>
    %187 = vector.shape_cast %184 : vector<1x32xf32> to vector<1x32xf32>
    %188 = vector.broadcast %187 : vector<1x32xf32> to vector<8x32xf32>
    %189 = arith.select %186, %188, %183 : vector<8x32xi1>, vector<8x32xf32>
    %190 = vector.extract_strided_slice %176 {offsets = [3, 0], sizes = [1, 32], strides = [1, 1]} : vector<8x32xf32> to vector<1x32xf32>
    %c1_i32 = arith.constant 1 : i32
    %191 = vector.broadcast %c1_i32 : i32 to vector<8x32xi32>
    %192 = arith.cmpi eq, %180, %191 : vector<8x32xi32>
    %193 = vector.shape_cast %190 : vector<1x32xf32> to vector<1x32xf32>
    %194 = vector.broadcast %193 : vector<1x32xf32> to vector<8x32xf32>
    %195 = arith.select %192, %194, %189 : vector<8x32xi1>, vector<8x32xf32>
    %cst_50 = arith.constant dense<0.000000e+00> : vector<8x128xf32>
    %196 = tpu.matmul %195, %177, %cst_50 {dimension_numbers = #tpu.dot_dimension_numbers<[1], [0], [0], [1], [0, 0, 1, 1], [], []>} : vector<8x32xf32>, vector<32x128xf32>, vector<8x128xf32> -> vector<8x128xf32>
    %197 = vector.broadcast %179 : vector<1x128xf32> to vector<8x128xf32>
    %198 = arith.addf %196, %197 : vector<8x128xf32>
    %cst_51 = arith.constant dense<0.000000e+00> : vector<8x128xf32>
    %199 = tpu.matmul %181, %178, %cst_51 {dimension_numbers = #tpu.dot_dimension_numbers<[1], [0], [0], [1], [0, 0, 1, 1], [], []>} : vector<8x32xf32>, vector<32x128xf32>, vector<8x128xf32> -> vector<8x128xf32>
    %200 = arith.addf %198, %199 : vector<8x128xf32>
    %201 = arith.negf %200 : vector<8x128xf32>
    %202 = math.exp %201 : vector<8x128xf32>
    %cst_52 = arith.constant 1.000000e+00 : f32
    %203 = vector.broadcast %cst_52 : f32 to vector<8x128xf32>
    %204 = arith.addf %203, %202 : vector<8x128xf32>
    %205 = arith.divf %203, %204 : vector<8x128xf32>
    %206 = vector.extract_strided_slice %205 {offsets = [0, 0], sizes = [8, 32], strides = [1, 1]} : vector<8x128xf32> to vector<8x32xf32>
    %207 = vector.extract_strided_slice %205 {offsets = [0, 32], sizes = [8, 32], strides = [1, 1]} : vector<8x128xf32> to vector<8x32xf32>
    %208 = vector.extract_strided_slice %205 {offsets = [0, 64], sizes = [8, 32], strides = [1, 1]} : vector<8x128xf32> to vector<8x32xf32>
    %cst_53 = arith.constant 2.000000e+00 : f32
    %209 = vector.broadcast %cst_53 : f32 to vector<8x32xf32>
    %210 = arith.mulf %209, %208 : vector<8x32xf32>
    %cst_54 = arith.constant 1.000000e+00 : f32
    %211 = vector.broadcast %cst_54 : f32 to vector<8x32xf32>
    %212 = arith.subf %210, %211 : vector<8x32xf32>
    %213 = vector.extract_strided_slice %205 {offsets = [0, 96], sizes = [8, 32], strides = [1, 1]} : vector<8x128xf32> to vector<8x32xf32>
    %214 = arith.mulf %207, %182 : vector<8x32xf32>
    %215 = arith.mulf %206, %212 : vector<8x32xf32>
    %216 = arith.addf %214, %215 : vector<8x32xf32>
    %217 = math.tanh %216 : vector<8x32xf32>
    %218 = arith.mulf %213, %217 : vector<8x32xf32>
    %cst_55 = arith.constant 0.000000e+00 : f32
    %219 = vector.broadcast %cst_55 : f32 to vector<8x32xf32>
    %220 = vector.extract_strided_slice %176 {offsets = [1, 0], sizes = [1, 32], strides = [1, 1]} : vector<8x32xf32> to vector<1x32xf32>
    %c0_i32_56 = arith.constant 0 : i32
    %221 = vector.broadcast %c0_i32_56 : i32 to vector<8x32xi32>
    %222 = arith.cmpi eq, %180, %221 : vector<8x32xi32>
    %223 = vector.shape_cast %220 : vector<1x32xf32> to vector<1x32xf32>
    %224 = vector.broadcast %223 : vector<1x32xf32> to vector<8x32xf32>
    %225 = arith.select %222, %224, %219 : vector<8x32xi1>, vector<8x32xf32>
    %226 = vector.extract_strided_slice %176 {offsets = [4, 0], sizes = [1, 32], strides = [1, 1]} : vector<8x32xf32> to vector<1x32xf32>
    %c1_i32_57 = arith.constant 1 : i32
    %227 = vector.broadcast %c1_i32_57 : i32 to vector<8x32xi32>
    %228 = arith.cmpi eq, %180, %227 : vector<8x32xi32>
    %229 = vector.shape_cast %226 : vector<1x32xf32> to vector<1x32xf32>
    %230 = vector.broadcast %229 : vector<1x32xf32> to vector<8x32xf32>
    %231 = arith.select %228, %230, %225 : vector<8x32xi1>, vector<8x32xf32>
    %cst_58 = arith.constant dense<0.000000e+00> : vector<8x128xf32>
    %232 = tpu.matmul %231, %177, %cst_58 {dimension_numbers = #tpu.dot_dimension_numbers<[1], [0], [0], [1], [0, 0, 1, 1], [], []>} : vector<8x32xf32>, vector<32x128xf32>, vector<8x128xf32> -> vector<8x128xf32>
    %233 = vector.broadcast %179 : vector<1x128xf32> to vector<8x128xf32>
    %234 = arith.addf %232, %233 : vector<8x128xf32>
    %cst_59 = arith.constant dense<0.000000e+00> : vector<8x128xf32>
    %235 = tpu.matmul %218, %178, %cst_59 {dimension_numbers = #tpu.dot_dimension_numbers<[1], [0], [0], [1], [0, 0, 1, 1], [], []>} : vector<8x32xf32>, vector<32x128xf32>, vector<8x128xf32> -> vector<8x128xf32>
    %236 = arith.addf %234, %235 : vector<8x128xf32>
    %237 = arith.negf %236 : vector<8x128xf32>
    %238 = math.exp %237 : vector<8x128xf32>
    %cst_60 = arith.constant 1.000000e+00 : f32
    %239 = vector.broadcast %cst_60 : f32 to vector<8x128xf32>
    %240 = arith.addf %239, %238 : vector<8x128xf32>
    %241 = arith.divf %239, %240 : vector<8x128xf32>
    %242 = vector.extract_strided_slice %241 {offsets = [0, 0], sizes = [8, 32], strides = [1, 1]} : vector<8x128xf32> to vector<8x32xf32>
    %243 = vector.extract_strided_slice %241 {offsets = [0, 32], sizes = [8, 32], strides = [1, 1]} : vector<8x128xf32> to vector<8x32xf32>
    %244 = vector.extract_strided_slice %241 {offsets = [0, 64], sizes = [8, 32], strides = [1, 1]} : vector<8x128xf32> to vector<8x32xf32>
    %cst_61 = arith.constant 2.000000e+00 : f32
    %245 = vector.broadcast %cst_61 : f32 to vector<8x32xf32>
    %246 = arith.mulf %245, %244 : vector<8x32xf32>
    %cst_62 = arith.constant 1.000000e+00 : f32
    %247 = vector.broadcast %cst_62 : f32 to vector<8x32xf32>
    %248 = arith.subf %246, %247 : vector<8x32xf32>
    %249 = vector.extract_strided_slice %241 {offsets = [0, 96], sizes = [8, 32], strides = [1, 1]} : vector<8x128xf32> to vector<8x32xf32>
    %250 = arith.mulf %243, %216 : vector<8x32xf32>
    %251 = arith.mulf %242, %248 : vector<8x32xf32>
    %252 = arith.addf %250, %251 : vector<8x32xf32>
    %253 = math.tanh %252 : vector<8x32xf32>
    %254 = arith.mulf %249, %253 : vector<8x32xf32>
    %255 = tpu.iota {dimensions = array<i32: 0>} : vector<8x32xi32>
    %cst_63 = arith.constant 0.000000e+00 : f32
    %256 = vector.broadcast %cst_63 : f32 to vector<8x32xf32>
    %cst_64 = arith.constant 0.000000e+00 : f32
    %257 = vector.broadcast %cst_64 : f32 to vector<8x32xf32>
    %c0_i32_65 = arith.constant 0 : i32
    %258 = vector.broadcast %c0_i32_65 : i32 to vector<8x32xi32>
    %259 = arith.cmpi eq, %255, %258 : vector<8x32xi32>
    %260 = vector.extract_strided_slice %218 {offsets = [0, 0], sizes = [1, 32], strides = [1, 1]} : vector<8x32xf32> to vector<1x32xf32>
    %261 = vector.shape_cast %260 : vector<1x32xf32> to vector<1x32xf32>
    %262 = vector.broadcast %261 : vector<1x32xf32> to vector<8x32xf32>
    %263 = arith.select %259, %262, %256 : vector<8x32xi1>, vector<8x32xf32>
    %c0_i32_66 = arith.constant 0 : i32
    %264 = vector.broadcast %c0_i32_66 : i32 to vector<8x32xi32>
    %265 = arith.cmpi eq, %255, %264 : vector<8x32xi32>
    %266 = vector.extract_strided_slice %216 {offsets = [0, 0], sizes = [1, 32], strides = [1, 1]} : vector<8x32xf32> to vector<1x32xf32>
    %267 = vector.shape_cast %266 : vector<1x32xf32> to vector<1x32xf32>
    %268 = vector.broadcast %267 : vector<1x32xf32> to vector<8x32xf32>
    %269 = arith.select %265, %268, %257 : vector<8x32xi1>, vector<8x32xf32>
    %c1_i32_67 = arith.constant 1 : i32
    %270 = vector.broadcast %c1_i32_67 : i32 to vector<8x32xi32>
    %271 = arith.cmpi eq, %255, %270 : vector<8x32xi32>
    %272 = vector.extract_strided_slice %254 {offsets = [0, 0], sizes = [1, 32], strides = [1, 1]} : vector<8x32xf32> to vector<1x32xf32>
    %273 = vector.shape_cast %272 : vector<1x32xf32> to vector<1x32xf32>
    %274 = vector.broadcast %273 : vector<1x32xf32> to vector<8x32xf32>
    %275 = arith.select %271, %274, %263 : vector<8x32xi1>, vector<8x32xf32>
    %c1_i32_68 = arith.constant 1 : i32
    %276 = vector.broadcast %c1_i32_68 : i32 to vector<8x32xi32>
    %277 = arith.cmpi eq, %255, %276 : vector<8x32xi32>
    %278 = vector.extract_strided_slice %252 {offsets = [0, 0], sizes = [1, 32], strides = [1, 1]} : vector<8x32xf32> to vector<1x32xf32>
    %279 = vector.shape_cast %278 : vector<1x32xf32> to vector<1x32xf32>
    %280 = vector.broadcast %279 : vector<1x32xf32> to vector<8x32xf32>
    %281 = arith.select %277, %280, %269 : vector<8x32xi1>, vector<8x32xf32>
    %c2_i32 = arith.constant 2 : i32
    %282 = vector.broadcast %c2_i32 : i32 to vector<8x32xi32>
    %283 = arith.cmpi eq, %255, %282 : vector<8x32xi32>
    %284 = vector.extract_strided_slice %218 {offsets = [1, 0], sizes = [1, 32], strides = [1, 1]} : vector<8x32xf32> to vector<1x32xf32>
    %285 = vector.shape_cast %284 : vector<1x32xf32> to vector<1x32xf32>
    %286 = vector.broadcast %285 : vector<1x32xf32> to vector<8x32xf32>
    %287 = arith.select %283, %286, %275 : vector<8x32xi1>, vector<8x32xf32>
    %c2_i32_69 = arith.constant 2 : i32
    %288 = vector.broadcast %c2_i32_69 : i32 to vector<8x32xi32>
    %289 = arith.cmpi eq, %255, %288 : vector<8x32xi32>
    %290 = vector.extract_strided_slice %216 {offsets = [1, 0], sizes = [1, 32], strides = [1, 1]} : vector<8x32xf32> to vector<1x32xf32>
    %291 = vector.shape_cast %290 : vector<1x32xf32> to vector<1x32xf32>
    %292 = vector.broadcast %291 : vector<1x32xf32> to vector<8x32xf32>
    %293 = arith.select %289, %292, %281 : vector<8x32xi1>, vector<8x32xf32>
    %c3_i32 = arith.constant 3 : i32
    %294 = vector.broadcast %c3_i32 : i32 to vector<8x32xi32>
    %295 = arith.cmpi eq, %255, %294 : vector<8x32xi32>
    %296 = vector.extract_strided_slice %254 {offsets = [1, 0], sizes = [1, 32], strides = [1, 1]} : vector<8x32xf32> to vector<1x32xf32>
    %297 = vector.shape_cast %296 : vector<1x32xf32> to vector<1x32xf32>
    %298 = vector.broadcast %297 : vector<1x32xf32> to vector<8x32xf32>
    %299 = arith.select %295, %298, %287 : vector<8x32xi1>, vector<8x32xf32>
    %c3_i32_70 = arith.constant 3 : i32
    %300 = vector.broadcast %c3_i32_70 : i32 to vector<8x32xi32>
    %301 = arith.cmpi eq, %255, %300 : vector<8x32xi32>
    %302 = vector.extract_strided_slice %252 {offsets = [1, 0], sizes = [1, 32], strides = [1, 1]} : vector<8x32xf32> to vector<1x32xf32>
    %303 = vector.shape_cast %302 : vector<1x32xf32> to vector<1x32xf32>
    %304 = vector.broadcast %303 : vector<1x32xf32> to vector<8x32xf32>
    %305 = arith.select %301, %304, %293 : vector<8x32xi1>, vector<8x32xf32>
    %c0_71 = arith.constant 0 : index
    %c0_72 = arith.constant 0 : index
    %306 = vector.load %arg7[%c0_71, %c0_72] : memref<64x32xf32, #tpu.memory_space<vmem>>, vector<64x32xf32>
    %c0_73 = arith.constant 0 : index
    %c0_74 = arith.constant 0 : index
    %307 = vector.load %arg8[%c0_73, %c0_74] : memref<32x128xf32, #tpu.memory_space<vmem>>, vector<32x128xf32>
    %cst_75 = arith.constant dense<0.000000e+00> : vector<64x128xf32>
    %308 = tpu.matmul %306, %307, %cst_75 {dimension_numbers = #tpu.dot_dimension_numbers<[1], [0], [0], [1], [0, 0, 1, 1], [], []>} : vector<64x32xf32>, vector<32x128xf32>, vector<64x128xf32> -> vector<64x128xf32>
    %c0_76 = arith.constant 0 : index
    %c0_77 = arith.constant 0 : index
    %309 = vector.load %arg9[%c0_76, %c0_77] : memref<1x128xf32, #tpu.memory_space<vmem>>, vector<1x128xf32>
    %310 = vector.broadcast %309 : vector<1x128xf32> to vector<64x128xf32>
    %311 = arith.addf %308, %310 : vector<64x128xf32>
    %c0_78 = arith.constant 0 : index
    %c0_79 = arith.constant 0 : index
    %312 = vector.load %arg10[%c0_78, %c0_79] : memref<32x256xf32, #tpu.memory_space<vmem>>, vector<32x256xf32>
    %c0_80 = arith.constant 0 : index
    %c0_81 = arith.constant 0 : index
    %313 = vector.load %arg11[%c0_80, %c0_81] : memref<1x128xf32, #tpu.memory_space<vmem>>, vector<1x128xf32>
    %314 = tpu.iota {dimensions = array<i32: 1>} : vector<8x128xi32>
    %315 = vector.extract_strided_slice %312 {offsets = [0, 0], sizes = [32, 128], strides = [1, 1]} : vector<32x256xf32> to vector<32x128xf32>
    %cst_82 = arith.constant dense<0.000000e+00> : vector<8x128xf32>
    %316 = tpu.matmul %299, %315, %cst_82 {dimension_numbers = #tpu.dot_dimension_numbers<[1], [0], [0], [1], [0, 0, 1, 1], [], []>} : vector<8x32xf32>, vector<32x128xf32>, vector<8x128xf32> -> vector<8x128xf32>
    %cst_83 = arith.constant 0.000000e+00 : f32
    %317 = vector.broadcast %cst_83 : f32 to vector<8x1xf32>
    %318 = vector.extract_strided_slice %311 {offsets = [0, 0], sizes = [8, 128], strides = [1, 1]} : vector<64x128xf32> to vector<8x128xf32>
    %319 = arith.addf %318, %316 : vector<8x128xf32>
    %320 = arith.negf %319 : vector<8x128xf32>
    %321 = math.exp %320 : vector<8x128xf32>
    %cst_84 = arith.constant 1.000000e+00 : f32
    %322 = vector.broadcast %cst_84 : f32 to vector<8x128xf32>
    %323 = arith.addf %322, %321 : vector<8x128xf32>
    %324 = arith.divf %322, %323 : vector<8x128xf32>
    %325 = vector.extract_strided_slice %324 {offsets = [0, 0], sizes = [8, 32], strides = [1, 1]} : vector<8x128xf32> to vector<8x32xf32>
    %326 = vector.extract_strided_slice %324 {offsets = [0, 32], sizes = [8, 32], strides = [1, 1]} : vector<8x128xf32> to vector<8x32xf32>
    %327 = vector.extract_strided_slice %324 {offsets = [0, 64], sizes = [8, 32], strides = [1, 1]} : vector<8x128xf32> to vector<8x32xf32>
    %cst_85 = arith.constant 2.000000e+00 : f32
    %328 = vector.broadcast %cst_85 : f32 to vector<8x32xf32>
    %329 = arith.mulf %328, %327 : vector<8x32xf32>
    %cst_86 = arith.constant 1.000000e+00 : f32
    %330 = vector.broadcast %cst_86 : f32 to vector<8x32xf32>
    %331 = arith.subf %329, %330 : vector<8x32xf32>
    %332 = vector.extract_strided_slice %324 {offsets = [0, 96], sizes = [8, 32], strides = [1, 1]} : vector<8x128xf32> to vector<8x32xf32>
    %333 = arith.mulf %326, %305 : vector<8x32xf32>
    %334 = arith.mulf %325, %331 : vector<8x32xf32>
    %335 = arith.addf %333, %334 : vector<8x32xf32>
    %336 = math.tanh %335 : vector<8x32xf32>
    %337 = arith.mulf %332, %336 : vector<8x32xf32>
    %cst_87 = arith.constant dense<0.000000e+00> : vector<8x256xf32>
    %338 = tpu.matmul %337, %312, %cst_87 {dimension_numbers = #tpu.dot_dimension_numbers<[1], [0], [0], [1], [0, 0, 1, 1], [], []>} : vector<8x32xf32>, vector<32x256xf32>, vector<8x256xf32> -> vector<8x256xf32>
    %339 = vector.extract_strided_slice %338 {offsets = [0, 0], sizes = [8, 128], strides = [1, 1]} : vector<8x256xf32> to vector<8x128xf32>
    %340 = vector.extract_strided_slice %338 {offsets = [0, 128], sizes = [8, 128], strides = [1, 1]} : vector<8x256xf32> to vector<8x128xf32>
    %341 = vector.broadcast %313 : vector<1x128xf32> to vector<8x128xf32>
    %342 = arith.addf %340, %341 : vector<8x128xf32>
    %cst_88 = arith.constant dense<0xFF800000> : vector<8xf32>
    %343 = vector.multi_reduction <maximumf>, %342, %cst_88 [1] : vector<8x128xf32> to vector<8xf32>
    %344 = vector.shape_cast %343 : vector<8xf32> to vector<8x1xf32>
    %345 = vector.broadcast %344 : vector<8x1xf32> to vector<8x128xf32>
    %346 = arith.subf %342, %345 : vector<8x128xf32>
    %347 = math.exp %346 : vector<8x128xf32>
    %cst_89 = arith.constant dense<0.000000e+00> : vector<8xf32>
    %348 = vector.multi_reduction <add>, %347, %cst_89 [1] : vector<8x128xf32> to vector<8xf32>
    %349 = vector.shape_cast %348 : vector<8xf32> to vector<8x1xf32>
    %350 = math.log %349 : vector<8x1xf32>
    %351 = arith.addf %344, %350 : vector<8x1xf32>
    %352 = vector.broadcast %351 : vector<8x1xf32> to vector<8x128xf32>
    %353 = arith.subf %342, %352 : vector<8x128xf32>
    %c0_90 = arith.constant 0 : index
    %c0_91 = arith.constant 0 : index
    %354 = vector.load %arg12[%c0_90, %c0_91] : memref<64x1xi32, #tpu.memory_space<vmem>>, vector<8x1xi32>
    %c0_92 = arith.constant 0 : index
    %c0_93 = arith.constant 0 : index
    %355 = vector.load %arg13[%c0_92, %c0_93] : memref<64x1xf32, #tpu.memory_space<vmem>>, vector<8x1xf32>
    %356 = vector.broadcast %354 : vector<8x1xi32> to vector<8x128xi32>
    %357 = arith.cmpi eq, %314, %356 : vector<8x128xi32>
    %cst_94 = arith.constant 0.000000e+00 : f32
    %358 = vector.broadcast %cst_94 : f32 to vector<8x128xf32>
    %359 = arith.select %357, %353, %358 : vector<8x128xi1>, vector<8x128xf32>
    %cst_95 = arith.constant dense<0.000000e+00> : vector<8xf32>
    %360 = vector.multi_reduction <add>, %359, %cst_95 [1] : vector<8x128xf32> to vector<8xf32>
    %361 = vector.shape_cast %360 : vector<8xf32> to vector<8x1xf32>
    %362 = arith.mulf %361, %355 : vector<8x1xf32>
    %363 = arith.subf %317, %362 : vector<8x1xf32>
    %364 = vector.extract_strided_slice %311 {offsets = [8, 0], sizes = [8, 128], strides = [1, 1]} : vector<64x128xf32> to vector<8x128xf32>
    %365 = arith.addf %364, %339 : vector<8x128xf32>
    %366 = arith.negf %365 : vector<8x128xf32>
    %367 = math.exp %366 : vector<8x128xf32>
    %cst_96 = arith.constant 1.000000e+00 : f32
    %368 = vector.broadcast %cst_96 : f32 to vector<8x128xf32>
    %369 = arith.addf %368, %367 : vector<8x128xf32>
    %370 = arith.divf %368, %369 : vector<8x128xf32>
    %371 = vector.extract_strided_slice %370 {offsets = [0, 0], sizes = [8, 32], strides = [1, 1]} : vector<8x128xf32> to vector<8x32xf32>
    %372 = vector.extract_strided_slice %370 {offsets = [0, 32], sizes = [8, 32], strides = [1, 1]} : vector<8x128xf32> to vector<8x32xf32>
    %373 = vector.extract_strided_slice %370 {offsets = [0, 64], sizes = [8, 32], strides = [1, 1]} : vector<8x128xf32> to vector<8x32xf32>
    %cst_97 = arith.constant 2.000000e+00 : f32
    %374 = vector.broadcast %cst_97 : f32 to vector<8x32xf32>
    %375 = arith.mulf %374, %373 : vector<8x32xf32>
    %cst_98 = arith.constant 1.000000e+00 : f32
    %376 = vector.broadcast %cst_98 : f32 to vector<8x32xf32>
    %377 = arith.subf %375, %376 : vector<8x32xf32>
    %378 = vector.extract_strided_slice %370 {offsets = [0, 96], sizes = [8, 32], strides = [1, 1]} : vector<8x128xf32> to vector<8x32xf32>
    %379 = arith.mulf %372, %335 : vector<8x32xf32>
    %380 = arith.mulf %371, %377 : vector<8x32xf32>
    %381 = arith.addf %379, %380 : vector<8x32xf32>
    %382 = math.tanh %381 : vector<8x32xf32>
    %383 = arith.mulf %378, %382 : vector<8x32xf32>
    %cst_99 = arith.constant dense<0.000000e+00> : vector<8x256xf32>
    %384 = tpu.matmul %383, %312, %cst_99 {dimension_numbers = #tpu.dot_dimension_numbers<[1], [0], [0], [1], [0, 0, 1, 1], [], []>} : vector<8x32xf32>, vector<32x256xf32>, vector<8x256xf32> -> vector<8x256xf32>
    %385 = vector.extract_strided_slice %384 {offsets = [0, 0], sizes = [8, 128], strides = [1, 1]} : vector<8x256xf32> to vector<8x128xf32>
    %386 = vector.extract_strided_slice %384 {offsets = [0, 128], sizes = [8, 128], strides = [1, 1]} : vector<8x256xf32> to vector<8x128xf32>
    %387 = vector.broadcast %313 : vector<1x128xf32> to vector<8x128xf32>
    %388 = arith.addf %386, %387 : vector<8x128xf32>
    %cst_100 = arith.constant dense<0xFF800000> : vector<8xf32>
    %389 = vector.multi_reduction <maximumf>, %388, %cst_100 [1] : vector<8x128xf32> to vector<8xf32>
    %390 = vector.shape_cast %389 : vector<8xf32> to vector<8x1xf32>
    %391 = vector.broadcast %390 : vector<8x1xf32> to vector<8x128xf32>
    %392 = arith.subf %388, %391 : vector<8x128xf32>
    %393 = math.exp %392 : vector<8x128xf32>
    %cst_101 = arith.constant dense<0.000000e+00> : vector<8xf32>
    %394 = vector.multi_reduction <add>, %393, %cst_101 [1] : vector<8x128xf32> to vector<8xf32>
    %395 = vector.shape_cast %394 : vector<8xf32> to vector<8x1xf32>
    %396 = math.log %395 : vector<8x1xf32>
    %397 = arith.addf %390, %396 : vector<8x1xf32>
    %398 = vector.broadcast %397 : vector<8x1xf32> to vector<8x128xf32>
    %399 = arith.subf %388, %398 : vector<8x128xf32>
    %c8 = arith.constant 8 : index
    %c0_102 = arith.constant 0 : index
    %400 = vector.load %arg12[%c8, %c0_102] : memref<64x1xi32, #tpu.memory_space<vmem>>, vector<8x1xi32>
    %c8_103 = arith.constant 8 : index
    %c0_104 = arith.constant 0 : index
    %401 = vector.load %arg13[%c8_103, %c0_104] : memref<64x1xf32, #tpu.memory_space<vmem>>, vector<8x1xf32>
    %402 = vector.broadcast %400 : vector<8x1xi32> to vector<8x128xi32>
    %403 = arith.cmpi eq, %314, %402 : vector<8x128xi32>
    %cst_105 = arith.constant 0.000000e+00 : f32
    %404 = vector.broadcast %cst_105 : f32 to vector<8x128xf32>
    %405 = arith.select %403, %399, %404 : vector<8x128xi1>, vector<8x128xf32>
    %cst_106 = arith.constant dense<0.000000e+00> : vector<8xf32>
    %406 = vector.multi_reduction <add>, %405, %cst_106 [1] : vector<8x128xf32> to vector<8xf32>
    %407 = vector.shape_cast %406 : vector<8xf32> to vector<8x1xf32>
    %408 = arith.mulf %407, %401 : vector<8x1xf32>
    %409 = arith.subf %363, %408 : vector<8x1xf32>
    %410 = vector.extract_strided_slice %311 {offsets = [16, 0], sizes = [8, 128], strides = [1, 1]} : vector<64x128xf32> to vector<8x128xf32>
    %411 = arith.addf %410, %385 : vector<8x128xf32>
    %412 = arith.negf %411 : vector<8x128xf32>
    %413 = math.exp %412 : vector<8x128xf32>
    %cst_107 = arith.constant 1.000000e+00 : f32
    %414 = vector.broadcast %cst_107 : f32 to vector<8x128xf32>
    %415 = arith.addf %414, %413 : vector<8x128xf32>
    %416 = arith.divf %414, %415 : vector<8x128xf32>
    %417 = vector.extract_strided_slice %416 {offsets = [0, 0], sizes = [8, 32], strides = [1, 1]} : vector<8x128xf32> to vector<8x32xf32>
    %418 = vector.extract_strided_slice %416 {offsets = [0, 32], sizes = [8, 32], strides = [1, 1]} : vector<8x128xf32> to vector<8x32xf32>
    %419 = vector.extract_strided_slice %416 {offsets = [0, 64], sizes = [8, 32], strides = [1, 1]} : vector<8x128xf32> to vector<8x32xf32>
    %cst_108 = arith.constant 2.000000e+00 : f32
    %420 = vector.broadcast %cst_108 : f32 to vector<8x32xf32>
    %421 = arith.mulf %420, %419 : vector<8x32xf32>
    %cst_109 = arith.constant 1.000000e+00 : f32
    %422 = vector.broadcast %cst_109 : f32 to vector<8x32xf32>
    %423 = arith.subf %421, %422 : vector<8x32xf32>
    %424 = vector.extract_strided_slice %416 {offsets = [0, 96], sizes = [8, 32], strides = [1, 1]} : vector<8x128xf32> to vector<8x32xf32>
    %425 = arith.mulf %418, %381 : vector<8x32xf32>
    %426 = arith.mulf %417, %423 : vector<8x32xf32>
    %427 = arith.addf %425, %426 : vector<8x32xf32>
    %428 = math.tanh %427 : vector<8x32xf32>
    %429 = arith.mulf %424, %428 : vector<8x32xf32>
    %cst_110 = arith.constant dense<0.000000e+00> : vector<8x256xf32>
    %430 = tpu.matmul %429, %312, %cst_110 {dimension_numbers = #tpu.dot_dimension_numbers<[1], [0], [0], [1], [0, 0, 1, 1], [], []>} : vector<8x32xf32>, vector<32x256xf32>, vector<8x256xf32> -> vector<8x256xf32>
    %431 = vector.extract_strided_slice %430 {offsets = [0, 0], sizes = [8, 128], strides = [1, 1]} : vector<8x256xf32> to vector<8x128xf32>
    %432 = vector.extract_strided_slice %430 {offsets = [0, 128], sizes = [8, 128], strides = [1, 1]} : vector<8x256xf32> to vector<8x128xf32>
    %433 = vector.broadcast %313 : vector<1x128xf32> to vector<8x128xf32>
    %434 = arith.addf %432, %433 : vector<8x128xf32>
    %cst_111 = arith.constant dense<0xFF800000> : vector<8xf32>
    %435 = vector.multi_reduction <maximumf>, %434, %cst_111 [1] : vector<8x128xf32> to vector<8xf32>
    %436 = vector.shape_cast %435 : vector<8xf32> to vector<8x1xf32>
    %437 = vector.broadcast %436 : vector<8x1xf32> to vector<8x128xf32>
    %438 = arith.subf %434, %437 : vector<8x128xf32>
    %439 = math.exp %438 : vector<8x128xf32>
    %cst_112 = arith.constant dense<0.000000e+00> : vector<8xf32>
    %440 = vector.multi_reduction <add>, %439, %cst_112 [1] : vector<8x128xf32> to vector<8xf32>
    %441 = vector.shape_cast %440 : vector<8xf32> to vector<8x1xf32>
    %442 = math.log %441 : vector<8x1xf32>
    %443 = arith.addf %436, %442 : vector<8x1xf32>
    %444 = vector.broadcast %443 : vector<8x1xf32> to vector<8x128xf32>
    %445 = arith.subf %434, %444 : vector<8x128xf32>
    %c16 = arith.constant 16 : index
    %c0_113 = arith.constant 0 : index
    %446 = vector.load %arg12[%c16, %c0_113] : memref<64x1xi32, #tpu.memory_space<vmem>>, vector<8x1xi32>
    %c16_114 = arith.constant 16 : index
    %c0_115 = arith.constant 0 : index
    %447 = vector.load %arg13[%c16_114, %c0_115] : memref<64x1xf32, #tpu.memory_space<vmem>>, vector<8x1xf32>
    %448 = vector.broadcast %446 : vector<8x1xi32> to vector<8x128xi32>
    %449 = arith.cmpi eq, %314, %448 : vector<8x128xi32>
    %cst_116 = arith.constant 0.000000e+00 : f32
    %450 = vector.broadcast %cst_116 : f32 to vector<8x128xf32>
    %451 = arith.select %449, %445, %450 : vector<8x128xi1>, vector<8x128xf32>
    %cst_117 = arith.constant dense<0.000000e+00> : vector<8xf32>
    %452 = vector.multi_reduction <add>, %451, %cst_117 [1] : vector<8x128xf32> to vector<8xf32>
    %453 = vector.shape_cast %452 : vector<8xf32> to vector<8x1xf32>
    %454 = arith.mulf %453, %447 : vector<8x1xf32>
    %455 = arith.subf %409, %454 : vector<8x1xf32>
    %456 = vector.extract_strided_slice %311 {offsets = [24, 0], sizes = [8, 128], strides = [1, 1]} : vector<64x128xf32> to vector<8x128xf32>
    %457 = arith.addf %456, %431 : vector<8x128xf32>
    %458 = arith.negf %457 : vector<8x128xf32>
    %459 = math.exp %458 : vector<8x128xf32>
    %cst_118 = arith.constant 1.000000e+00 : f32
    %460 = vector.broadcast %cst_118 : f32 to vector<8x128xf32>
    %461 = arith.addf %460, %459 : vector<8x128xf32>
    %462 = arith.divf %460, %461 : vector<8x128xf32>
    %463 = vector.extract_strided_slice %462 {offsets = [0, 0], sizes = [8, 32], strides = [1, 1]} : vector<8x128xf32> to vector<8x32xf32>
    %464 = vector.extract_strided_slice %462 {offsets = [0, 32], sizes = [8, 32], strides = [1, 1]} : vector<8x128xf32> to vector<8x32xf32>
    %465 = vector.extract_strided_slice %462 {offsets = [0, 64], sizes = [8, 32], strides = [1, 1]} : vector<8x128xf32> to vector<8x32xf32>
    %cst_119 = arith.constant 2.000000e+00 : f32
    %466 = vector.broadcast %cst_119 : f32 to vector<8x32xf32>
    %467 = arith.mulf %466, %465 : vector<8x32xf32>
    %cst_120 = arith.constant 1.000000e+00 : f32
    %468 = vector.broadcast %cst_120 : f32 to vector<8x32xf32>
    %469 = arith.subf %467, %468 : vector<8x32xf32>
    %470 = vector.extract_strided_slice %462 {offsets = [0, 96], sizes = [8, 32], strides = [1, 1]} : vector<8x128xf32> to vector<8x32xf32>
    %471 = arith.mulf %464, %427 : vector<8x32xf32>
    %472 = arith.mulf %463, %469 : vector<8x32xf32>
    %473 = arith.addf %471, %472 : vector<8x32xf32>
    %474 = math.tanh %473 : vector<8x32xf32>
    %475 = arith.mulf %470, %474 : vector<8x32xf32>
    %cst_121 = arith.constant dense<0.000000e+00> : vector<8x256xf32>
    %476 = tpu.matmul %475, %312, %cst_121 {dimension_numbers = #tpu.dot_dimension_numbers<[1], [0], [0], [1], [0, 0, 1, 1], [], []>} : vector<8x32xf32>, vector<32x256xf32>, vector<8x256xf32> -> vector<8x256xf32>
    %477 = vector.extract_strided_slice %476 {offsets = [0, 0], sizes = [8, 128], strides = [1, 1]} : vector<8x256xf32> to vector<8x128xf32>
    %478 = vector.extract_strided_slice %476 {offsets = [0, 128], sizes = [8, 128], strides = [1, 1]} : vector<8x256xf32> to vector<8x128xf32>
    %479 = vector.broadcast %313 : vector<1x128xf32> to vector<8x128xf32>
    %480 = arith.addf %478, %479 : vector<8x128xf32>
    %cst_122 = arith.constant dense<0xFF800000> : vector<8xf32>
    %481 = vector.multi_reduction <maximumf>, %480, %cst_122 [1] : vector<8x128xf32> to vector<8xf32>
    %482 = vector.shape_cast %481 : vector<8xf32> to vector<8x1xf32>
    %483 = vector.broadcast %482 : vector<8x1xf32> to vector<8x128xf32>
    %484 = arith.subf %480, %483 : vector<8x128xf32>
    %485 = math.exp %484 : vector<8x128xf32>
    %cst_123 = arith.constant dense<0.000000e+00> : vector<8xf32>
    %486 = vector.multi_reduction <add>, %485, %cst_123 [1] : vector<8x128xf32> to vector<8xf32>
    %487 = vector.shape_cast %486 : vector<8xf32> to vector<8x1xf32>
    %488 = math.log %487 : vector<8x1xf32>
    %489 = arith.addf %482, %488 : vector<8x1xf32>
    %490 = vector.broadcast %489 : vector<8x1xf32> to vector<8x128xf32>
    %491 = arith.subf %480, %490 : vector<8x128xf32>
    %c24 = arith.constant 24 : index
    %c0_124 = arith.constant 0 : index
    %492 = vector.load %arg12[%c24, %c0_124] : memref<64x1xi32, #tpu.memory_space<vmem>>, vector<8x1xi32>
    %c24_125 = arith.constant 24 : index
    %c0_126 = arith.constant 0 : index
    %493 = vector.load %arg13[%c24_125, %c0_126] : memref<64x1xf32, #tpu.memory_space<vmem>>, vector<8x1xf32>
    %494 = vector.broadcast %492 : vector<8x1xi32> to vector<8x128xi32>
    %495 = arith.cmpi eq, %314, %494 : vector<8x128xi32>
    %cst_127 = arith.constant 0.000000e+00 : f32
    %496 = vector.broadcast %cst_127 : f32 to vector<8x128xf32>
    %497 = arith.select %495, %491, %496 : vector<8x128xi1>, vector<8x128xf32>
    %cst_128 = arith.constant dense<0.000000e+00> : vector<8xf32>
    %498 = vector.multi_reduction <add>, %497, %cst_128 [1] : vector<8x128xf32> to vector<8xf32>
    %499 = vector.shape_cast %498 : vector<8xf32> to vector<8x1xf32>
    %500 = arith.mulf %499, %493 : vector<8x1xf32>
    %501 = arith.subf %455, %500 : vector<8x1xf32>
    %502 = vector.extract_strided_slice %311 {offsets = [32, 0], sizes = [8, 128], strides = [1, 1]} : vector<64x128xf32> to vector<8x128xf32>
    %503 = arith.addf %502, %477 : vector<8x128xf32>
    %504 = arith.negf %503 : vector<8x128xf32>
    %505 = math.exp %504 : vector<8x128xf32>
    %cst_129 = arith.constant 1.000000e+00 : f32
    %506 = vector.broadcast %cst_129 : f32 to vector<8x128xf32>
    %507 = arith.addf %506, %505 : vector<8x128xf32>
    %508 = arith.divf %506, %507 : vector<8x128xf32>
    %509 = vector.extract_strided_slice %508 {offsets = [0, 0], sizes = [8, 32], strides = [1, 1]} : vector<8x128xf32> to vector<8x32xf32>
    %510 = vector.extract_strided_slice %508 {offsets = [0, 32], sizes = [8, 32], strides = [1, 1]} : vector<8x128xf32> to vector<8x32xf32>
    %511 = vector.extract_strided_slice %508 {offsets = [0, 64], sizes = [8, 32], strides = [1, 1]} : vector<8x128xf32> to vector<8x32xf32>
    %cst_130 = arith.constant 2.000000e+00 : f32
    %512 = vector.broadcast %cst_130 : f32 to vector<8x32xf32>
    %513 = arith.mulf %512, %511 : vector<8x32xf32>
    %cst_131 = arith.constant 1.000000e+00 : f32
    %514 = vector.broadcast %cst_131 : f32 to vector<8x32xf32>
    %515 = arith.subf %513, %514 : vector<8x32xf32>
    %516 = vector.extract_strided_slice %508 {offsets = [0, 96], sizes = [8, 32], strides = [1, 1]} : vector<8x128xf32> to vector<8x32xf32>
    %517 = arith.mulf %510, %473 : vector<8x32xf32>
    %518 = arith.mulf %509, %515 : vector<8x32xf32>
    %519 = arith.addf %517, %518 : vector<8x32xf32>
    %520 = math.tanh %519 : vector<8x32xf32>
    %521 = arith.mulf %516, %520 : vector<8x32xf32>
    %cst_132 = arith.constant dense<0.000000e+00> : vector<8x256xf32>
    %522 = tpu.matmul %521, %312, %cst_132 {dimension_numbers = #tpu.dot_dimension_numbers<[1], [0], [0], [1], [0, 0, 1, 1], [], []>} : vector<8x32xf32>, vector<32x256xf32>, vector<8x256xf32> -> vector<8x256xf32>
    %523 = vector.extract_strided_slice %522 {offsets = [0, 0], sizes = [8, 128], strides = [1, 1]} : vector<8x256xf32> to vector<8x128xf32>
    %524 = vector.extract_strided_slice %522 {offsets = [0, 128], sizes = [8, 128], strides = [1, 1]} : vector<8x256xf32> to vector<8x128xf32>
    %525 = vector.broadcast %313 : vector<1x128xf32> to vector<8x128xf32>
    %526 = arith.addf %524, %525 : vector<8x128xf32>
    %cst_133 = arith.constant dense<0xFF800000> : vector<8xf32>
    %527 = vector.multi_reduction <maximumf>, %526, %cst_133 [1] : vector<8x128xf32> to vector<8xf32>
    %528 = vector.shape_cast %527 : vector<8xf32> to vector<8x1xf32>
    %529 = vector.broadcast %528 : vector<8x1xf32> to vector<8x128xf32>
    %530 = arith.subf %526, %529 : vector<8x128xf32>
    %531 = math.exp %530 : vector<8x128xf32>
    %cst_134 = arith.constant dense<0.000000e+00> : vector<8xf32>
    %532 = vector.multi_reduction <add>, %531, %cst_134 [1] : vector<8x128xf32> to vector<8xf32>
    %533 = vector.shape_cast %532 : vector<8xf32> to vector<8x1xf32>
    %534 = math.log %533 : vector<8x1xf32>
    %535 = arith.addf %528, %534 : vector<8x1xf32>
    %536 = vector.broadcast %535 : vector<8x1xf32> to vector<8x128xf32>
    %537 = arith.subf %526, %536 : vector<8x128xf32>
    %c32 = arith.constant 32 : index
    %c0_135 = arith.constant 0 : index
    %538 = vector.load %arg12[%c32, %c0_135] : memref<64x1xi32, #tpu.memory_space<vmem>>, vector<8x1xi32>
    %c32_136 = arith.constant 32 : index
    %c0_137 = arith.constant 0 : index
    %539 = vector.load %arg13[%c32_136, %c0_137] : memref<64x1xf32, #tpu.memory_space<vmem>>, vector<8x1xf32>
    %540 = vector.broadcast %538 : vector<8x1xi32> to vector<8x128xi32>
    %541 = arith.cmpi eq, %314, %540 : vector<8x128xi32>
    %cst_138 = arith.constant 0.000000e+00 : f32
    %542 = vector.broadcast %cst_138 : f32 to vector<8x128xf32>
    %543 = arith.select %541, %537, %542 : vector<8x128xi1>, vector<8x128xf32>
    %cst_139 = arith.constant dense<0.000000e+00> : vector<8xf32>
    %544 = vector.multi_reduction <add>, %543, %cst_139 [1] : vector<8x128xf32> to vector<8xf32>
    %545 = vector.shape_cast %544 : vector<8xf32> to vector<8x1xf32>
    %546 = arith.mulf %545, %539 : vector<8x1xf32>
    %547 = arith.subf %501, %546 : vector<8x1xf32>
    %548 = vector.extract_strided_slice %311 {offsets = [40, 0], sizes = [8, 128], strides = [1, 1]} : vector<64x128xf32> to vector<8x128xf32>
    %549 = arith.addf %548, %523 : vector<8x128xf32>
    %550 = arith.negf %549 : vector<8x128xf32>
    %551 = math.exp %550 : vector<8x128xf32>
    %cst_140 = arith.constant 1.000000e+00 : f32
    %552 = vector.broadcast %cst_140 : f32 to vector<8x128xf32>
    %553 = arith.addf %552, %551 : vector<8x128xf32>
    %554 = arith.divf %552, %553 : vector<8x128xf32>
    %555 = vector.extract_strided_slice %554 {offsets = [0, 0], sizes = [8, 32], strides = [1, 1]} : vector<8x128xf32> to vector<8x32xf32>
    %556 = vector.extract_strided_slice %554 {offsets = [0, 32], sizes = [8, 32], strides = [1, 1]} : vector<8x128xf32> to vector<8x32xf32>
    %557 = vector.extract_strided_slice %554 {offsets = [0, 64], sizes = [8, 32], strides = [1, 1]} : vector<8x128xf32> to vector<8x32xf32>
    %cst_141 = arith.constant 2.000000e+00 : f32
    %558 = vector.broadcast %cst_141 : f32 to vector<8x32xf32>
    %559 = arith.mulf %558, %557 : vector<8x32xf32>
    %cst_142 = arith.constant 1.000000e+00 : f32
    %560 = vector.broadcast %cst_142 : f32 to vector<8x32xf32>
    %561 = arith.subf %559, %560 : vector<8x32xf32>
    %562 = vector.extract_strided_slice %554 {offsets = [0, 96], sizes = [8, 32], strides = [1, 1]} : vector<8x128xf32> to vector<8x32xf32>
    %563 = arith.mulf %556, %519 : vector<8x32xf32>
    %564 = arith.mulf %555, %561 : vector<8x32xf32>
    %565 = arith.addf %563, %564 : vector<8x32xf32>
    %566 = math.tanh %565 : vector<8x32xf32>
    %567 = arith.mulf %562, %566 : vector<8x32xf32>
    %cst_143 = arith.constant dense<0.000000e+00> : vector<8x256xf32>
    %568 = tpu.matmul %567, %312, %cst_143 {dimension_numbers = #tpu.dot_dimension_numbers<[1], [0], [0], [1], [0, 0, 1, 1], [], []>} : vector<8x32xf32>, vector<32x256xf32>, vector<8x256xf32> -> vector<8x256xf32>
    %569 = vector.extract_strided_slice %568 {offsets = [0, 0], sizes = [8, 128], strides = [1, 1]} : vector<8x256xf32> to vector<8x128xf32>
    %570 = vector.extract_strided_slice %568 {offsets = [0, 128], sizes = [8, 128], strides = [1, 1]} : vector<8x256xf32> to vector<8x128xf32>
    %571 = vector.broadcast %313 : vector<1x128xf32> to vector<8x128xf32>
    %572 = arith.addf %570, %571 : vector<8x128xf32>
    %cst_144 = arith.constant dense<0xFF800000> : vector<8xf32>
    %573 = vector.multi_reduction <maximumf>, %572, %cst_144 [1] : vector<8x128xf32> to vector<8xf32>
    %574 = vector.shape_cast %573 : vector<8xf32> to vector<8x1xf32>
    %575 = vector.broadcast %574 : vector<8x1xf32> to vector<8x128xf32>
    %576 = arith.subf %572, %575 : vector<8x128xf32>
    %577 = math.exp %576 : vector<8x128xf32>
    %cst_145 = arith.constant dense<0.000000e+00> : vector<8xf32>
    %578 = vector.multi_reduction <add>, %577, %cst_145 [1] : vector<8x128xf32> to vector<8xf32>
    %579 = vector.shape_cast %578 : vector<8xf32> to vector<8x1xf32>
    %580 = math.log %579 : vector<8x1xf32>
    %581 = arith.addf %574, %580 : vector<8x1xf32>
    %582 = vector.broadcast %581 : vector<8x1xf32> to vector<8x128xf32>
    %583 = arith.subf %572, %582 : vector<8x128xf32>
    %c40 = arith.constant 40 : index
    %c0_146 = arith.constant 0 : index
    %584 = vector.load %arg12[%c40, %c0_146] : memref<64x1xi32, #tpu.memory_space<vmem>>, vector<8x1xi32>
    %c40_147 = arith.constant 40 : index
    %c0_148 = arith.constant 0 : index
    %585 = vector.load %arg13[%c40_147, %c0_148] : memref<64x1xf32, #tpu.memory_space<vmem>>, vector<8x1xf32>
    %586 = vector.broadcast %584 : vector<8x1xi32> to vector<8x128xi32>
    %587 = arith.cmpi eq, %314, %586 : vector<8x128xi32>
    %cst_149 = arith.constant 0.000000e+00 : f32
    %588 = vector.broadcast %cst_149 : f32 to vector<8x128xf32>
    %589 = arith.select %587, %583, %588 : vector<8x128xi1>, vector<8x128xf32>
    %cst_150 = arith.constant dense<0.000000e+00> : vector<8xf32>
    %590 = vector.multi_reduction <add>, %589, %cst_150 [1] : vector<8x128xf32> to vector<8xf32>
    %591 = vector.shape_cast %590 : vector<8xf32> to vector<8x1xf32>
    %592 = arith.mulf %591, %585 : vector<8x1xf32>
    %593 = arith.subf %547, %592 : vector<8x1xf32>
    %594 = vector.extract_strided_slice %311 {offsets = [48, 0], sizes = [8, 128], strides = [1, 1]} : vector<64x128xf32> to vector<8x128xf32>
    %595 = arith.addf %594, %569 : vector<8x128xf32>
    %596 = arith.negf %595 : vector<8x128xf32>
    %597 = math.exp %596 : vector<8x128xf32>
    %cst_151 = arith.constant 1.000000e+00 : f32
    %598 = vector.broadcast %cst_151 : f32 to vector<8x128xf32>
    %599 = arith.addf %598, %597 : vector<8x128xf32>
    %600 = arith.divf %598, %599 : vector<8x128xf32>
    %601 = vector.extract_strided_slice %600 {offsets = [0, 0], sizes = [8, 32], strides = [1, 1]} : vector<8x128xf32> to vector<8x32xf32>
    %602 = vector.extract_strided_slice %600 {offsets = [0, 32], sizes = [8, 32], strides = [1, 1]} : vector<8x128xf32> to vector<8x32xf32>
    %603 = vector.extract_strided_slice %600 {offsets = [0, 64], sizes = [8, 32], strides = [1, 1]} : vector<8x128xf32> to vector<8x32xf32>
    %cst_152 = arith.constant 2.000000e+00 : f32
    %604 = vector.broadcast %cst_152 : f32 to vector<8x32xf32>
    %605 = arith.mulf %604, %603 : vector<8x32xf32>
    %cst_153 = arith.constant 1.000000e+00 : f32
    %606 = vector.broadcast %cst_153 : f32 to vector<8x32xf32>
    %607 = arith.subf %605, %606 : vector<8x32xf32>
    %608 = vector.extract_strided_slice %600 {offsets = [0, 96], sizes = [8, 32], strides = [1, 1]} : vector<8x128xf32> to vector<8x32xf32>
    %609 = arith.mulf %602, %565 : vector<8x32xf32>
    %610 = arith.mulf %601, %607 : vector<8x32xf32>
    %611 = arith.addf %609, %610 : vector<8x32xf32>
    %612 = math.tanh %611 : vector<8x32xf32>
    %613 = arith.mulf %608, %612 : vector<8x32xf32>
    %cst_154 = arith.constant dense<0.000000e+00> : vector<8x256xf32>
    %614 = tpu.matmul %613, %312, %cst_154 {dimension_numbers = #tpu.dot_dimension_numbers<[1], [0], [0], [1], [0, 0, 1, 1], [], []>} : vector<8x32xf32>, vector<32x256xf32>, vector<8x256xf32> -> vector<8x256xf32>
    %615 = vector.extract_strided_slice %614 {offsets = [0, 0], sizes = [8, 128], strides = [1, 1]} : vector<8x256xf32> to vector<8x128xf32>
    %616 = vector.extract_strided_slice %614 {offsets = [0, 128], sizes = [8, 128], strides = [1, 1]} : vector<8x256xf32> to vector<8x128xf32>
    %617 = vector.broadcast %313 : vector<1x128xf32> to vector<8x128xf32>
    %618 = arith.addf %616, %617 : vector<8x128xf32>
    %cst_155 = arith.constant dense<0xFF800000> : vector<8xf32>
    %619 = vector.multi_reduction <maximumf>, %618, %cst_155 [1] : vector<8x128xf32> to vector<8xf32>
    %620 = vector.shape_cast %619 : vector<8xf32> to vector<8x1xf32>
    %621 = vector.broadcast %620 : vector<8x1xf32> to vector<8x128xf32>
    %622 = arith.subf %618, %621 : vector<8x128xf32>
    %623 = math.exp %622 : vector<8x128xf32>
    %cst_156 = arith.constant dense<0.000000e+00> : vector<8xf32>
    %624 = vector.multi_reduction <add>, %623, %cst_156 [1] : vector<8x128xf32> to vector<8xf32>
    %625 = vector.shape_cast %624 : vector<8xf32> to vector<8x1xf32>
    %626 = math.log %625 : vector<8x1xf32>
    %627 = arith.addf %620, %626 : vector<8x1xf32>
    %628 = vector.broadcast %627 : vector<8x1xf32> to vector<8x128xf32>
    %629 = arith.subf %618, %628 : vector<8x128xf32>
    %c48 = arith.constant 48 : index
    %c0_157 = arith.constant 0 : index
    %630 = vector.load %arg12[%c48, %c0_157] : memref<64x1xi32, #tpu.memory_space<vmem>>, vector<8x1xi32>
    %c48_158 = arith.constant 48 : index
    %c0_159 = arith.constant 0 : index
    %631 = vector.load %arg13[%c48_158, %c0_159] : memref<64x1xf32, #tpu.memory_space<vmem>>, vector<8x1xf32>
    %632 = vector.broadcast %630 : vector<8x1xi32> to vector<8x128xi32>
    %633 = arith.cmpi eq, %314, %632 : vector<8x128xi32>
    %cst_160 = arith.constant 0.000000e+00 : f32
    %634 = vector.broadcast %cst_160 : f32 to vector<8x128xf32>
    %635 = arith.select %633, %629, %634 : vector<8x128xi1>, vector<8x128xf32>
    %cst_161 = arith.constant dense<0.000000e+00> : vector<8xf32>
    %636 = vector.multi_reduction <add>, %635, %cst_161 [1] : vector<8x128xf32> to vector<8xf32>
    %637 = vector.shape_cast %636 : vector<8xf32> to vector<8x1xf32>
    %638 = arith.mulf %637, %631 : vector<8x1xf32>
    %639 = arith.subf %593, %638 : vector<8x1xf32>
    %640 = vector.extract_strided_slice %311 {offsets = [56, 0], sizes = [8, 128], strides = [1, 1]} : vector<64x128xf32> to vector<8x128xf32>
    %641 = arith.addf %640, %615 : vector<8x128xf32>
    %642 = arith.negf %641 : vector<8x128xf32>
    %643 = math.exp %642 : vector<8x128xf32>
    %cst_162 = arith.constant 1.000000e+00 : f32
    %644 = vector.broadcast %cst_162 : f32 to vector<8x128xf32>
    %645 = arith.addf %644, %643 : vector<8x128xf32>
    %646 = arith.divf %644, %645 : vector<8x128xf32>
    %647 = vector.extract_strided_slice %646 {offsets = [0, 0], sizes = [8, 32], strides = [1, 1]} : vector<8x128xf32> to vector<8x32xf32>
    %648 = vector.extract_strided_slice %646 {offsets = [0, 32], sizes = [8, 32], strides = [1, 1]} : vector<8x128xf32> to vector<8x32xf32>
    %649 = vector.extract_strided_slice %646 {offsets = [0, 64], sizes = [8, 32], strides = [1, 1]} : vector<8x128xf32> to vector<8x32xf32>
    %cst_163 = arith.constant 2.000000e+00 : f32
    %650 = vector.broadcast %cst_163 : f32 to vector<8x32xf32>
    %651 = arith.mulf %650, %649 : vector<8x32xf32>
    %cst_164 = arith.constant 1.000000e+00 : f32
    %652 = vector.broadcast %cst_164 : f32 to vector<8x32xf32>
    %653 = arith.subf %651, %652 : vector<8x32xf32>
    %654 = vector.extract_strided_slice %646 {offsets = [0, 96], sizes = [8, 32], strides = [1, 1]} : vector<8x128xf32> to vector<8x32xf32>
    %655 = arith.mulf %648, %611 : vector<8x32xf32>
    %656 = arith.mulf %647, %653 : vector<8x32xf32>
    %657 = arith.addf %655, %656 : vector<8x32xf32>
    %658 = math.tanh %657 : vector<8x32xf32>
    %659 = arith.mulf %654, %658 : vector<8x32xf32>
    %cst_165 = arith.constant dense<0.000000e+00> : vector<8x256xf32>
    %660 = tpu.matmul %659, %312, %cst_165 {dimension_numbers = #tpu.dot_dimension_numbers<[1], [0], [0], [1], [0, 0, 1, 1], [], []>} : vector<8x32xf32>, vector<32x256xf32>, vector<8x256xf32> -> vector<8x256xf32>
    %661 = vector.extract_strided_slice %660 {offsets = [0, 128], sizes = [8, 128], strides = [1, 1]} : vector<8x256xf32> to vector<8x128xf32>
    %662 = vector.broadcast %313 : vector<1x128xf32> to vector<8x128xf32>
    %663 = arith.addf %661, %662 : vector<8x128xf32>
    %cst_166 = arith.constant dense<0xFF800000> : vector<8xf32>
    %664 = vector.multi_reduction <maximumf>, %663, %cst_166 [1] : vector<8x128xf32> to vector<8xf32>
    %665 = vector.shape_cast %664 : vector<8xf32> to vector<8x1xf32>
    %666 = vector.broadcast %665 : vector<8x1xf32> to vector<8x128xf32>
    %667 = arith.subf %663, %666 : vector<8x128xf32>
    %668 = math.exp %667 : vector<8x128xf32>
    %cst_167 = arith.constant dense<0.000000e+00> : vector<8xf32>
    %669 = vector.multi_reduction <add>, %668, %cst_167 [1] : vector<8x128xf32> to vector<8xf32>
    %670 = vector.shape_cast %669 : vector<8xf32> to vector<8x1xf32>
    %671 = math.log %670 : vector<8x1xf32>
    %672 = arith.addf %665, %671 : vector<8x1xf32>
    %673 = vector.broadcast %672 : vector<8x1xf32> to vector<8x128xf32>
    %674 = arith.subf %663, %673 : vector<8x128xf32>
    %c56 = arith.constant 56 : index
    %c0_168 = arith.constant 0 : index
    %675 = vector.load %arg12[%c56, %c0_168] : memref<64x1xi32, #tpu.memory_space<vmem>>, vector<8x1xi32>
    %c56_169 = arith.constant 56 : index
    %c0_170 = arith.constant 0 : index
    %676 = vector.load %arg13[%c56_169, %c0_170] : memref<64x1xf32, #tpu.memory_space<vmem>>, vector<8x1xf32>
    %677 = vector.broadcast %675 : vector<8x1xi32> to vector<8x128xi32>
    %678 = arith.cmpi eq, %314, %677 : vector<8x128xi32>
    %cst_171 = arith.constant 0.000000e+00 : f32
    %679 = vector.broadcast %cst_171 : f32 to vector<8x128xf32>
    %680 = arith.select %678, %674, %679 : vector<8x128xi1>, vector<8x128xf32>
    %cst_172 = arith.constant dense<0.000000e+00> : vector<8xf32>
    %681 = vector.multi_reduction <add>, %680, %cst_172 [1] : vector<8x128xf32> to vector<8xf32>
    %682 = vector.shape_cast %681 : vector<8xf32> to vector<8x1xf32>
    %683 = arith.mulf %682, %676 : vector<8x1xf32>
    %684 = arith.subf %639, %683 : vector<8x1xf32>
    %cst_173 = arith.constant dense<0.000000e+00> : vector<1xf32>
    %685 = vector.multi_reduction <add>, %684, %cst_173 [0] : vector<8x1xf32> to vector<1xf32>
    %686 = vector.shape_cast %685 : vector<1xf32> to vector<1x1xf32>
    %c0_174 = arith.constant 0 : index
    %c0_175 = arith.constant 0 : index
    %687 = vector.load %arg14[%c0_174, %c0_175] : memref<1x1xf32, #tpu.memory_space<vmem>>, vector<1x1xf32>
    tpu.vector_store %arg14[%c0_174, %c0_175], %686 {strides = array<i32>} : memref<1x1xf32, #tpu.memory_space<vmem>>, vector<1x1xf32>,
    return
  }
}

</mosaic_0001>

<bundles_post_ra>
// kernel: gt.9
= control target key start
LH: loop header
LB: loop body
LE: loop exit
PB: predicated region body
PF: predicated region fallthrough
CT: control target
= control target key end

     0   :  { %vm7_vm0 = vcmask 15360   ;;  %vm13_vm1 = vcmask 31760   ;;  %s39_s0 = inlined_call_operand.vmem [shape: s32[2,2], index: 0, kind: input, shape index: {}]   ;;  %s40_s1 = inlined_call_operand.vmem [shape: s32[4], index: 1, kind: output, shape index: {}]  }
   0x1   :  { %v4_v0 = vld [vmem:[%s39_s0] sm:$0x3]  ;;  %s22_s0 = smov 2  }
   0x2   :  { %5 = vst [vmem:[#allocation1] sm:$0x3] %v4_v0 }
   0x9   :  { %v10_v1 = vld [vmem:[#allocation1 + $0x1] sm:$0x1]   ;;  %v6_v2 = vld [vmem:[#allocation1] sm:$0x1]  }
   0xa   :  { %11 = vrot.lane.b32.xlu0 %v10_v1, %s22_s0  ;;  %8 = vst.msk [vmem:[#allocation0] sm:$0x1] %vm7_vm0, %v6_v2  }
  0x7c   :  { %v12_v3 = vpop.permute.xlu0 %11  }
  0x7d   :  { %14 = vst.msk [vmem:[#allocation0] sm:$0x1] %vm13_vm1, %v12_v3  }
  0x84   :  { %v17_v4 = vld [vmem:[#allocation0] sm:$0x1] }
  0x85   :  { %20 = vst [vmem:[%s40_s1] sm:$0x1] %v17_v4 }

// kernel: forward.1
= control target key start
LH: loop header
LB: loop body
LE: loop exit
PB: predicated region body
PF: predicated region fallthrough
CT: control target
= control target key end

     0   :  { %s2738_s0 = inlined_call_operand.vmem [shape: f32[64,32], index: 0, kind: input, shape index: {}]   ;;  %s2739_s1 = inlined_call_operand.vmem [shape: f32[32,128], index: 1, kind: input, shape index: {}]   ;;  %s2740_s2 = inlined_call_operand.vmem [shape: f32[32,128], index: 2, kind: input, shape index: {}]   ;;  %s2741_s3 = inlined_call_operand.vmem [shape: f32[1,128], index: 3, kind: input, shape index: {}]   ;;  %s2742_s4 = inlined_call_operand.vmem [shape: f32[32,128], index: 4, kind: input, shape index: {}]   ;;  %s2743_s5 = inlined_call_operand.vmem [shape: f32[32,128], index: 5, kind: input, shape index: {}]   ;;  %s2744_s6 = inlined_call_operand.vmem [shape: f32[1,128], index: 6, kind: input, shape index: {}]   ;;  %s2745_s7 = inlined_call_operand.vmem [shape: f32[64,32], index: 7, kind: input, shape index: {}]   ;;  %s2746_s8 = inlined_call_operand.vmem [shape: f32[32,128], index: 8, kind: input, shape index: {}]   ;;  %s2747_s9 = inlined_call_operand.vmem [shape: f32[1,128], index: 9, kind: input, shape index: {}]   ;;  %s2748_s10 = inlined_call_operand.vmem [shape: f32[32,256], index: 10, kind: input, shape index: {}]   ;;  %s2749_s11 = inlined_call_operand.vmem [shape: f32[1,128], index: 11, kind: input, shape index: {}]   ;;  %s2750_s12 = inlined_call_operand.vmem [shape: s32[64,1], index: 12, kind: input, shape index: {}]   ;;  %s2751_s13 = inlined_call_operand.vmem [shape: f32[64,1], index: 13, kind: input, shape index: {}]   ;;  %s2752_s14 = inlined_call_operand.hbm [shape: f32[1,1], index: 14, kind: output, shape index: {}]  }
   0x1   :  { %v2180_v0 = vld [vmem:[%s2740_s2 + $0x18] sm:$0xff]  ;;  %v2185_v1 = vld [vmem:[%s2740_s2 + $0x10] sm:$0xff]  ;;  %v2197_v4 = vld [vmem:[%s2740_s2 + $0x8] sm:$0xff] }
   0x2   :  { %v59_v2 = vld [vmem:[%s2739_s1 + $0x18] sm:$0xff]  ;;  %149 = vmatpush.msra.mxu3 %v2180_v0  ;;  %v58_v3 = vld [vmem:[%s2739_s1 + $0x10] sm:$0xff]  ;;  %v2202_v5 = vld [vmem:[%s2740_s2] sm:$0xff]  ;;  %213 = vmatpush.msra.mxu2 %v2180_v0 }
   0x3   :  { %101 = vmatpush.msra.mxu0 %v59_v2  ;;  %v57_v6 = vld [vmem:[%s2739_s1 + $0x8] sm:$0xff]  ;;  %341 = vmatpush.msra.mxu1 %v2180_v0  ;;  %v56_v7 = vld [vmem:[%s2739_s1] sm:$0xff] }
   0x4   :  { %150 = vmatpush.msra.mxu3 %v2185_v1  ;;  %214 = vmatpush.msra.mxu2 %v2185_v1 }
   0x5   :  { %102 = vmatpush.msra.mxu0 %v58_v3  ;;  %342 = vmatpush.msra.mxu1 %v2185_v1 }
   0x6   :  { %19 = vsyncpa [#allocation3], 0  ;;  %151 = vmatpush.msra.mxu3 %v2197_v4  ;;  %v48_v8 = vld [vmem:[%s2738_s0] sm:$0xff]  ;;  %vm64_vm0 = vcmask 261120   ;;  %215 = vmatpush.msra.mxu2 %v2197_v4  ;;  %v2097_v9 = vmov 0.0   ;;  %s2099_s15 = smov 32  }
   0x7   :  { %103 = vmatpush.msra.mxu0 %v57_v6  ;;  %343 = vmatpush.msra.mxu1 %v2197_v4  ;;  %v2245_v10 = vld [vmem:[%s2741_s3] ss:$0 sm:$0xff]  ;;  %s2098_s3 = smov 64   ;;  %v49_v38 = vld [vmem:[%s2738_s0 + $0x8] sm:$0xff]  ;;  %v50_v3 = vld [vmem:[%s2738_s0 + $0x10] sm:$0xff] }
   0x8   :  { %152 = vmatpush.msra.mxu3 %v2202_v5  ;;  %216 = vmatpush.msra.mxu2 %v2202_v5 }
   0x9   :  { %104 = vmatpush.msra.mxu0 %v56_v7  ;;  %153 = vmatmul.f32.vlgmr.msra.gmra.mxu3 %v2097_v9 }
   0xa   :  { %1841 = vmatmul.msk.f32.vlgmr.msra.gmra.mxu0 %vm64_vm0, %v48_v8  ;;  %277 = vmatpush.msrb.mxu3 %v2180_v0 }
   0xb   :  { %344 = vmatpush.msra.mxu1 %v2202_v5  ;;  %405 = vmatpush.msrb.mxu2 %v2180_v0 }
   0xc   :  { %278 = vmatpush.msrb.mxu3 %v2185_v1 }
   0xd   :  { %533 = vmatpush.msrb.mxu1 %v2180_v0  ;;  %406 = vmatpush.msrb.mxu2 %v2185_v1 }
   0xe   :  { %279 = vmatpush.msrb.mxu3 %v2197_v4 }
   0xf   :  { %534 = vmatpush.msrb.mxu1 %v2185_v1  ;;  %407 = vmatpush.msrb.mxu2 %v2197_v4 }
  0x10   :  { %280 = vmatpush.msrb.mxu3 %v2202_v5 }
  0x11   :  { %535 = vmatpush.msrb.mxu1 %v2197_v4  ;;  %408 = vmatpush.msrb.mxu2 %v2202_v5 }
  0x12   :  { %469 = vmatpush.msra.mxu3 %v2180_v0  ;;  %1842 = vmatmul.msk.f32.gmra.mxu0 %vm64_vm0, %v49_v38 }
  0x13   :  { %536 = vmatpush.msrb.mxu1 %v2202_v5 }
  0x14   :  { %470 = vmatpush.msra.mxu3 %v2185_v1 }
  0x16   :  { %471 = vmatpush.msra.mxu3 %v2197_v4 }
  0x18   :  { %472 = vmatpush.msra.mxu3 %v2202_v5 }
  0x1a   :  { %1843 = vmatmul.msk.f32.gmra.mxu0 %vm64_vm0, %v50_v3 }
  0x87   :  { %v106_v11 = vpop.f32.mrf.mxu0 }
  0x88   :  { %v107_v12 = vadd.f32 %v2245_v10, %v106_v11 }
  0x8c   :  { %v154_v13 = vpop.f32.mrf.mxu3 }
  0x8d   :  { %v157_v14 = vadd.f32 %v154_v13, %v107_v12 }
  0x8f   :  { %v1849_v15 = vmul.f32 -1.442695, %v157_v14  ;;  %v109_v40 = vpop.f32.mrf.mxu0 }
  0x90   :  { %v110_v41 = vadd.f32 %v2245_v10, %v109_v40 }
  0x91   :  { %1931 = vpow2.f32 %v1849_v15 }
  0x97   :  { %v1932_v16 = vpop.eup %1931 }
  0x98   :  { %v161_v17 = vadd.f32 1.0, %v1932_v16 }
  0x9a   :  { %1933 = vrcp.f32 %v161_v17  ;;  %v173_v21 = vand.u32 2147483648, %v161_v17  ;;  %v171_v23 = vand.u32 2147483647, %v161_v17  ;;  %vm167_vm2 = vweird.f32 %v161_v17 }
  0x9c   :  { %v174_v25 = vor.u32 1.1754944e-38, %v173_v21  ;;  %vm172_vm4 = vcmp.eq.f32.partialorder %v171_v23, 8.507059e+37 }
  0xa0   :  { %v1934_v18 = vpop.eup %1933 }
  0xa1   :  { %v163_v19 = vmul.f32 %v1934_v18, %v161_v17  ;;  %vm168_vm1 = vweird.f32 %v1934_v18 }
  0xa2   :  { %vm169_vm3 = vmor %vm167_vm2, %vm168_vm1 }
  0xa3   :  { %v164_v20 = vsub.f32 1.0, %v163_v19 }
  0xa5   :  { %v165_v22 = vmul.f32 %v1934_v18, %v164_v20 }
  0xa7   :  { %v166_v24 = vadd.f32 %v1934_v18, %v165_v22 }
  0xa9   :  { %v170_v26 = vsel %vm169_vm3, %v1934_v18, %v166_v24 }
  0xaa   :  { %v175_v27 = vsel %vm172_vm4, %v174_v25, %v170_v26 }
  0xab   :  { %v177_v28 = vmul.f32 2.0, %v175_v27  ;;  %v179_v32 = vmul.f32 0.0, %v175_v27 }
  0xad   :  { %v1850_v29 = vadd.f32 -1.0, %v177_v28 }
  0xaf   :  { %181 = vrot.lane.b32.xlu0 %v1850_v29, %s2098_s3 }
 0x121   :  { %v182_v30 = vpop.permute.xlu0 %181 }
 0x122   :  { %v184_v31 = vmul.f32 %v182_v30, %v175_v27 }
 0x124   :  { %186 = vrot.lane.b32.xlu0 %v184_v31, %s2099_s15 }
 0x196   :  { %v187_v33 = vpop.permute.xlu0 %186 }
 0x197   :  { %v189_v34 = vadd.f32 %v187_v33, %v179_v32  ;;  %v51_v32 = vld [vmem:[%s2738_s0 + $0x18] sm:$0xff] }
 0x198   :  { %1844 = vmatmul.msk.f32.gmra.mxu0 %vm64_vm0, %v51_v32 }
 0x199   :  { %1935 = vtanh.f32 %v189_v34 }
 0x19f   :  { %v1936_v35 = vpop.eup %1935 }
 0x1a0   :  { %192 = vrot.lane.b32.xlu1 %v1936_v35, %s2098_s3 }
 0x212   :  { %v193_v36 = vpop.permute.xlu1 %192 }
 0x213   :  { %v195_v37 = vmul.f32 %v193_v36, %v175_v27 }
 0x215   :  { %197 = vrot.lane.b32.xlu1 %v195_v37, %s2099_s15 }
 0x287   :  { %v198_v39 = vpop.permute.xlu1 %197 }
 0x288   :  { %1851 = vmatmul.msk.f32.vlgmr.msra.gmra.mxu2 %vm64_vm0, %v198_v39 }
 0x289   :  { %597 = vmatpush.msra.mxu2 %v2180_v0 }
 0x28b   :  { %598 = vmatpush.msra.mxu2 %v2185_v1 }
 0x28d   :  { %599 = vmatpush.msra.mxu2 %v2197_v4 }
 0x28f   :  { %600 = vmatpush.msra.mxu2 %v2202_v5  ;;  %v112_v5 = vpop.f32.mrf.mxu0 }
 0x290   :  { %v113_v6 = vadd.f32 %v2245_v10, %v112_v5 }
 0x297   :  { %v115_v36 = vpop.f32.mrf.mxu0 }
 0x298   :  { %v116_v37 = vadd.f32 %v2245_v10, %v115_v36 }
 0x30b   :  { %v218_v42 = vpop.f32.mrf.mxu2 }
 0x30c   :  { %v221_v43 = vadd.f32 %v218_v42, %v110_v41 }
 0x30e   :  { %v1852_v44 = vmul.f32 -1.442695, %v221_v43 }
 0x310   :  { %1937 = vpow2.f32 %v1852_v44 }
 0x316   :  { %v1938_v45 = vpop.eup %1937 }
 0x317   :  { %v225_v46 = vadd.f32 1.0, %v1938_v45 }
 0x319   :  { %1939 = vrcp.f32 %v225_v46  ;;  %v237_v50 = vand.u32 2147483648, %v225_v46  ;;  %v235_v52 = vand.u32 2147483647, %v225_v46  ;;  %vm231_vm6 = vweird.f32 %v225_v46 }
 0x31b   :  { %v238_v54 = vor.u32 1.1754944e-38, %v237_v50  ;;  %vm236_vm8 = vcmp.eq.f32.partialorder %v235_v52, 8.507059e+37 }
 0x31f   :  { %v1940_v47 = vpop.eup %1939 }
 0x320   :  { %v227_v48 = vmul.f32 %v1940_v47, %v225_v46  ;;  %vm232_vm5 = vweird.f32 %v1940_v47 }
 0x321   :  { %vm233_vm7 = vmor %vm231_vm6, %vm232_vm5 }
 0x322   :  { %v228_v49 = vsub.f32 1.0, %v227_v48 }
 0x324   :  { %v229_v51 = vmul.f32 %v1940_v47, %v228_v49 }
 0x326   :  { %v230_v53 = vadd.f32 %v1940_v47, %v229_v51 }
 0x328   :  { %v234_v55 = vsel %vm233_vm7, %v1940_v47, %v230_v53 }
 0x329   :  { %v239_v56 = vsel %vm236_vm8, %v238_v54, %v234_v55 }
 0x32a   :  { %v241_v57 = vmul.f32 2.0, %v239_v56  ;;  %v243_v61 = vmul.f32 %v239_v56, %v189_v34 }
 0x32c   :  { %v1853_v58 = vadd.f32 -1.0, %v241_v57 }
 0x32e   :  { %245 = vrot.lane.b32.xlu2 %v1853_v58, %s2098_s3 }
 0x388   :  { %v246_v59 = vpop.permute.xlu2 %245 }
 0x389   :  { %v248_v60 = vmul.f32 %v246_v59, %v239_v56 }
 0x38b   :  { %250 = vrot.lane.b32.xlu2 %v248_v60, %s2099_s15 }
 0x3e5   :  { %v251_v62 = vpop.permute.xlu2 %250 }
 0x3e6   :  { %v253_v63 = vadd.f32 %v251_v62, %v243_v61 }
 0x3e8   :  { %1941 = vtanh.f32 %v253_v63 }
 0x3ee   :  { %v1942_v0 = vpop.eup %1941 }
 0x3ef   :  { %256 = vrot.lane.b32.xlu0 %v1942_v0, %s2098_s3 }
 0x461   :  { %v257_v1 = vpop.permute.xlu0 %256 }
 0x462   :  { %v259_v2 = vmul.f32 %v257_v1, %v239_v56 }
 0x464   :  { %261 = vrot.lane.b32.xlu1 %v259_v2, %s2099_s15 }
 0x4d6   :  { %v262_v4 = vpop.permute.xlu1 %261 }
 0x4d7   :  { %1854 = vmatmul.msk.f32.vlgmr.msrb.gmra.mxu3 %vm64_vm0, %v262_v4 }
 0x55a   :  { %v282_v7 = vpop.f32.mrf.mxu3 }
 0x55b   :  { %v285_v8 = vadd.f32 %v282_v7, %v113_v6 }
 0x55d   :  { %v1855_v11 = vmul.f32 -1.442695, %v285_v8 }
 0x55f   :  { %1943 = vpow2.f32 %v1855_v11 }
 0x565   :  { %v1944_v12 = vpop.eup %1943 }
 0x566   :  { %v289_v13 = vadd.f32 1.0, %v1944_v12 }
 0x568   :  { %1945 = vrcp.f32 %v289_v13  ;;  %v301_v17 = vand.u32 2147483648, %v289_v13  ;;  %v299_v19 = vand.u32 2147483647, %v289_v13  ;;  %vm295_vm10 = vweird.f32 %v289_v13 }
 0x56a   :  { %v302_v21 = vor.u32 1.1754944e-38, %v301_v17  ;;  %vm300_vm12 = vcmp.eq.f32.partialorder %v299_v19, 8.507059e+37 }
 0x56e   :  { %v1946_v14 = vpop.eup %1945 }
 0x56f   :  { %v291_v15 = vmul.f32 %v1946_v14, %v289_v13  ;;  %vm296_vm9 = vweird.f32 %v1946_v14 }
 0x570   :  { %vm297_vm11 = vmor %vm295_vm10, %vm296_vm9 }
 0x571   :  { %v292_v16 = vsub.f32 1.0, %v291_v15 }
 0x573   :  { %v293_v18 = vmul.f32 %v1946_v14, %v292_v16 }
 0x575   :  { %v294_v20 = vadd.f32 %v1946_v14, %v293_v18 }
 0x577   :  { %v298_v22 = vsel %vm297_vm11, %v1946_v14, %v294_v20 }
 0x578   :  { %v303_v23 = vsel %vm300_vm12, %v302_v21, %v298_v22 }
 0x579   :  { %v305_v24 = vmul.f32 2.0, %v303_v23  ;;  %v307_v28 = vmul.f32 %v303_v23, %v253_v63  ;;  %v52_v63 = vld [vmem:[%s2738_s0 + $0x20] sm:$0xff] }
 0x57a   :  { %1845 = vmatmul.msk.f32.gmra.mxu0 %vm64_vm0, %v52_v63 }
 0x57b   :  { %v1856_v25 = vadd.f32 -1.0, %v305_v24 }
 0x57d   :  { %309 = vrot.lane.b32.xlu2 %v1856_v25, %s2098_s3 }
 0x5d7   :  { %v310_v26 = vpop.permute.xlu2 %309 }
 0x5d8   :  { %v312_v27 = vmul.f32 %v310_v26, %v303_v23 }
 0x5da   :  { %314 = vrot.lane.b32.xlu0 %v312_v27, %s2099_s15 }
 0x5f7   :  { %v118_v1 = vpop.f32.mrf.mxu0 }
 0x5f8   :  { %v119_v2 = vadd.f32 %v2245_v10, %v118_v1 }
 0x64c   :  { %v315_v29 = vpop.permute.xlu0 %314 }
 0x64d   :  { %v317_v30 = vadd.f32 %v315_v29, %v307_v28 }
 0x64f   :  { %1947 = vtanh.f32 %v317_v30 }
 0x655   :  { %v1948_v31 = vpop.eup %1947 }
 0x656   :  { %320 = vrot.lane.b32.xlu1 %v1948_v31, %s2098_s3 }
 0x6c8   :  { %v321_v33 = vpop.permute.xlu1 %320 }
 0x6c9   :  { %v323_v34 = vmul.f32 %v321_v33, %v303_v23 }
 0x6cb   :  { %325 = vrot.lane.b32.xlu2 %v323_v34, %s2099_s15 }
 0x725   :  { %v326_v35 = vpop.permute.xlu2 %325 }
 0x726   :  { %1857 = vmatmul.msk.f32.vlgmr.msra.gmra.mxu1 %vm64_vm0, %v326_v35 }
 0x7a3   :  { %v346_v38 = vpop.f32.mrf.mxu1 }
 0x7a4   :  { %v349_v39 = vadd.f32 %v346_v38, %v116_v37 }
 0x7a6   :  { %v1858_v40 = vmul.f32 -1.442695, %v349_v39 }
 0x7a8   :  { %1949 = vpow2.f32 %v1858_v40 }
 0x7ae   :  { %v1950_v41 = vpop.eup %1949 }
 0x7af   :  { %v353_v42 = vadd.f32 1.0, %v1950_v41 }
 0x7b1   :  { %1951 = vrcp.f32 %v353_v42  ;;  %v365_v46 = vand.u32 2147483648, %v353_v42  ;;  %v363_v48 = vand.u32 2147483647, %v353_v42  ;;  %vm359_vm14 = vweird.f32 %v353_v42 }
 0x7b3   :  { %v366_v50 = vor.u32 1.1754944e-38, %v365_v46  ;;  %vm364_vm1 = vcmp.eq.f32.partialorder %v363_v48, 8.507059e+37 }
 0x7b7   :  { %v1952_v43 = vpop.eup %1951 }
 0x7b8   :  { %v355_v44 = vmul.f32 %v1952_v43, %v353_v42  ;;  %vm360_vm13 = vweird.f32 %v1952_v43 }
 0x7b9   :  { %vm361_vm15 = vmor %vm359_vm14, %vm360_vm13 }
 0x7ba   :  { %v356_v45 = vsub.f32 1.0, %v355_v44 }
 0x7bc   :  { %v357_v47 = vmul.f32 %v1952_v43, %v356_v45 }
 0x7be   :  { %v358_v49 = vadd.f32 %v1952_v43, %v357_v47 }
 0x7c0   :  { %v362_v51 = vsel %vm361_vm15, %v1952_v43, %v358_v49 }
 0x7c1   :  { %v367_v52 = vsel %vm364_vm1, %v366_v50, %v362_v51 }
 0x7c2   :  { %v369_v53 = vmul.f32 2.0, %v367_v52  ;;  %v371_v57 = vmul.f32 %v367_v52, %v317_v30  ;;  %v53_v30 = vld [vmem:[%s2738_s0 + $0x28] sm:$0xff] }
 0x7c3   :  { %1846 = vmatmul.msk.f32.gmra.mxu0 %vm64_vm0, %v53_v30 }
 0x7c4   :  { %v1859_v54 = vadd.f32 -1.0, %v369_v53 }
 0x7c6   :  { %373 = vrot.lane.b32.xlu0 %v1859_v54, %s2098_s3 }
 0x838   :  { %v374_v55 = vpop.permute.xlu0 %373 }
 0x839   :  { %v376_v56 = vmul.f32 %v374_v55, %v367_v52 }
 0x83b   :  { %378 = vrot.lane.b32.xlu1 %v376_v56, %s2099_s15 }
 0x840   :  { %v121_v32 = vpop.f32.mrf.mxu0 }
 0x841   :  { %v122_v33 = vadd.f32 %v2245_v10, %v121_v32 }
 0x8ad   :  { %v379_v58 = vpop.permute.xlu1 %378 }
 0x8ae   :  { %v381_v59 = vadd.f32 %v379_v58, %v371_v57  ;;  %v54_v57 = vld [vmem:[%s2738_s0 + $0x30] sm:$0xff] }
 0x8af   :  { %1847 = vmatmul.msk.f32.gmra.mxu0 %vm64_vm0, %v54_v57 }
 0x8b0   :  { %1953 = vtanh.f32 %v381_v59 }
 0x8b6   :  { %v1954_v60 = vpop.eup %1953 }
 0x8b7   :  { %384 = vrot.lane.b32.xlu2 %v1954_v60, %s2098_s3 }
 0x911   :  { %v385_v61 = vpop.permute.xlu2 %384 }
 0x912   :  { %v387_v62 = vmul.f32 %v385_v61, %v367_v52 }
 0x914   :  { %389 = vrot.lane.b32.xlu0 %v387_v62, %s2099_s15 }
 0x92c   :  { %v124_v61 = vpop.f32.mrf.mxu0 }
 0x92d   :  { %v125_v62 = vadd.f32 %v2245_v10, %v124_v61 }
 0x986   :  { %v390_v0 = vpop.permute.xlu0 %389 }
 0x987   :  { %1860 = vmatmul.msk.f32.vlgmr.msrb.gmra.mxu2 %vm64_vm0, %v390_v0 }
 0xa0a   :  { %v410_v3 = vpop.f32.mrf.mxu2 }
 0xa0b   :  { %v413_v4 = vadd.f32 %v410_v3, %v119_v2 }
 0xa0d   :  { %v1861_v5 = vmul.f32 -1.442695, %v413_v4 }
 0xa0f   :  { %1955 = vpow2.f32 %v1861_v5 }
 0xa15   :  { %v1956_v6 = vpop.eup %1955 }
 0xa16   :  { %v417_v7 = vadd.f32 1.0, %v1956_v6 }
 0xa18   :  { %1957 = vrcp.f32 %v417_v7  ;;  %v429_v13 = vand.u32 2147483648, %v417_v7  ;;  %v427_v15 = vand.u32 2147483647, %v417_v7  ;;  %vm423_vm3 = vweird.f32 %v417_v7 }
 0xa1a   :  { %v430_v17 = vor.u32 1.1754944e-38, %v429_v13  ;;  %vm428_vm5 = vcmp.eq.f32.partialorder %v427_v15, 8.507059e+37 }
 0xa1e   :  { %v1958_v8 = vpop.eup %1957 }
 0xa1f   :  { %v419_v11 = vmul.f32 %v1958_v8, %v417_v7  ;;  %vm424_vm2 = vweird.f32 %v1958_v8 }
 0xa20   :  { %vm425_vm4 = vmor %vm423_vm3, %vm424_vm2 }
 0xa21   :  { %v420_v12 = vsub.f32 1.0, %v419_v11 }
 0xa23   :  { %v421_v14 = vmul.f32 %v1958_v8, %v420_v12 }
 0xa25   :  { %v422_v16 = vadd.f32 %v1958_v8, %v421_v14 }
 0xa27   :  { %v426_v18 = vsel %vm425_vm4, %v1958_v8, %v422_v16 }
 0xa28   :  { %v431_v19 = vsel %vm428_vm5, %v430_v17, %v426_v18 }
 0xa29   :  { %v433_v20 = vmul.f32 2.0, %v431_v19  ;;  %v435_v24 = vmul.f32 %v431_v19, %v381_v59 }
 0xa2b   :  { %v1862_v21 = vadd.f32 -1.0, %v433_v20 }
 0xa2d   :  { %437 = vrot.lane.b32.xlu1 %v1862_v21, %s2098_s3 }
 0xa9f   :  { %v438_v22 = vpop.permute.xlu1 %437 }
 0xaa0   :  { %v440_v23 = vmul.f32 %v438_v22, %v431_v19 }
 0xaa2   :  { %442 = vrot.lane.b32.xlu2 %v440_v23, %s2099_s15 }
 0xafc   :  { %v443_v25 = vpop.permute.xlu2 %442 }
 0xafd   :  { %v445_v26 = vadd.f32 %v443_v25, %v435_v24 }
 0xaff   :  { %1959 = vtanh.f32 %v445_v26 }
 0xb05   :  { %v1960_v27 = vpop.eup %1959 }
 0xb06   :  { %448 = vrot.lane.b32.xlu0 %v1960_v27, %s2098_s3 }
 0xb78   :  { %v449_v28 = vpop.permute.xlu0 %448 }
 0xb79   :  { %v451_v29 = vmul.f32 %v449_v28, %v431_v19 }
 0xb7b   :  { %453 = vrot.lane.b32.xlu1 %v451_v29, %s2099_s15 }
 0xbed   :  { %v454_v31 = vpop.permute.xlu1 %453 }
 0xbee   :  { %1863 = vmatmul.msk.f32.vlgmr.msra.gmra.mxu3 %vm64_vm0, %v454_v31 }
 0xc71   :  { %v474_v34 = vpop.f32.mrf.mxu3 }
 0xc72   :  { %v477_v35 = vadd.f32 %v474_v34, %v122_v33 }
 0xc74   :  { %v1864_v36 = vmul.f32 -1.442695, %v477_v35 }
 0xc76   :  { %1961 = vpow2.f32 %v1864_v36 }
 0xc7c   :  { %v1962_v37 = vpop.eup %1961 }
 0xc7d   :  { %v481_v38 = vadd.f32 1.0, %v1962_v37 }
 0xc7f   :  { %1963 = vrcp.f32 %v481_v38  ;;  %v493_v42 = vand.u32 2147483648, %v481_v38  ;;  %v491_v44 = vand.u32 2147483647, %v481_v38  ;;  %vm487_vm7 = vweird.f32 %v481_v38 }
 0xc81   :  { %v494_v46 = vor.u32 1.1754944e-38, %v493_v42  ;;  %vm492_vm9 = vcmp.eq.f32.partialorder %v491_v44, 8.507059e+37 }
 0xc85   :  { %v1964_v39 = vpop.eup %1963 }
 0xc86   :  { %v483_v40 = vmul.f32 %v1964_v39, %v481_v38  ;;  %vm488_vm6 = vweird.f32 %v1964_v39 }
 0xc87   :  { %vm489_vm8 = vmor %vm487_vm7, %vm488_vm6 }
 0xc88   :  { %v484_v41 = vsub.f32 1.0, %v483_v40 }
 0xc8a   :  { %v485_v43 = vmul.f32 %v1964_v39, %v484_v41 }
 0xc8c   :  { %v486_v45 = vadd.f32 %v1964_v39, %v485_v43 }
 0xc8e   :  { %v490_v47 = vsel %vm489_vm8, %v1964_v39, %v486_v45 }
 0xc8f   :  { %v495_v48 = vsel %vm492_vm9, %v494_v46, %v490_v47 }
 0xc90   :  { %v497_v49 = vmul.f32 2.0, %v495_v48  ;;  %v499_v53 = vmul.f32 %v495_v48, %v445_v26  ;;  %v55_v26 = vld [vmem:[%s2738_s0 + $0x38] sm:$0xff] }
 0xc91   :  { %1848 = vmatmul.msk.f32.gmra.mxu0 %vm64_vm0, %v55_v26 }
 0xc92   :  { %v1865_v50 = vadd.f32 -1.0, %v497_v49 }
 0xc94   :  { %501 = vrot.lane.b32.xlu2 %v1865_v50, %s2098_s3 }
 0xcee   :  { %v502_v51 = vpop.permute.xlu2 %501 }
 0xcef   :  { %v504_v52 = vmul.f32 %v502_v51, %v495_v48 }
 0xcf1   :  { %506 = vrot.lane.b32.xlu0 %v504_v52, %s2099_s15  ;;  %v647_v52 = vld [vmem:[%s2742_s4 + $0x18] sm:$0xff] }
 0xcf2   :  { %681 = vmatpush.msrb.mxu3 %v647_v52  ;;  %769 = vmatpush.msrb.mxu2 %v647_v52 }
 0xd0e   :  { %v127_v28 = vpop.f32.mrf.mxu0 }
 0xd0f   :  { %v128_v29 = vadd.f32 %v2245_v10, %v127_v28 }
 0xd63   :  { %v507_v54 = vpop.permute.xlu0 %506 }
 0xd64   :  { %v509_v55 = vadd.f32 %v507_v54, %v499_v53  ;;  %v646_v53 = vld [vmem:[%s2742_s4 + $0x10] sm:$0xff]  ;;  %v645_v54 = vld [vmem:[%s2742_s4 + $0x8] sm:$0xff] }
 0xd65   :  { %682 = vmatpush.msrb.mxu3 %v646_v53  ;;  %770 = vmatpush.msrb.mxu2 %v646_v53 }
 0xd66   :  { %1965 = vtanh.f32 %v509_v55 }
 0xd67   :  { %683 = vmatpush.msrb.mxu3 %v645_v54  ;;  %771 = vmatpush.msrb.mxu2 %v645_v54 }
 0xd6c   :  { %v1966_v56 = vpop.eup %1965 }
 0xd6d   :  { %512 = vrot.lane.b32.xlu1 %v1966_v56, %s2098_s3  ;;  %v653_v56 = vlaneseq }
 0xd6f   :  { %v2338_v57 = vshrl.u32 %v653_v56, 7 }
 0xd71   :  { %vm655_vm3 = vcmp.eq.s32.totalorder %v2338_v57, 0  ;;  %vm658_vm4 = vcmp.eq.s32.totalorder %v2338_v57, 1 }
 0xddf   :  { %v513_v58 = vpop.permute.xlu1 %512 }
 0xde0   :  { %v515_v59 = vmul.f32 %v513_v58, %v495_v48 }
 0xde2   :  { %517 = vrot.lane.b32.xlu2 %v515_v59, %s2099_s15 }
 0xe3c   :  { %v518_v60 = vpop.permute.xlu2 %517 }
 0xe3d   :  { %1866 = vmatmul.msk.f32.vlgmr.msrb.gmra.mxu1 %vm64_vm0, %v518_v60 }
 0xeba   :  { %v538_v63 = vpop.f32.mrf.mxu1 }
 0xebb   :  { %v541_v0 = vadd.f32 %v538_v63, %v125_v62 }
 0xebd   :  { %v1867_v1 = vmul.f32 -1.442695, %v541_v0  ;;  %v651_v0 = vld [vmem:[%s2743_s5 + $0x18] sm:$0xff] }
 0xebe   :  { %701 = vmatpush.msra.mxu1 %v651_v0 }
 0xebf   :  { %1967 = vpow2.f32 %v1867_v1  ;;  %v650_v1 = vld [vmem:[%s2743_s5 + $0x10] sm:$0xff] }
 0xec0   :  { %702 = vmatpush.msra.mxu1 %v650_v1 }
 0xec5   :  { %v1968_v2 = vpop.eup %1967 }
 0xec6   :  { %v545_v3 = vadd.f32 1.0, %v1968_v2  ;;  %v649_v2 = vld [vmem:[%s2743_s5 + $0x8] sm:$0xff] }
 0xec7   :  { %703 = vmatpush.msra.mxu1 %v649_v2 }
 0xec8   :  { %1969 = vrcp.f32 %v545_v3  ;;  %v557_v7 = vand.u32 2147483648, %v545_v3  ;;  %v555_v11 = vand.u32 2147483647, %v545_v3  ;;  %vm551_vm11 = vweird.f32 %v545_v3 }
 0xeca   :  { %v558_v13 = vor.u32 1.1754944e-38, %v557_v7  ;;  %vm556_vm13 = vcmp.eq.f32.partialorder %v555_v11, 8.507059e+37 }
 0xece   :  { %v1970_v4 = vpop.eup %1969 }
 0xecf   :  { %v547_v5 = vmul.f32 %v1970_v4, %v545_v3  ;;  %vm552_vm10 = vweird.f32 %v1970_v4  ;;  %v648_v3 = vld [vmem:[%s2743_s5] sm:$0xff]  ;;  %s1832_s5 = sshll.u32 %s2752_s14, 4  ;;  %s1833_s5 = int_to_ptr.hbm [resolvable:$true] %s1832_s5 }
 0xed0   :  { %vm553_vm12 = vmor %vm551_vm11, %vm552_vm10  ;;  %704 = vmatpush.msra.mxu1 %v648_v3 }
 0xed1   :  { %v548_v6 = vsub.f32 1.0, %v547_v5  ;;  %705 = vmatmul.f32.vlgmr.msra.gmra.mxu1 %v2097_v9  ;;  %v1928_v5 = vld [vmem:[%s2744_s6] ss:$0 sm:$0xff] }
 0xed3   :  { %v549_v8 = vmul.f32 %v1970_v4, %v548_v6 }
 0xed5   :  { %v550_v12 = vadd.f32 %v1970_v4, %v549_v8 }
 0xed7   :  { %v554_v14 = vsel %vm553_vm12, %v1970_v4, %v550_v12 }
 0xed8   :  { %v559_v15 = vsel %vm556_vm13, %v558_v13, %v554_v14  ;;  %vm849_vm13 = vcmp.eq.s32.totalorder %v2338_v57, 2 }
 0xed9   :  { %v561_v16 = vmul.f32 2.0, %v559_v15  ;;  %v563_v20 = vmul.f32 %v559_v15, %v509_v55  ;;  %v644_v55 = vld [vmem:[%s2742_s4] sm:$0xff] }
 0xeda   :  { %684 = vmatpush.msrb.mxu3 %v644_v55  ;;  %772 = vmatpush.msrb.mxu2 %v644_v55 }
 0xedb   :  { %v1868_v17 = vadd.f32 -1.0, %v561_v16 }
 0xedc   :  { %794 = vmatpush.msra.mxu3 %v651_v0 }
 0xedd   :  { %565 = vrot.lane.b32.xlu0 %v1868_v17, %s2098_s3 }
 0xede   :  { %795 = vmatpush.msra.mxu3 %v650_v1 }
 0xee0   :  { %796 = vmatpush.msra.mxu3 %v649_v2  ;;  %v2391_v2 = vld [vmem:[%s2748_s10 + $0x30] sm:$0xff] }
 0xee2   :  { %797 = vmatpush.msra.mxu3 %v648_v3  ;;  %v2396_v3 = vld [vmem:[%s2748_s10 + $0x20] sm:$0xff] }
 0xf4e   :  { %v706_v7 = vpop.f32.mrf.mxu1 }
 0xf4f   :  { %v566_v18 = vpop.permute.xlu0 %565 }
 0xf50   :  { %v568_v19 = vmul.f32 %v566_v18, %v559_v15 }
 0xf52   :  { %570 = vrot.lane.b32.xlu1 %v568_v19, %s2099_s15 }
 0xfc4   :  { %v571_v21 = vpop.permute.xlu1 %570 }
 0xfc5   :  { %v573_v22 = vadd.f32 %v571_v21, %v563_v20 }
 0xfc7   :  { %1971 = vtanh.f32 %v573_v22 }
 0xfcd   :  { %v1972_v23 = vpop.eup %1971 }
 0xfce   :  { %576 = vrot.lane.b32.xlu2 %v1972_v23, %s2098_s3 }
0x1028   :  { %v577_v24 = vpop.permute.xlu2 %576 }
0x1029   :  { %v579_v25 = vmul.f32 %v577_v24, %v559_v15 }
0x102b   :  { %581 = vrot.lane.b32.xlu0 %v579_v25, %s2099_s15 }
0x109d   :  { %v582_v27 = vpop.permute.xlu0 %581 }
0x109e   :  { %1869 = vmatmul.msk.f32.vlgmr.msra.gmra.mxu2 %vm64_vm0, %v582_v27 }
0x109f   :  { %968 = vmatpush.msra.mxu2 %v2391_v2 }
0x10a1   :  { %969 = vmatpush.msra.mxu2 %v2396_v3 }
0x1121   :  { %v602_v30 = vpop.f32.mrf.mxu2 }
0x1122   :  { %v605_v31 = vadd.f32 %v602_v30, %v128_v29 }
0x1124   :  { %v1870_v32 = vmul.f32 -1.442695, %v605_v31 }
0x1126   :  { %1973 = vpow2.f32 %v1870_v32 }
0x112c   :  { %v1974_v33 = vpop.eup %1973 }
0x112d   :  { %v609_v34 = vadd.f32 1.0, %v1974_v33 }
0x112f   :  { %1975 = vrcp.f32 %v609_v34  ;;  %v621_v38 = vand.u32 2147483648, %v609_v34  ;;  %v619_v40 = vand.u32 2147483647, %v609_v34  ;;  %vm615_vm15 = vweird.f32 %v609_v34 }
0x1131   :  { %v622_v42 = vor.u32 1.1754944e-38, %v621_v38  ;;  %vm620_vm2 = vcmp.eq.f32.partialorder %v619_v40, 8.507059e+37 }
0x1135   :  { %v1976_v35 = vpop.eup %1975 }
0x1136   :  { %v611_v36 = vmul.f32 %v1976_v35, %v609_v34  ;;  %vm616_vm14 = vweird.f32 %v1976_v35 }
0x1137   :  { %vm617_vm1 = vmor %vm615_vm15, %vm616_vm14  ;;  %vm854_vm14 = vcmp.eq.s32.totalorder %v2338_v57, 3  ;;  %v2489_v57 = vld [vmem:[%s2748_s10 + $0x18] sm:$0xff] }
0x1138   :  { %v612_v37 = vsub.f32 1.0, %v611_v36 }
0x113a   :  { %v613_v39 = vmul.f32 %v1976_v35, %v612_v37 }
0x113c   :  { %v614_v41 = vadd.f32 %v1976_v35, %v613_v39 }
0x113e   :  { %v618_v43 = vsel %vm617_vm1, %v1976_v35, %v614_v41 }
0x113f   :  { %v623_v10 = vsel %vm620_vm2, %v622_v42, %v618_v43 }
0x1140   :  { %v625_v44 = vmul.f32 2.0, %v623_v10  ;;  %v627_v48 = vmul.f32 %v623_v10, %v573_v22 }
0x1142   :  { %v1871_v45 = vadd.f32 -1.0, %v625_v44 }
0x1144   :  { %629 = vrot.lane.b32.xlu1 %v1871_v45, %s2098_s3 }
0x11b6   :  { %v630_v46 = vpop.permute.xlu1 %629 }
0x11b7   :  { %v632_v47 = vmul.f32 %v630_v46, %v623_v10 }
0x11b9   :  { %634 = vrot.lane.b32.xlu2 %v632_v47, %s2099_s15 }
0x1213   :  { %v635_v49 = vpop.permute.xlu2 %634 }
0x1214   :  { %v637_v50 = vadd.f32 %v635_v49, %v627_v48 }
0x1216   :  { %1977 = vtanh.f32 %v637_v50 }
0x121c   :  { %v1978_v51 = vpop.eup %1977 }
0x121d   :  { %640 = vrot.lane.b32.xlu0 %v1978_v51, %s2098_s3 }
0x128f   :  { %v641_v58 = vpop.permute.xlu0 %640 }
0x1290   :  { %v643_v59 = vmul.f32 %v641_v58, %v623_v10 }
0x1292   :  { %v656_v60 = vperm.slane %v643_v59, 0  ;;  %v659_v61 = vperm.slane %v643_v59, 3  ;;  %v748_v26 = vperm.slane %v643_v59, 1  ;;  %v750_v27 = vperm.slane %v643_v59, 4 }
0x1294   :  { %v657_v62 = vsel %vm655_vm3, %v656_v60, 0.0  ;;  %v749_v28 = vsel %vm655_vm3, %v748_v26, 0.0 }
0x1295   :  { %v660_v63 = vsel %vm658_vm4, %v659_v61, %v657_v62  ;;  %v751_v29 = vsel %vm658_vm4, %v750_v27, %v749_v28 }
0x1296   :  { %665 = vrot.lane.b32.xlu1 %v660_v63, %s2099_s15 }
0x1308   :  { %v666_v4 = vpop.permute.xlu1 %665 }
0x1309   :  { %1872 = vmatmul.msk.f32.vlgmr.msrb.gmra.mxu3 %vm64_vm0, %v666_v4  ;;  %v870_v4 = vld [vmem:[%s2746_s8 + $0x18] sm:$0xff] }
0x130a   :  { %911 = vmatpush.msrb.mxu1 %v870_v4  ;;  %1032 = vmatpush.msrb.mxu3 %v2391_v2 }
0x130c   :  { %1033 = vmatpush.msrb.mxu3 %v2396_v3 }
0x138c   :  { %v686_v6 = vpop.f32.mrf.mxu3 }
0x138d   :  { %v687_v8 = vadd.f32 %v1928_v5, %v686_v6  ;;  %v2408_v6 = vld [vmem:[%s2748_s10 + $0x10] sm:$0xff] }
0x138e   :  { %970 = vmatpush.msra.mxu2 %v2408_v6  ;;  %1034 = vmatpush.msrb.mxu3 %v2408_v6 }
0x138f   :  { %v709_v11 = vadd.f32 %v706_v7, %v687_v8  ;;  %v2415_v7 = vld [vmem:[%s2748_s10] sm:$0xff] }
0x1390   :  { %971 = vmatpush.msra.mxu2 %v2415_v7  ;;  %1035 = vmatpush.msrb.mxu3 %v2415_v7 }
0x1391   :  { %v1873_v12 = vmul.f32 -1.442695, %v709_v11 }
0x1393   :  { %1979 = vpow2.f32 %v1873_v12 }
0x1399   :  { %v1980_v13 = vpop.eup %1979 }
0x139a   :  { %v713_v14 = vadd.f32 1.0, %v1980_v13 }
0x139c   :  { %1981 = vrcp.f32 %v713_v14  ;;  %v725_v9 = vand.u32 2147483648, %v713_v14  ;;  %v723_v19 = vand.u32 2147483647, %v713_v14  ;;  %vm719_vm6 = vweird.f32 %v713_v14 }
0x139e   :  { %v726_v21 = vor.u32 1.1754944e-38, %v725_v9  ;;  %vm724_vm8 = vcmp.eq.f32.partialorder %v723_v19, 8.507059e+37  ;;  %v868_v19 = vld [vmem:[%s2746_s8 + $0x8] sm:$0xff] }
0x13a2   :  { %v1982_v15 = vpop.eup %1981 }
0x13a3   :  { %v715_v16 = vmul.f32 %v1982_v15, %v713_v14  ;;  %vm720_vm5 = vweird.f32 %v1982_v15 }
0x13a4   :  { %vm721_vm7 = vmor %vm719_vm6, %vm720_vm5 }
0x13a5   :  { %v716_v17 = vsub.f32 1.0, %v715_v16 }
0x13a7   :  { %v717_v18 = vmul.f32 %v1982_v15, %v716_v17 }
0x13a9   :  { %v718_v20 = vadd.f32 %v1982_v15, %v717_v18 }
0x13ab   :  { %v722_v22 = vsel %vm721_vm7, %v1982_v15, %v718_v20  ;;  %v867_v20 = vld [vmem:[%s2746_s8] sm:$0xff] }
0x13ac   :  { %v727_v23 = vsel %vm724_vm8, %v726_v21, %v722_v22  ;;  %v859_v21 = vld [vmem:[%s2745_s7] sm:$0xff] }
0x13ad   :  { %v729_v24 = vmul.f32 2.0, %v727_v23  ;;  %v731_v33 = vmul.f32 0.0, %v727_v23 }
0x13af   :  { %v1874_v25 = vadd.f32 -1.0, %v729_v24 }
0x13b1   :  { %733 = vrot.lane.b32.xlu2 %v1874_v25, %s2098_s3 }
0x13b9   :  { %753 = vrot.lane.b32.xlu2 %v751_v29, %s2099_s15 }
0x140b   :  { %v734_v30 = vpop.permute.xlu2 %733 }
0x140c   :  { %v736_v31 = vmul.f32 %v734_v30, %v727_v23 }
0x140e   :  { %738 = vrot.lane.b32.xlu0 %v736_v31, %s2099_s15 }
0x1413   :  { %v754_v32 = vpop.permute.xlu2 %753 }
0x1414   :  { %1875 = vmatmul.msk.f32.vlgmr.msrb.gmra.mxu2 %vm64_vm0, %v754_v32 }
0x1480   :  { %v739_v34 = vpop.permute.xlu0 %738 }
0x1481   :  { %v2372_v35 = vadd.f32 %v739_v34, %v731_v33 }
0x1483   :  { %1983 = vtanh.f32 %v2372_v35 }
0x1489   :  { %v1984_v36 = vpop.eup %1983 }
0x148a   :  { %744 = vrot.lane.b32.xlu1 %v1984_v36, %s2098_s3 }
0x1497   :  { %v774_v40 = vpop.f32.mrf.mxu2 }
0x1498   :  { %v775_v41 = vadd.f32 %v1928_v5, %v774_v40  ;;  %v869_v5 = vld [vmem:[%s2746_s8 + $0x10] sm:$0xff] }
0x1499   :  { %912 = vmatpush.msrb.mxu1 %v869_v5 }
0x149b   :  { %913 = vmatpush.msrb.mxu1 %v868_v19 }
0x149d   :  { %914 = vmatpush.msrb.mxu1 %v867_v20 }
0x149e   :  { %1879 = vmatmul.msk.f32.vlgmr.msrb.gmra.mxu1 %vm64_vm0, %v859_v21 }
0x14fc   :  { %v745_v37 = vpop.permute.xlu1 %744 }
0x14fd   :  { %v2376_v38 = vmul.f32 %v745_v37, %v727_v23  ;;  %v2453_v23 = vld [vmem:[%s2747_s9] ss:$0 sm:$0xff]  ;;  %s2101_s9 = smov [#allocation2]  }
0x14ff   :  { %778 = vrot.lane.b32.xlu0 %v2376_v38, %s2099_s15  ;;  %v841_v8 = vperm.slane %v2376_v38, 0  ;;  %v850_v15 = vperm.slane %v2376_v38, 1 }
0x1501   :  { %v842_v14 = vsel %vm655_vm3, %v841_v8, 0.0 }
0x151b   :  { %v916_v24 = vpop.f32.mrf.mxu1 }
0x151c   :  { %v917_v25 = vadd.f32 %v2453_v23, %v916_v24 }
0x1571   :  { %v779_v39 = vpop.permute.xlu0 %778 }
0x1572   :  { %1876 = vmatmul.msk.f32.vlgmr.msra.gmra.mxu3 %vm64_vm0, %v779_v39 }
0x1573   :  { %1142 = vmatpush.msra.mxu3 %v2391_v2 }
0x1575   :  { %1143 = vmatpush.msra.mxu3 %v2396_v3 }
0x1577   :  { %1144 = vmatpush.msra.mxu3 %v2408_v6 }
0x1579   :  { %1145 = vmatpush.msra.mxu3 %v2415_v7 }
0x15f5   :  { %v799_v42 = vpop.f32.mrf.mxu3 }
0x15f6   :  { %v802_v43 = vadd.f32 %v799_v42, %v775_v41 }
0x15f8   :  { %v1877_v10 = vmul.f32 -1.442695, %v802_v43 }
0x15fa   :  { %1985 = vpow2.f32 %v1877_v10 }
0x1600   :  { %v1986_v44 = vpop.eup %1985 }
0x1601   :  { %v806_v45 = vadd.f32 1.0, %v1986_v44 }
0x1603   :  { %1987 = vrcp.f32 %v806_v45  ;;  %v818_v49 = vand.u32 2147483648, %v806_v45  ;;  %v816_v51 = vand.u32 2147483647, %v806_v45  ;;  %vm812_vm10 = vweird.f32 %v806_v45 }
0x1605   :  { %v819_v53 = vor.u32 1.1754944e-38, %v818_v49  ;;  %vm817_vm12 = vcmp.eq.f32.partialorder %v816_v51, 8.507059e+37  ;;  %v852_v49 = vperm.slane %v2372_v35, 1 }
0x1609   :  { %v1988_v46 = vpop.eup %1987 }
0x160a   :  { %v808_v47 = vmul.f32 %v1988_v46, %v806_v45  ;;  %vm813_vm9 = vweird.f32 %v1988_v46  ;;  %v843_v45 = vperm.slane %v2372_v35, 0 }
0x160b   :  { %vm814_vm11 = vmor %vm812_vm10, %vm813_vm9 }
0x160c   :  { %v809_v48 = vsub.f32 1.0, %v808_v47  ;;  %v844_v47 = vsel %vm655_vm3, %v843_v45, 0.0 }
0x160e   :  { %v810_v50 = vmul.f32 %v1988_v46, %v809_v48 }
0x1610   :  { %v811_v52 = vadd.f32 %v1988_v46, %v810_v50 }
0x1612   :  { %v815_v54 = vsel %vm814_vm11, %v1988_v46, %v811_v52 }
0x1613   :  { %v820_v55 = vsel %vm817_vm12, %v819_v53, %v815_v54 }
0x1614   :  { %v822_v58 = vmul.f32 2.0, %v820_v55  ;;  %v824_v62 = vmul.f32 %v820_v55, %v2372_v35  ;;  %v2477_v35 = vld [vmem:[%s2748_s10 + $0x38] sm:$0xff] }
0x1615   :  { %1052 = vmatpush.msrb.mxu2 %v2477_v35  ;;  %1376 = vmatpush.msrb.mxu0 %v2477_v35 }
0x1616   :  { %v1878_v59 = vadd.f32 -1.0, %v822_v58 }
0x1618   :  { %826 = vrot.lane.b32.xlu1 %v1878_v59, %s2098_s3  ;;  %v2482_v59 = vld [vmem:[%s2748_s10 + $0x28] sm:$0xff] }
0x1619   :  { %1053 = vmatpush.msrb.mxu2 %v2482_v59  ;;  %1377 = vmatpush.msrb.mxu0 %v2482_v59 }
0x161b   :  { %1054 = vmatpush.msrb.mxu2 %v2489_v57  ;;  %1378 = vmatpush.msrb.mxu0 %v2489_v57 }
0x168a   :  { %v827_v60 = vpop.permute.xlu1 %826 }
0x168b   :  { %v829_v61 = vmul.f32 %v827_v60, %v820_v55  ;;  %v2496_v60 = vld [vmem:[%s2748_s10 + $0x8] sm:$0xff] }
0x168c   :  { %1055 = vmatpush.msrb.mxu2 %v2496_v60  ;;  %1379 = vmatpush.msrb.mxu0 %v2496_v60 }
0x168d   :  { %831 = vrot.lane.b32.xlu2 %v829_v61, %s2099_s15 }
0x168e   :  { %1570 = vmatpush.msra.mxu0 %v2391_v2 }
0x1690   :  { %1571 = vmatpush.msra.mxu0 %v2396_v3 }
0x1692   :  { %1572 = vmatpush.msra.mxu0 %v2408_v6 }
0x1694   :  { %1573 = vmatpush.msra.mxu0 %v2415_v7 }
0x16e7   :  { %v832_v63 = vpop.permute.xlu2 %831 }
0x16e8   :  { %v2384_v0 = vadd.f32 %v832_v63, %v824_v62  ;;  %v860_v63 = vld [vmem:[%s2745_s7 + $0x8] sm:$0xff] }
0x16e9   :  { %1880 = vmatmul.msk.f32.gmra.mxu1 %vm64_vm0, %v860_v63 }
0x16ea   :  { %1989 = vtanh.f32 %v2384_v0  ;;  %v847_v46 = vperm.slane %v2384_v0, 0  ;;  %v857_v51 = vperm.slane %v2384_v0, 1 }
0x16ec   :  { %v848_v48 = vsel %vm658_vm4, %v847_v46, %v844_v47 }
0x16ed   :  { %v853_v50 = vsel %vm849_vm13, %v852_v49, %v848_v48 }
0x16ee   :  { %v858_v52 = vsel %vm854_vm14, %v857_v51, %v853_v50 }
0x16f0   :  { %v1990_v1 = vpop.eup %1989 }
0x16f1   :  { %837 = vrot.lane.b32.xlu0 %v1990_v1, %s2098_s3 }
0x1763   :  { %v838_v11 = vpop.permute.xlu0 %837 }
0x1764   :  { %v840_v12 = vmul.f32 %v838_v11, %v820_v55 }
0x1766   :  { %v845_v13 = vperm.slane %v840_v12, 0  ;;  %v855_v16 = vperm.slane %v840_v12, 1  ;;  %v919_v1 = vpop.f32.mrf.mxu1 }
0x1767   :  { %v920_v4 = vadd.f32 %v2453_v23, %v919_v1 }
0x1768   :  { %v846_v17 = vsel %vm658_vm4, %v845_v13, %v842_v14 }
0x1769   :  { %v851_v9 = vsel %vm849_vm13, %v850_v15, %v846_v17 }
0x176a   :  { %v856_v18 = vsel %vm854_vm14, %v855_v16, %v851_v9 }
0x176b   :  { %952 = vrot.lane.b32.xlu1 %v856_v18, %s2099_s15 }
0x17dd   :  { %v953_v22 = vpop.permute.xlu1 %952 }
0x17de   :  { %1887 = vmatmul.msk.f32.vlgmr.msra.gmra.mxu2 %vm64_vm0, %v953_v22 }
0x17df   :  { %1162 = vmatpush.msra.mxu2 %v2477_v35 }
0x17e1   :  { %1163 = vmatpush.msra.mxu2 %v2482_v59 }
0x17e3   :  { %1164 = vmatpush.msra.mxu2 %v2489_v57 }
0x17e5   :  { %1165 = vmatpush.msra.mxu2 %v2496_v60 }
0x1861   :  { %v973_v26 = vpop.f32.mrf.mxu2 }
0x1862   :  { %v976_v27 = vadd.f32 %v973_v26, %v917_v25 }
0x1864   :  { %v1888_v28 = vmul.f32 -1.442695, %v976_v27 }
0x1866   :  { %1991 = vpow2.f32 %v1888_v28 }
0x186c   :  { %v1992_v29 = vpop.eup %1991 }
0x186d   :  { %v980_v30 = vadd.f32 1.0, %v1992_v29 }
0x186f   :  { %1993 = vrcp.f32 %v980_v30  ;;  %v992_v34 = vand.u32 2147483648, %v980_v30  ;;  %v990_v37 = vand.u32 2147483647, %v980_v30  ;;  %vm986_vm1 = vweird.f32 %v980_v30 }
0x1871   :  { %v993_v39 = vor.u32 1.1754944e-38, %v992_v34  ;;  %vm991_vm5 = vcmp.eq.f32.partialorder %v990_v37, 8.507059e+37  ;;  %v861_v34 = vld [vmem:[%s2745_s7 + $0x10] sm:$0xff] }
0x1872   :  { %1881 = vmatmul.msk.f32.gmra.mxu1 %vm64_vm0, %v861_v34 }
0x1875   :  { %v1994_v31 = vpop.eup %1993 }
0x1876   :  { %v982_v32 = vmul.f32 %v1994_v31, %v980_v30  ;;  %vm987_vm15 = vweird.f32 %v1994_v31 }
0x1877   :  { %vm988_vm2 = vmor %vm986_vm1, %vm987_vm15 }
0x1878   :  { %v983_v33 = vsub.f32 1.0, %v982_v32 }
0x187a   :  { %v984_v36 = vmul.f32 %v1994_v31, %v983_v33 }
0x187c   :  { %v985_v38 = vadd.f32 %v1994_v31, %v984_v36 }
0x187e   :  { %v989_v40 = vsel %vm988_vm2, %v1994_v31, %v985_v38 }
0x187f   :  { %v994_v41 = vsel %vm991_vm5, %v993_v39, %v989_v40 }
0x1880   :  { %v996_v42 = vmul.f32 2.0, %v994_v41  ;;  %v998_v53 = vmul.f32 %v994_v41, %v858_v52 }
0x1882   :  { %v1889_v43 = vadd.f32 -1.0, %v996_v42 }
0x1884   :  { %1000 = vrot.lane.b32.xlu2 %v1889_v43, %s2098_s3 }
0x18de   :  { %v1001_v10 = vpop.permute.xlu2 %1000 }
0x18df   :  { %v1003_v44 = vmul.f32 %v1001_v10, %v994_v41 }
0x18e1   :  { %1005 = vrot.lane.b32.xlu0 %v1003_v44, %s2099_s15 }
0x18ef   :  { %v922_v37 = vpop.f32.mrf.mxu1 }
0x18f0   :  { %v923_v38 = vadd.f32 %v2453_v23, %v922_v37 }
0x1953   :  { %v1006_v54 = vpop.permute.xlu0 %1005 }
0x1954   :  { %v2470_v55 = vadd.f32 %v1006_v54, %v998_v53 }
0x1956   :  { %1995 = vtanh.f32 %v2470_v55 }
0x195c   :  { %v1996_v58 = vpop.eup %1995 }
0x195d   :  { %1011 = vrot.lane.b32.xlu1 %v1996_v58, %s2098_s3 }
0x19cf   :  { %v1012_v61 = vpop.permute.xlu1 %1011 }
0x19d0   :  { %v1014_v62 = vmul.f32 %v1012_v61, %v994_v41 }
0x19d2   :  { %1016 = vrot.lane.b32.xlu2 %v1014_v62, %s2099_s15 }
0x1a2c   :  { %v1017_v0 = vpop.permute.xlu2 %1016 }
0x1a2d   :  { %1890 = vmatmul.msk.f32.vlgmr.msrb.gmra.mxu3 %vm64_vm0, %v1017_v0  ;;  %1891 = vmatmul.msk.f32.vlgmr.msrb.gmra.mxu2 %vm64_vm0, %v1017_v0 }
0x1a2e   :  { %1249 = vmatpush.msrb.mxu3 %v2391_v2  ;;  %1269 = vmatpush.msrb.mxu2 %v2477_v35 }
0x1a30   :  { %1250 = vmatpush.msrb.mxu3 %v2396_v3  ;;  %1270 = vmatpush.msrb.mxu2 %v2482_v59 }
0x1a32   :  { %1251 = vmatpush.msrb.mxu3 %v2408_v6  ;;  %1271 = vmatpush.msrb.mxu2 %v2489_v57 }
0x1a34   :  { %1252 = vmatpush.msrb.mxu3 %v2415_v7  ;;  %1272 = vmatpush.msrb.mxu2 %v2496_v60 }
0x1ab0   :  { %v1037_v5 = vpop.f32.mrf.mxu3 }
0x1ab1   :  { %v1086_v8 = vadd.f32 %v1037_v5, %v920_v4  ;;  %v862_v5 = vld [vmem:[%s2745_s7 + $0x18] sm:$0xff] }
0x1ab2   :  { %1882 = vmatmul.msk.f32.gmra.mxu1 %vm64_vm0, %v862_v5  ;;  %v864_v5 = vld [vmem:[%s2745_s7 + $0x28] sm:$0xff] }
0x1ab3   :  { %v1892_v11 = vmul.f32 -1.442695, %v1086_v8 }
0x1ab5   :  { %1997 = vpow2.f32 %v1892_v11 }
0x1abb   :  { %v1998_v12 = vpop.eup %1997 }
0x1abc   :  { %v1090_v13 = vadd.f32 1.0, %v1998_v12 }
0x1abe   :  { %1999 = vrcp.f32 %v1090_v13  ;;  %v1102_v17 = vand.u32 2147483648, %v1090_v13  ;;  %v1100_v18 = vand.u32 2147483647, %v1090_v13  ;;  %vm1096_vm4 = vweird.f32 %v1090_v13 }
0x1ac0   :  { %v1103_v20 = vor.u32 1.1754944e-38, %v1102_v17  ;;  %vm1101_vm7 = vcmp.eq.f32.partialorder %v1100_v18, 8.507059e+37 }
0x1ac4   :  { %v2000_v14 = vpop.eup %1999 }
0x1ac5   :  { %v1092_v15 = vmul.f32 %v2000_v14, %v1090_v13  ;;  %vm1097_vm3 = vweird.f32 %v2000_v14 }
0x1ac6   :  { %vm1098_vm6 = vmor %vm1096_vm4, %vm1097_vm3 }
0x1ac7   :  { %v1093_v16 = vsub.f32 1.0, %v1092_v15 }
0x1ac9   :  { %v1094_v9 = vmul.f32 %v2000_v14, %v1093_v16 }
0x1acb   :  { %v1095_v19 = vadd.f32 %v2000_v14, %v1094_v9 }
0x1acd   :  { %v1099_v21 = vsel %vm1098_vm6, %v2000_v14, %v1095_v19 }
0x1ace   :  { %v1104_v22 = vsel %vm1101_vm7, %v1103_v20, %v1099_v21 }
0x1acf   :  { %v1106_v24 = vmul.f32 2.0, %v1104_v22  ;;  %v1108_v28 = vmul.f32 %v1104_v22, %v2470_v55 }
0x1ad1   :  { %v1893_v25 = vadd.f32 -1.0, %v1106_v24 }
0x1ad3   :  { %1110 = vrot.lane.b32.xlu0 %v1893_v25, %s2098_s3 }
0x1b2f   :  { %v925_v11 = vpop.f32.mrf.mxu1 }
0x1b30   :  { %v926_v12 = vadd.f32 %v2453_v23, %v925_v11  ;;  %v2598_v11 = vpop.f32.mrf.mxu2 }
0x1b45   :  { %v1111_v26 = vpop.permute.xlu0 %1110 }
0x1b46   :  { %v1113_v27 = vmul.f32 %v1111_v26, %v1104_v22 }
0x1b48   :  { %1115 = vrot.lane.b32.xlu1 %v1113_v27, %s2099_s15 }
0x1bba   :  { %v1116_v29 = vpop.permute.xlu1 %1115 }
0x1bbb   :  { %v1118_v30 = vadd.f32 %v1116_v29, %v1108_v28 }
0x1bbd   :  { %2001 = vtanh.f32 %v1118_v30 }
0x1bc3   :  { %v2002_v31 = vpop.eup %2001 }
0x1bc4   :  { %1121 = vrot.lane.b32.xlu2 %v2002_v31, %s2098_s3 }
0x1c1e   :  { %v1122_v32 = vpop.permute.xlu2 %1121 }
0x1c1f   :  { %v1124_v33 = vmul.f32 %v1122_v32, %v1104_v22 }
0x1c21   :  { %1126 = vrot.lane.b32.xlu0 %v1124_v33, %s2099_s15 }
0x1c93   :  { %v1127_v36 = vpop.permute.xlu0 %1126 }
0x1c94   :  { %1894 = vmatmul.msk.f32.vlgmr.msra.gmra.mxu3 %vm64_vm0, %v1127_v36  ;;  %1895 = vmatmul.msk.f32.vlgmr.msra.gmra.mxu2 %vm64_vm0, %v1127_v36 }
0x1c95   :  { %1356 = vmatpush.msra.mxu3 %v2391_v2  ;;  %1463 = vmatpush.msra.mxu2 %v2391_v2 }
0x1c97   :  { %1357 = vmatpush.msra.mxu3 %v2396_v3  ;;  %1464 = vmatpush.msra.mxu2 %v2396_v3 }
0x1c99   :  { %1358 = vmatpush.msra.mxu3 %v2408_v6  ;;  %1465 = vmatpush.msra.mxu2 %v2408_v6 }
0x1c9b   :  { %1359 = vmatpush.msra.mxu3 %v2415_v7  ;;  %1466 = vmatpush.msra.mxu2 %v2415_v7 }
0x1d17   :  { %v1147_v39 = vpop.f32.mrf.mxu3 }
0x1d18   :  { %v1193_v40 = vadd.f32 %v1147_v39, %v923_v38  ;;  %v863_v39 = vld [vmem:[%s2745_s7 + $0x20] sm:$0xff] }
0x1d19   :  { %1883 = vmatmul.msk.f32.gmra.mxu1 %vm64_vm0, %v863_v39 }
0x1d1a   :  { %v1896_v41 = vmul.f32 -1.442695, %v1193_v40 }
0x1d1c   :  { %2003 = vpow2.f32 %v1896_v41 }
0x1d21   :  { %1884 = vmatmul.msk.f32.gmra.mxu1 %vm64_vm0, %v864_v5  ;;  %v2628_v5 = vld [vmem:[%s2749_s11] ss:$0 sm:$0xff] }
0x1d22   :  { %v2004_v42 = vpop.eup %2003 }
0x1d23   :  { %v1197_v43 = vadd.f32 1.0, %v2004_v42 }
0x1d25   :  { %2005 = vrcp.f32 %v1197_v43  ;;  %v1209_v46 = vand.u32 2147483648, %v1197_v43  ;;  %v1207_v48 = vand.u32 2147483647, %v1197_v43  ;;  %vm1203_vm9 = vweird.f32 %v1197_v43 }
0x1d27   :  { %v1210_v50 = vor.u32 1.1754944e-38, %v1209_v46  ;;  %vm1208_vm11 = vcmp.eq.f32.partialorder %v1207_v48, 8.507059e+37 }
0x1d2b   :  { %v2006_v10 = vpop.eup %2005 }
0x1d2c   :  { %v1199_v44 = vmul.f32 %v2006_v10, %v1197_v43  ;;  %vm1204_vm8 = vweird.f32 %v2006_v10 }
0x1d2d   :  { %vm1205_vm10 = vmor %vm1203_vm9, %vm1204_vm8 }
0x1d2e   :  { %v1200_v45 = vsub.f32 1.0, %v1199_v44 }
0x1d30   :  { %v1201_v47 = vmul.f32 %v2006_v10, %v1200_v45 }
0x1d32   :  { %v1202_v49 = vadd.f32 %v2006_v10, %v1201_v47 }
0x1d34   :  { %v1206_v51 = vsel %vm1205_vm10, %v2006_v10, %v1202_v49 }
0x1d35   :  { %v1211_v52 = vsel %vm1208_vm11, %v1210_v50, %v1206_v51 }
0x1d36   :  { %v1213_v53 = vmul.f32 2.0, %v1211_v52  ;;  %v1215_v61 = vmul.f32 %v1211_v52, %v1118_v30 }
0x1d38   :  { %v1897_v54 = vadd.f32 -1.0, %v1213_v53 }
0x1d3a   :  { %1217 = vrot.lane.b32.xlu1 %v1897_v54, %s2098_s3 }
0x1d96   :  { %v928_v41 = vpop.f32.mrf.mxu1 }
0x1d97   :  { %v929_v42 = vadd.f32 %v2453_v23, %v928_v41 }
0x1dac   :  { %v1218_v55 = vpop.permute.xlu1 %1217 }
0x1dad   :  { %v1220_v58 = vmul.f32 %v1218_v55, %v1211_v52 }
0x1daf   :  { %1222 = vrot.lane.b32.xlu2 %v1220_v58, %s2099_s15 }
0x1e09   :  { %v1223_v62 = vpop.permute.xlu2 %1222 }
0x1e0a   :  { %v1225_v63 = vadd.f32 %v1223_v62, %v1215_v61 }
0x1e0c   :  { %2007 = vtanh.f32 %v1225_v63 }
0x1e12   :  { %v2008_v0 = vpop.eup %2007 }
0x1e13   :  { %1228 = vrot.lane.b32.xlu0 %v2008_v0, %s2098_s3 }
0x1e85   :  { %v1229_v1 = vpop.permute.xlu0 %1228 }
0x1e86   :  { %v1231_v4 = vmul.f32 %v1229_v1, %v1211_v52 }
0x1e88   :  { %1233 = vrot.lane.b32.xlu1 %v1231_v4, %s2099_s15 }
0x1efa   :  { %v1234_v8 = vpop.permute.xlu1 %1233 }
0x1efb   :  { %1898 = vmatmul.msk.f32.vlgmr.msrb.gmra.mxu3 %vm64_vm0, %v1234_v8  ;;  %1899 = vmatmul.msk.f32.vlgmr.msrb.gmra.mxu2 %vm64_vm0, %v1234_v8 }
0x1efc   :  { %1483 = vmatpush.msrb.mxu3 %v2477_v35  ;;  %1590 = vmatpush.msrb.mxu2 %v2477_v35 }
0x1efe   :  { %1484 = vmatpush.msrb.mxu3 %v2482_v59  ;;  %1591 = vmatpush.msrb.mxu2 %v2482_v59 }
0x1f00   :  { %1485 = vmatpush.msrb.mxu3 %v2489_v57  ;;  %1592 = vmatpush.msrb.mxu2 %v2489_v57 }
0x1f02   :  { %1486 = vmatpush.msrb.mxu3 %v2496_v60  ;;  %1593 = vmatpush.msrb.mxu2 %v2496_v60 }
0x1f7e   :  { %v1254_v13 = vpop.f32.mrf.mxu3 }
0x1f7f   :  { %v1300_v14 = vadd.f32 %v1254_v13, %v926_v12  ;;  %v2600_v12 = vpop.f32.mrf.mxu2 }
0x1f81   :  { %v1900_v15 = vmul.f32 -1.442695, %v1300_v14  ;;  %v931_v14 = vpop.f32.mrf.mxu1 }
0x1f83   :  { %2009 = vpow2.f32 %v1900_v15  ;;  %v932_v15 = vadd.f32 %v2453_v23, %v931_v14  ;;  %v2637_v14 = vadd.f32 %v2628_v5, %v2600_v12 }
0x1f87   :  { %v2602_v13 = vpop.f32.mrf.mxu2 }
0x1f89   :  { %v2010_v16 = vpop.eup %2009 }
0x1f8a   :  { %v1304_v17 = vadd.f32 1.0, %v2010_v16 }
0x1f8c   :  { %2011 = vrcp.f32 %v1304_v17  ;;  %v1316_v20 = vand.u32 2147483648, %v1304_v17  ;;  %v1314_v22 = vand.u32 2147483647, %v1304_v17  ;;  %vm1310_vm13 = vweird.f32 %v1304_v17 }
0x1f8e   :  { %v1317_v25 = vor.u32 1.1754944e-38, %v1316_v20  ;;  %vm1315_vm15 = vcmp.eq.f32.partialorder %v1314_v22, 8.507059e+37 }
0x1f92   :  { %v2012_v9 = vpop.eup %2011 }
0x1f93   :  { %v1306_v18 = vmul.f32 %v2012_v9, %v1304_v17  ;;  %vm1311_vm12 = vweird.f32 %v2012_v9 }
0x1f94   :  { %vm1312_vm14 = vmor %vm1310_vm13, %vm1311_vm12 }
0x1f95   :  { %v1307_v19 = vsub.f32 1.0, %v1306_v18 }
0x1f97   :  { %v1308_v21 = vmul.f32 %v2012_v9, %v1307_v19 }
0x1f99   :  { %v1309_v24 = vadd.f32 %v2012_v9, %v1308_v21 }
0x1f9b   :  { %v1313_v26 = vsel %vm1312_vm14, %v2012_v9, %v1309_v24 }
0x1f9c   :  { %v1318_v27 = vsel %vm1315_vm15, %v1317_v25, %v1313_v26 }
0x1f9d   :  { %v1320_v28 = vmul.f32 2.0, %v1318_v27  ;;  %v1322_v32 = vmul.f32 %v1318_v27, %v1225_v63 }
0x1f9f   :  { %v1901_v29 = vadd.f32 -1.0, %v1320_v28 }
0x1fa1   :  { %1324 = vrot.lane.b32.xlu2 %v1901_v29, %s2098_s3 }
0x1ffb   :  { %v1325_v30 = vpop.permute.xlu2 %1324 }
0x1ffc   :  { %v1327_v31 = vmul.f32 %v1325_v30, %v1318_v27 }
0x1ffe   :  { %1329 = vrot.lane.b32.xlu0 %v1327_v31, %s2099_s15 }
0x2070   :  { %v1330_v33 = vpop.permute.xlu0 %1329 }
0x2071   :  { %v1332_v34 = vadd.f32 %v1330_v33, %v1322_v32 }
0x2073   :  { %2013 = vtanh.f32 %v1332_v34 }
0x2079   :  { %v2014_v36 = vpop.eup %2013 }
0x207a   :  { %1335 = vrot.lane.b32.xlu1 %v2014_v36, %s2098_s3  ;;  %v865_v36 = vld [vmem:[%s2745_s7 + $0x30] sm:$0xff] }
0x207b   :  { %1885 = vmatmul.msk.f32.gmra.mxu1 %vm64_vm0, %v865_v36  ;;  %v2100_v36 = vmov 0  }
0x207c   :  { %1925 = vset.pattern.permute.xlu0 %v2100_v36  ;;  %1924 = vset.pattern.permute.xlu1 %v2100_v36 }
0x207d   :  { %1926 = vset.pattern.permute.xlu2 %v2100_v36 }
0x20ec   :  { %v1336_v37 = vpop.permute.xlu1 %1335 }
0x20ed   :  { %v1338_v38 = vmul.f32 %v1336_v37, %v1318_v27 }
0x20ef   :  { %1340 = vrot.lane.b32.xlu2 %v1338_v38, %s2099_s15 }
0x20f8   :  { %v934_v41 = vpop.f32.mrf.mxu1 }
0x2149   :  { %v1341_v40 = vpop.permute.xlu2 %1340 }
0x214a   :  { %1902 = vmatmul.msk.f32.vlgmr.msra.gmra.mxu3 %vm64_vm0, %v1341_v40  ;;  %1903 = vmatmul.msk.f32.vlgmr.msrb.gmra.mxu0 %vm64_vm0, %v1341_v40 }
0x214b   :  { %1677 = vmatpush.msra.mxu3 %v2391_v2  ;;  %1697 = vmatpush.msrb.mxu0 %v2477_v35 }
0x214d   :  { %1678 = vmatpush.msra.mxu3 %v2396_v3  ;;  %1698 = vmatpush.msrb.mxu0 %v2482_v59 }
0x214f   :  { %1679 = vmatpush.msra.mxu3 %v2408_v6  ;;  %1699 = vmatpush.msrb.mxu0 %v2489_v57 }
0x2151   :  { %1680 = vmatpush.msra.mxu3 %v2415_v7  ;;  %1700 = vmatpush.msrb.mxu0 %v2496_v60 }
0x21c7   :  { %v2615_v40 = vpop.f32.mrf.mxu0 }
0x21cd   :  { %v1361_v43 = vpop.f32.mrf.mxu3 }
0x21ce   :  { %v1407_v10 = vadd.f32 %v1361_v43, %v929_v42  ;;  %v935_v42 = vadd.f32 %v2453_v23, %v934_v41  ;;  %v1182_v41 = vld [vmem:[%s2750_s12 + $0x8] sm:$0xff] }
0x21d0   :  { %v1904_v2 = vmul.f32 -1.442695, %v1407_v10 }
0x21d2   :  { %2015 = vpow2.f32 %v1904_v2 }
0x21d8   :  { %v2016_v44 = vpop.eup %2015 }
0x21d9   :  { %v1411_v45 = vadd.f32 1.0, %v2016_v44 }
0x21db   :  { %2017 = vrcp.f32 %v1411_v45  ;;  %v1423_v6 = vand.u32 2147483648, %v1411_v45  ;;  %v1421_v49 = vand.u32 2147483647, %v1411_v45  ;;  %vm1417_vm2 = vweird.f32 %v1411_v45 }
0x21dd   :  { %v1424_v50 = vor.u32 1.1754944e-38, %v1423_v6  ;;  %vm1422_vm3 = vcmp.eq.f32.partialorder %v1421_v49, 8.507059e+37 }
0x21e1   :  { %v2018_v3 = vpop.eup %2017 }
0x21e2   :  { %v1413_v46 = vmul.f32 %v2018_v3, %v1411_v45  ;;  %vm1418_vm1 = vweird.f32 %v2018_v3 }
0x21e3   :  { %vm1419_vm5 = vmor %vm1417_vm2, %vm1418_vm1 }
0x21e4   :  { %v1414_v47 = vsub.f32 1.0, %v1413_v46 }
0x21e6   :  { %v1415_v48 = vmul.f32 %v2018_v3, %v1414_v47 }
0x21e8   :  { %v1416_v7 = vadd.f32 %v2018_v3, %v1415_v48 }
0x21ea   :  { %v1420_v51 = vsel %vm1419_vm5, %v2018_v3, %v1416_v7 }
0x21eb   :  { %v1425_v52 = vsel %vm1422_vm3, %v1424_v50, %v1420_v51 }
0x21ec   :  { %v1427_v53 = vmul.f32 2.0, %v1425_v52  ;;  %v1429_v61 = vmul.f32 %v1425_v52, %v1332_v34 }
0x21ee   :  { %v1905_v54 = vadd.f32 -1.0, %v1427_v53 }
0x21f0   :  { %1431 = vrot.lane.b32.xlu0 %v1905_v54, %s2098_s3 }
0x2262   :  { %v1432_v55 = vpop.permute.xlu0 %1431 }
0x2263   :  { %v1434_v58 = vmul.f32 %v1432_v55, %v1425_v52 }
0x2265   :  { %1436 = vrot.lane.b32.xlu1 %v1434_v58, %s2099_s15 }
0x22d7   :  { %v1437_v62 = vpop.permute.xlu1 %1436 }
0x22d8   :  { %v1439_v63 = vadd.f32 %v1437_v62, %v1429_v61 }
0x22da   :  { %2019 = vtanh.f32 %v1439_v63 }
0x22e0   :  { %v2020_v0 = vpop.eup %2019 }
0x22e1   :  { %1442 = vrot.lane.b32.xlu2 %v2020_v0, %s2098_s3 }
0x233b   :  { %v1443_v1 = vpop.permute.xlu2 %1442 }
0x233c   :  { %v1445_v4 = vmul.f32 %v1443_v1, %v1425_v52 }
0x233e   :  { %1447 = vrot.lane.b32.xlu0 %v1445_v4, %s2099_s15 }
0x23b0   :  { %v1448_v8 = vpop.permute.xlu0 %1447 }
0x23b1   :  { %1906 = vmatmul.msk.f32.vlgmr.msra.gmra.mxu2 %vm64_vm0, %v1448_v8  ;;  %1907 = vmatmul.msk.f32.vlgmr.msrb.gmra.mxu3 %vm64_vm0, %v1448_v8  ;;  %v2632_v8 = vadd.f32 %v2628_v5, %v2598_v11 }
0x23b2   :  { %1784 = vmatpush.msra.mxu2 %v2477_v35 }
0x23b4   :  { %1785 = vmatpush.msra.mxu2 %v2482_v59 }
0x23b6   :  { %1786 = vmatpush.msra.mxu2 %v2489_v57 }
0x23b8   :  { %1787 = vmatpush.msra.mxu2 %v2496_v60 }
0x2434   :  { %v1468_v16 = vpop.f32.mrf.mxu2 }
0x2435   :  { %v1514_v17 = vadd.f32 %v1468_v16, %v932_v15  ;;  %v866_v15 = vld [vmem:[%s2745_s7 + $0x38] sm:$0xff] }
0x2436   :  { %1886 = vmatmul.msk.f32.gmra.mxu1 %vm64_vm0, %v866_v15 }
0x2437   :  { %v1908_v9 = vmul.f32 -1.442695, %v1514_v17 }
0x2439   :  { %2021 = vpow2.f32 %v1908_v9 }
0x243f   :  { %v2022_v35 = vpop.eup %2021 }
0x2440   :  { %v1518_v18 = vadd.f32 1.0, %v2022_v35 }
0x2442   :  { %2023 = vrcp.f32 %v1518_v18  ;;  %v1530_v60 = vand.u32 2147483648, %v1518_v18  ;;  %v1528_v21 = vand.u32 2147483647, %v1518_v18  ;;  %vm1524_vm6 = vweird.f32 %v1518_v18 }
0x2444   :  { %v1531_v24 = vor.u32 1.1754944e-38, %v1530_v60  ;;  %vm1529_vm8 = vcmp.eq.f32.partialorder %v1528_v21, 8.507059e+37 }
0x2448   :  { %v2024_v59 = vpop.eup %2023 }
0x2449   :  { %v1520_v57 = vmul.f32 %v2024_v59, %v1518_v18  ;;  %vm1525_vm4 = vweird.f32 %v2024_v59  ;;  %v2652_v18 = vpop.f32.mrf.mxu3 }
0x244a   :  { %vm1526_vm7 = vmor %vm1524_vm6, %vm1525_vm4 }
0x244b   :  { %v1521_v19 = vsub.f32 1.0, %v1520_v57 }
0x244d   :  { %v1522_v20 = vmul.f32 %v2024_v59, %v1521_v19 }
0x244f   :  { %v1523_v22 = vadd.f32 %v2024_v59, %v1522_v20 }
0x2451   :  { %v1527_v25 = vsel %vm1526_vm7, %v2024_v59, %v1523_v22 }
0x2452   :  { %v1532_v26 = vsel %vm1529_vm8, %v1531_v24, %v1527_v25 }
0x2453   :  { %v1534_v27 = vmul.f32 2.0, %v1532_v26  ;;  %v1536_v31 = vmul.f32 %v1532_v26, %v1439_v63 }
0x2455   :  { %v1909_v28 = vadd.f32 -1.0, %v1534_v27 }
0x2457   :  { %1538 = vrot.lane.b32.xlu1 %v1909_v28, %s2098_s3 }
0x24b3   :  { %v937_v59 = vpop.f32.mrf.mxu1 }
0x24b4   :  { %v938_v57 = vadd.f32 %v2453_v23, %v937_v59 }
0x24c9   :  { %v1539_v29 = vpop.permute.xlu1 %1538 }
0x24ca   :  { %v1541_v30 = vmul.f32 %v1539_v29, %v1532_v26 }
0x24cc   :  { %1543 = vrot.lane.b32.xlu2 %v1541_v30, %s2099_s15 }
0x2526   :  { %v1544_v32 = vpop.permute.xlu2 %1543 }
0x2527   :  { %v1546_v33 = vadd.f32 %v1544_v32, %v1536_v31 }
0x2529   :  { %2025 = vtanh.f32 %v1546_v33 }
0x252f   :  { %v2026_v34 = vpop.eup %2025 }
0x2530   :  { %1549 = vrot.lane.b32.xlu0 %v2026_v34, %s2098_s3 }
0x25a2   :  { %v1550_v37 = vpop.permute.xlu0 %1549 }
0x25a3   :  { %v1552_v38 = vmul.f32 %v1550_v37, %v1532_v26 }
0x25a5   :  { %1554 = vrot.lane.b32.xlu1 %v1552_v38, %s2099_s15 }
0x2617   :  { %v1555_v39 = vpop.permute.xlu1 %1554 }
0x2618   :  { %1910 = vmatmul.msk.f32.vlgmr.msra.gmra.mxu0 %vm64_vm0, %v1555_v39  ;;  %1911 = vmatmul.msk.f32.vlgmr.msrb.gmra.mxu2 %vm64_vm0, %v1555_v39 }
0x2695   :  { %v1575_v43 = vpop.f32.mrf.mxu0 }
0x2696   :  { %v1621_v10 = vadd.f32 %v1575_v43, %v935_v42 }
0x2698   :  { %v1912_v2 = vmul.f32 -1.442695, %v1621_v10 }
0x269a   :  { %2027 = vpow2.f32 %v1912_v2 }
0x26a0   :  { %v2028_v44 = vpop.eup %2027 }
0x26a1   :  { %v1625_v45 = vadd.f32 1.0, %v2028_v44 }
0x26a3   :  { %2029 = vrcp.f32 %v1625_v45  ;;  %v1637_v6 = vand.u32 2147483648, %v1625_v45  ;;  %v1635_v49 = vand.u32 2147483647, %v1625_v45  ;;  %vm1631_vm10 = vweird.f32 %v1625_v45 }
0x26a5   :  { %v1638_v50 = vor.u32 1.1754944e-38, %v1637_v6  ;;  %vm1636_vm12 = vcmp.eq.f32.partialorder %v1635_v49, 8.507059e+37 }
0x26a9   :  { %v2030_v3 = vpop.eup %2029 }
0x26aa   :  { %v1627_v46 = vmul.f32 %v2030_v3, %v1625_v45  ;;  %vm1632_vm9 = vweird.f32 %v2030_v3 }
0x26ab   :  { %vm1633_vm11 = vmor %vm1631_vm10, %vm1632_vm9  ;;  %vm1815_vm9 = vcmask 7168   ;;  %vm1823_vm10 = vcmask 0  }
0x26ac   :  { %v1628_v47 = vsub.f32 1.0, %v1627_v46 }
0x26ae   :  { %v1629_v48 = vmul.f32 %v2030_v3, %v1628_v47 }
0x26b0   :  { %v1630_v7 = vadd.f32 %v2030_v3, %v1629_v48 }
0x26b2   :  { %v1634_v51 = vsel %vm1633_vm11, %v2030_v3, %v1630_v7  ;;  %v1075_v3 = vld [vmem:[%s2750_s12] sm:$0xff] }
0x26b3   :  { %v1639_v52 = vsel %vm1636_vm12, %v1638_v50, %v1634_v51 }
0x26b4   :  { %v1641_v53 = vmul.f32 2.0, %v1639_v52  ;;  %v1643_v61 = vmul.f32 %v1639_v52, %v1546_v33 }
0x26b6   :  { %v1913_v54 = vadd.f32 -1.0, %v1641_v53 }
0x26b8   :  { %1645 = vrot.lane.b32.xlu2 %v1913_v54, %s2098_s3 }
0x2712   :  { %v1646_v55 = vpop.permute.xlu2 %1645 }
0x2713   :  { %v1648_v58 = vmul.f32 %v1646_v55, %v1639_v52 }
0x2715   :  { %1650 = vrot.lane.b32.xlu0 %v1648_v58, %s2099_s15 }
0x2787   :  { %v1651_v62 = vpop.permute.xlu0 %1650 }
0x2788   :  { %v2620_v63 = vadd.f32 %v1651_v62, %v1643_v61 }
0x278a   :  { %2031 = vtanh.f32 %v2620_v63 }
0x2790   :  { %v2032_v0 = vpop.eup %2031 }
0x2791   :  { %1656 = vrot.lane.b32.xlu1 %v2032_v0, %s2098_s3 }
0x2803   :  { %v1657_v1 = vpop.permute.xlu1 %1656 }
0x2804   :  { %v1659_v4 = vmul.f32 %v1657_v1, %v1639_v52  ;;  %v2670_v52 = vand.u32 127, %v653_v56  ;;  %v1277_v56 = vadd.f32 %v2628_v5, %v2602_v13  ;;  %v1289_v1 = vld [vmem:[%s2750_s12 + $0x10] sm:$0xff]  ;;  %v1076_v13 = vld [vmem:[%s2751_s13] sm:$0xff] }
0x2806   :  { %1661 = vrot.lane.b32.xlu2 %v1659_v4, %s2099_s15  ;;  %v1384_v4 = vadd.f32 %v2628_v5, %v2615_v40 }
0x282f   :  { %1064 = vmax.xlane.f32.xlu2 %v2632_v8 }
0x2837   :  { %1171 = vmax.xlane.f32.xlu2 %v2637_v14 }
0x2860   :  { %v1662_v16 = vpop.permute.xlu2 %1661 }
0x2861   :  { %1914 = vmatmul.msk.f32.vlgmr.msra.gmra.mxu3 %vm64_vm0, %v1662_v16  ;;  %1915 = vmatmul.msk.f32.vlgmr.msrb.gmra.mxu0 %vm64_vm0, %v1662_v16 }
0x28a2   :  { %v2646_v11 = vpop.xlane.xlu2 %1064 }
0x28a3   :  { %v1066_v37 = vsub.f32 %v2632_v8, %v2646_v11 }
0x28a5   :  { %v1067_v38 = vmul.f32 1.442695, %v1066_v37 }
0x28aa   :  { %v2648_v17 = vpop.xlane.xlu2 %1171 }
0x28ab   :  { %v1173_v12 = vsub.f32 %v2637_v14, %v2648_v17 }
0x28ad   :  { %v1174_v9 = vmul.f32 1.442695, %v1173_v12 }
0x28af   :  { %2033 = vpow2.f32 %v1174_v9 }
0x28b5   :  { %v2034_v35 = vpop.eup %2033 }
0x28b6   :  { %1176 = vadd.xlane.f32.xlu2 %v2034_v35 }
0x28e4   :  { %v1682_v19 = vpop.f32.mrf.mxu3 }
0x28e5   :  { %v1728_v60 = vadd.f32 %v1682_v19, %v938_v57 }
0x28e7   :  { %v1916_v20 = vmul.f32 -1.442695, %v1728_v60 }
0x28e9   :  { %2035 = vpow2.f32 %v1916_v20 }
0x28ef   :  { %v2036_v21 = vpop.eup %2035 }
0x28f0   :  { %v1732_v22 = vadd.f32 1.0, %v2036_v21 }
0x28f2   :  { %2037 = vrcp.f32 %v1732_v22  ;;  %v1744_v27 = vand.u32 2147483648, %v1732_v22  ;;  %v1742_v29 = vand.u32 2147483647, %v1732_v22  ;;  %vm1738_vm14 = vweird.f32 %v1732_v22 }
0x28f3   :  { %2039 = vpow2.f32 %v1067_v38 }
0x28f4   :  { %v1745_v31 = vor.u32 1.1754944e-38, %v1744_v27  ;;  %vm1743_vm1 = vcmp.eq.f32.partialorder %v1742_v29, 8.507059e+37 }
0x28f8   :  { %v2038_v24 = vpop.eup %2037 }
0x28f9   :  { %v1734_v25 = vmul.f32 %v2038_v24, %v1732_v22  ;;  %vm1739_vm13 = vweird.f32 %v2038_v24  ;;  %v2040_v39 = vpop.eup %2039 }
0x28fa   :  { %vm1740_vm15 = vmor %vm1738_vm14, %vm1739_vm13 }
0x28fb   :  { %v1735_v26 = vsub.f32 1.0, %v1734_v25  ;;  %v1396_v25 = vld [vmem:[%s2750_s12 + $0x18] sm:$0xff] }
0x28fd   :  { %v1736_v28 = vmul.f32 %v2038_v24, %v1735_v26 }
0x28ff   :  { %v1737_v30 = vadd.f32 %v2038_v24, %v1736_v28 }
0x2901   :  { %v1741_v32 = vsel %vm1740_vm15, %v2038_v24, %v1737_v30 }
0x2902   :  { %v1746_v23 = vsel %vm1743_vm1, %v1745_v31, %v1741_v32 }
0x2903   :  { %v1748_v33 = vmul.f32 2.0, %v1746_v23  ;;  %v1750_v10 = vmul.f32 %v1746_v23, %v2620_v63 }
0x2905   :  { %v1917_v34 = vadd.f32 -1.0, %v1748_v33 }
0x2907   :  { %1752 = vrot.lane.b32.xlu0 %v1917_v34, %s2098_s3 }
0x2929   :  { %v1177_v47 = vpop.xlane.xlu2 %1176 }
0x2931   :  { %1069 = vadd.xlane.f32.xlu0 %v2040_v39  ;;  %v1491_v39 = vadd.f32 %v2628_v5, %v2652_v18 }
0x2945   :  { %1185 = vperm.xlu0 %1925, %v1182_v41  }
0x2979   :  { %v1753_v42 = vpop.permute.xlu0 %1752 }
0x297a   :  { %v1755_v43 = vmul.f32 %v1753_v42, %v1746_v23  ;;  %v1290_v42 = vld [vmem:[%s2751_s13 + $0x10] sm:$0xff] }
0x297c   :  { %1757 = vrot.lane.b32.xlu1 %v1755_v43, %s2099_s15 }
0x29a4   :  { %v1070_v46 = vpop.xlane.xlu0 %1069 }
0x29b7   :  { %v1186_v62 = vpop.permute.xlu0 %1185 }
0x29b8   :  { %vm1187_vm5 = vcmp.eq.s32.totalorder %v2670_v52, %v1186_v62 }
0x29ee   :  { %v1758_v2 = vpop.permute.xlu1 %1757 }
0x29ef   :  { %v1760_v44 = vadd.f32 %v1758_v2, %v1750_v10  ;;  %v1397_v10 = vld [vmem:[%s2751_s13 + $0x18] sm:$0xff] }
0x29f1   :  { %2041 = vtanh.f32 %v1760_v44 }
0x29f2   :  { %2043 = vlog2.f32 %v1070_v46 }
0x29f3   :  { %2045 = vlog2.f32 %v1177_v47 }
0x29f7   :  { %v2042_v45 = vpop.eup %2041 }
0x29f8   :  { %1763 = vrot.lane.b32.xlu1 %v2042_v45, %s2098_s3  ;;  %v2044_v6 = vpop.eup %2043  ;;  %s1830_s3 = sshll.u32 %s2101_s9, 4  ;;  %s1831_s3 = int_to_ptr.vmem [resolvable:$true] %s1830_s3 }
0x29f9   :  { %v1072_v48 = vmul.f32 0.6931472, %v2044_v6  ;;  %v2046_v51 = vpop.eup %2045 }
0x29fa   :  { %v1179_v53 = vmul.f32 0.6931472, %v2046_v51 }
0x29fb   :  { %v1073_v50 = vadd.f32 %v1072_v48, %v2646_v11  ;;  %v1183_v11 = vld [vmem:[%s2751_s13 + $0x8] sm:$0xff]  ;;  %v1595_v48 = vpop.f32.mrf.mxu2 }
0x29fc   :  { %v1180_v61 = vadd.f32 %v1179_v53, %v2648_v17 }
0x29fd   :  { %v1074_v55 = vsub.f32 %v2632_v8, %v1073_v50 }
0x29fe   :  { %v1181_v63 = vsub.f32 %v2637_v14, %v1180_v61  ;;  %v1503_v14 = vld [vmem:[%s2750_s12 + $0x20] sm:$0xff] }
0x2a00   :  { %1078 = vperm.xlu1 %1924, %v1075_v3   ;;  %v1188_v0 = vsel %vm1187_vm5, %v1181_v63, 0.0 }
0x2a6a   :  { %v1764_v49 = vpop.permute.xlu1 %1763 }
0x2a6b   :  { %v1766_v7 = vmul.f32 %v1764_v49, %v1746_v23  ;;  %v1598_v49 = vadd.f32 %v2628_v5, %v1595_v48 }
0x2a6d   :  { %1768 = vrot.lane.b32.xlu2 %v1766_v7, %s2099_s15 }
0x2a72   :  { %v1079_v54 = vpop.permute.xlu1 %1078 }
0x2a73   :  { %vm1080_vm2 = vcmp.eq.s32.totalorder %v2670_v52, %v1079_v54 }
0x2a74   :  { %v1081_v58 = vsel %vm1080_vm2, %v1074_v55, 0.0 }
0x2a75   :  { %1082 = vadd.xlane.f32.xlu1 %v1081_v58 }
0x2a7d   :  { %1189 = vadd.xlane.f32.xlu1 %v1188_v0 }
0x2a85   :  { %1278 = vmax.xlane.f32.xlu1 %v1277_v56 }
0x2a9e   :  { %1292 = vperm.xlu1 %1924, %v1289_v1   ;;  %v1702_v1 = vpop.f32.mrf.mxu0 }
0x2ac7   :  { %v1769_v8 = vpop.permute.xlu2 %1768 }
0x2ac8   :  { %1385 = vmax.xlane.f32.xlu1 %v1384_v4  ;;  %1918 = vmatmul.msk.f32.vlgmr.msra.gmra.mxu2 %vm64_vm0, %v1769_v8 }
0x2ae1   :  { %1506 = vperm.xlu1 %1924, %v1503_v14  }
0x2ae8   :  { %v1083_v15 = vpop.xlane.xlu1 %1082 }
0x2ae9   :  { %v1084_v16 = vmul.f32 %v1083_v15, %v1076_v13 }
0x2aeb   :  { %v1085_v17 = vsub.f32 0.0, %v1084_v16 }
0x2af0   :  { %v1190_v40 = vpop.xlane.xlu1 %1189 }
0x2af1   :  { %v1191_v12 = vmul.f32 %v1190_v40, %v1183_v11 }
0x2af3   :  { %v1192_v9 = vsub.f32 %v1085_v17, %v1191_v12 }
0x2af8   :  { %v1279_v35 = vpop.xlane.xlu1 %1278 }
0x2af9   :  { %v1280_v59 = vsub.f32 %v1277_v56, %v1279_v35 }
0x2afb   :  { %v1281_v57 = vmul.f32 1.442695, %v1280_v59 }
0x2afd   :  { %2047 = vpow2.f32 %v1281_v57 }
0x2b03   :  { %v2048_v19 = vpop.eup %2047 }
0x2b04   :  { %1283 = vadd.xlane.f32.xlu2 %v2048_v19  ;;  %v1717_v19 = vld [vmem:[%s2750_s12 + $0x30] sm:$0xff] }
0x2b10   :  { %v1293_v60 = vpop.permute.xlu1 %1292 }
0x2b11   :  { %vm1294_vm0 = vcmp.eq.s32.totalorder %v2670_v52, %v1293_v60  ;;  %v1504_v60 = vld [vmem:[%s2751_s13 + $0x20] sm:$0xff] }
0x2b3b   :  { %v1386_v20 = vpop.xlane.xlu1 %1385 }
0x2b3c   :  { %v1387_v21 = vsub.f32 %v1384_v4, %v1386_v20 }
0x2b3e   :  { %v1388_v22 = vmul.f32 1.442695, %v1387_v21 }
0x2b40   :  { %2049 = vpow2.f32 %v1388_v22 }
0x2b46   :  { %v2050_v24 = vpop.eup %2049 }
0x2b47   :  { %1390 = vadd.xlane.f32.xlu2 %v2050_v24 }
0x2b4b   :  { %v1789_v17 = vpop.f32.mrf.mxu2 }
0x2b4c   :  { %v1792_v12 = vadd.f32 %v2628_v5, %v1789_v17 }
0x2b53   :  { %v1507_v55 = vpop.permute.xlu1 %1506 }
0x2b54   :  { %vm1508_vm4 = vcmp.eq.s32.totalorder %v2670_v52, %v1507_v55 }
0x2b5f   :  { %1399 = vperm.xlu2 %1926, %v1396_v25  }
0x2b77   :  { %v1284_v26 = vpop.xlane.xlu2 %1283 }
0x2b78   :  { %2051 = vlog2.f32 %v1284_v26 }
0x2b7e   :  { %v2052_v27 = vpop.eup %2051 }
0x2b7f   :  { %v1286_v28 = vmul.f32 0.6931472, %v2052_v27 }
0x2b81   :  { %v1287_v29 = vadd.f32 %v1286_v28, %v1279_v35 }
0x2b83   :  { %v1288_v30 = vsub.f32 %v1277_v56, %v1287_v29  ;;  %v1610_v56 = vld [vmem:[%s2750_s12 + $0x28] sm:$0xff] }
0x2b85   :  { %v1295_v31 = vsel %vm1294_vm0, %v1288_v30, 0.0 }
0x2b86   :  { %1296 = vadd.xlane.f32.xlu0 %v1295_v31 }
0x2bba   :  { %v1391_v32 = vpop.xlane.xlu2 %1390 }
0x2bbb   :  { %2053 = vlog2.f32 %v1391_v32 }
0x2bc1   :  { %v2054_v23 = vpop.eup %2053 }
0x2bc2   :  { %v1393_v33 = vmul.f32 0.6931472, %v2054_v23  ;;  %v1400_v34 = vpop.permute.xlu2 %1399 }
0x2bc3   :  { %vm1401_vm3 = vcmp.eq.s32.totalorder %v2670_v52, %v1400_v34 }
0x2bc4   :  { %v1394_v36 = vadd.f32 %v1393_v33, %v1386_v20 }
0x2bc6   :  { %v1395_v37 = vsub.f32 %v1384_v4, %v1394_v36  ;;  %v1705_v4 = vadd.f32 %v2628_v5, %v1702_v1  ;;  %v1611_v5 = vld [vmem:[%s2751_s13 + $0x28] sm:$0xff] }
0x2bc8   :  { %v1402_v38 = vsel %vm1401_vm3, %v1395_v37, 0.0 }
0x2bc9   :  { %1403 = vadd.xlane.f32.xlu0 %v1402_v38  ;;  %v1804_v38 = vld [vmem:[%s2750_s12 + $0x38] sm:$0xff] }
0x2bd1   :  { %1492 = vmax.xlane.f32.xlu0 %v1491_v39 }
0x2bf9   :  { %v1297_v41 = vpop.xlane.xlu0 %1296 }
0x2bfa   :  { %v1298_v43 = vmul.f32 %v1297_v41, %v1290_v42 }
0x2bfc   :  { %v1299_v44 = vsub.f32 %v1192_v9, %v1298_v43 }
0x2c3c   :  { %v1404_v2 = vpop.xlane.xlu0 %1403 }
0x2c3d   :  { %v1405_v45 = vmul.f32 %v1404_v2, %v1397_v10 }
0x2c3f   :  { %v1406_v3 = vsub.f32 %v1299_v44, %v1405_v45 }
0x2c44   :  { %v1493_v46 = vpop.xlane.xlu0 %1492 }
0x2c45   :  { %v1494_v47 = vsub.f32 %v1491_v39, %v1493_v46 }
0x2c47   :  { %v1495_v6 = vmul.f32 1.442695, %v1494_v47 }
0x2c49   :  { %2055 = vpow2.f32 %v1495_v6  ;;  %v1805_v6 = vld [vmem:[%s2751_s13 + $0x38] sm:$0xff] }
0x2c4f   :  { %v2056_v18 = vpop.eup %2055 }
0x2c50   :  { %1497 = vadd.xlane.f32.xlu0 %v2056_v18 }
0x2c58   :  { %1599 = vmax.xlane.f32.xlu0 %v1598_v49 }
0x2cc3   :  { %v1498_v7 = vpop.xlane.xlu0 %1497 }
0x2cc4   :  { %2057 = vlog2.f32 %v1498_v7 }
0x2cca   :  { %v2058_v50 = vpop.eup %2057 }
0x2ccb   :  { %v1500_v51 = vmul.f32 0.6931472, %v2058_v50  ;;  %v1600_v53 = vpop.xlane.xlu0 %1599 }
0x2ccc   :  { %v1601_v54 = vsub.f32 %v1598_v49, %v1600_v53 }
0x2ccd   :  { %v1501_v58 = vadd.f32 %v1500_v51, %v1493_v46 }
0x2cce   :  { %v1602_v61 = vmul.f32 1.442695, %v1601_v54 }
0x2ccf   :  { %v1502_v62 = vsub.f32 %v1491_v39, %v1501_v58  ;;  %v1718_v39 = vld [vmem:[%s2751_s13 + $0x30] sm:$0xff] }
0x2cd0   :  { %2059 = vpow2.f32 %v1602_v61 }
0x2cd1   :  { %v1509_v63 = vsel %vm1508_vm4, %v1502_v62, 0.0 }
0x2cd2   :  { %1510 = vadd.xlane.f32.xlu2 %v1509_v63 }
0x2cd6   :  { %v2060_v0 = vpop.eup %2059 }
0x2cd7   :  { %1604 = vadd.xlane.f32.xlu0 %v2060_v0 }
0x2ceb   :  { %1613 = vperm.xlu0 %1925, %v1610_v56  }
0x2d15   :  { %1706 = vmax.xlane.f32.xlu0 %v1705_v4 }
0x2d45   :  { %v1511_v20 = vpop.xlane.xlu2 %1510 }
0x2d46   :  { %v1512_v21 = vmul.f32 %v1511_v20, %v1504_v60 }
0x2d48   :  { %v1513_v24 = vsub.f32 %v1406_v3, %v1512_v21 }
0x2d4a   :  { %v1605_v8 = vpop.xlane.xlu0 %1604 }
0x2d4b   :  { %2061 = vlog2.f32 %v1605_v8 }
0x2d51   :  { %v2062_v14 = vpop.eup %2061 }
0x2d52   :  { %v1607_v15 = vmul.f32 0.6931472, %v2062_v14 }
0x2d54   :  { %v1608_v13 = vadd.f32 %v1607_v15, %v1600_v53 }
0x2d56   :  { %v1609_v11 = vsub.f32 %v1598_v49, %v1608_v13 }
0x2d5d   :  { %v1614_v16 = vpop.permute.xlu0 %1613 }
0x2d5e   :  { %vm1615_vm6 = vcmp.eq.s32.totalorder %v2670_v52, %v1614_v16 }
0x2d5f   :  { %v1616_v40 = vsel %vm1615_vm6, %v1609_v11, 0.0 }
0x2d60   :  { %1617 = vadd.xlane.f32.xlu1 %v1616_v40 }
0x2d68   :  { %1793 = vmax.xlane.f32.xlu1 %v1792_v12 }
0x2d88   :  { %v1707_v9 = vpop.xlane.xlu0 %1706 }
0x2d89   :  { %v1708_v35 = vsub.f32 %v1705_v4, %v1707_v9 }
0x2d8b   :  { %v1709_v59 = vmul.f32 1.442695, %v1708_v35 }
0x2d8d   :  { %2063 = vpow2.f32 %v1709_v59 }
0x2d93   :  { %v2064_v57 = vpop.eup %2063 }
0x2d94   :  { %1711 = vadd.xlane.f32.xlu2 %v2064_v57 }
0x2dac   :  { %1720 = vperm.xlu2 %1926, %v1717_v19  }
0x2dd3   :  { %v1618_v22 = vpop.xlane.xlu1 %1617 }
0x2dd4   :  { %v1619_v25 = vmul.f32 %v1618_v22, %v1611_v5 }
0x2dd6   :  { %v1620_v26 = vsub.f32 %v1513_v24, %v1619_v25 }
0x2ddb   :  { %v1794_v27 = vpop.xlane.xlu1 %1793 }
0x2ddc   :  { %v1795_v28 = vsub.f32 %v1792_v12, %v1794_v27 }
0x2dde   :  { %v1796_v29 = vmul.f32 1.442695, %v1795_v28 }
0x2de0   :  { %2065 = vpow2.f32 %v1796_v29 }
0x2de6   :  { %v2066_v30 = vpop.eup %2065 }
0x2de7   :  { %1798 = vadd.xlane.f32.xlu2 %v2066_v30 }
0x2e07   :  { %v1712_v31 = vpop.xlane.xlu2 %1711 }
0x2e08   :  { %2067 = vlog2.f32 %v1712_v31 }
0x2e0e   :  { %v2068_v32 = vpop.eup %2067 }
0x2e0f   :  { %v1714_v23 = vmul.f32 0.6931472, %v2068_v32  ;;  %v1721_v34 = vpop.permute.xlu2 %1720 }
0x2e10   :  { %vm1722_vm7 = vcmp.eq.s32.totalorder %v2670_v52, %v1721_v34 }
0x2e11   :  { %v1715_v33 = vadd.f32 %v1714_v23, %v1707_v9 }
0x2e13   :  { %v1716_v36 = vsub.f32 %v1705_v4, %v1715_v33 }
0x2e15   :  { %v1723_v37 = vsel %vm1722_vm7, %v1716_v36, 0.0 }
0x2e16   :  { %1724 = vadd.xlane.f32.xlu1 %v1723_v37 }
0x2e2f   :  { %1807 = vperm.xlu1 %1924, %v1804_v38  }
0x2e5a   :  { %v1799_v10 = vpop.xlane.xlu2 %1798 }
0x2e5b   :  { %2069 = vlog2.f32 %v1799_v10 }
0x2e61   :  { %v2070_v2 = vpop.eup %2069 }
0x2e62   :  { %v1801_v44 = vmul.f32 0.6931472, %v2070_v2 }
0x2e64   :  { %v1802_v45 = vadd.f32 %v1801_v44, %v1794_v27 }
0x2e66   :  { %v1803_v46 = vsub.f32 %v1792_v12, %v1802_v45 }
0x2e89   :  { %v1725_v41 = vpop.xlane.xlu1 %1724 }
0x2e8a   :  { %v1726_v42 = vmul.f32 %v1725_v41, %v1718_v39 }
0x2e8c   :  { %v1727_v43 = vsub.f32 %v1620_v26, %v1726_v42 }
0x2ea1   :  { %v1808_v3 = vpop.permute.xlu1 %1807 }
0x2ea2   :  { %vm1809_vm8 = vcmp.eq.s32.totalorder %v2670_v52, %v1808_v3 }
0x2ea3   :  { %v1810_v47 = vsel %vm1809_vm8, %v1803_v46, 0.0 }
0x2ea4   :  { %1811 = vadd.xlane.f32.xlu0 %v1810_v47 }
0x2f17   :  { %v1812_v18 = vpop.xlane.xlu0 %1811 }
0x2f18   :  { %v1813_v48 = vmul.f32 %v1812_v18, %v1805_v6 }
0x2f1a   :  { %v1814_v49 = vsub.f32 %v1727_v43, %v1813_v48 }
0x2f1c   :  { %v1816_v7 = vsel %vm1815_vm9, %v1814_v49, 0.0 }
0x2f1d   :  { %v1817_v50 = vrot.slane %v1816_v7, 4 }
0x2f1f   :  { %v1818_v51 = vadd.f32 %v1817_v50, %v1816_v7 }
0x2f21   :  { %v1819_v53 = vrot.slane %v1818_v51, 2 }
0x2f23   :  { %v1820_v54 = vadd.f32 %v1819_v53, %v1818_v51 }
0x2f25   :  { %v1821_v52 = vrot.slane %v1820_v54, 1 }
0x2f27   :  { %v1822_v55 = vadd.f32 %v1821_v52, %v1820_v54 }
0x2f29   :  { %1824 = vst.msk [vmem:[#allocation2] sm:$0x1] %vm1823_vm10, %v1822_v55 }
0x2f2a   :  { %1835 = dma.vmem_to_hbm [thread:$0]  %s1831_s3, 16, %s1833_s5, [#allocation3]  }
0x2f2b   :  { %2095 = dma.done.wait [#allocation3], 16  }
0x2f2c   :  { %2096 = vsyncadd [#allocation3], 4294967280 }
0x2f2d   :  { %1840 = vsyncpa [#allocation3], 1 }

</bundles_post_ra>
